<compile_context>
chip_gen: v6e
topology: v6e:2x2x1
jax: 0.10.0
libtpu: 0.0.40
codegen_flags: <defaults>
</compile_context>

<pallas_src>
import jax
import jax.numpy as jnp
from jax.experimental import pallas as pl
from jax.experimental.pallas import tpu as pltpu  # noqa: F401  (TPU backend)


def _gelu_erf(x):
    """Exact-erf GELU via Abramowitz-Stegun 7.1.26 polynomial (max err ~1.5e-7).

    Built only from exp / abs / where so it lowers cleanly on Mosaic (EUP exp).
    """
    z = x * 0.7071067811865476
    az = jnp.abs(z)
    t = 1.0 / (1.0 + 0.3275911 * az)
    poly = t * (0.254829592 + t * (-0.284496736 + t * (1.421413741
               + t * (-1.453152027 + t * 1.061405429))))
    erf_abs = 1.0 - poly * jnp.exp(-az * az)
    erf = jnp.where(z >= 0.0, erf_abs, -erf_abs)
    return 0.5 * x * (1.0 + erf)


# Contract the last dim of both operands: q @ k^T without materializing a transpose.
_NT = (((1,), (1,)), ((), ()))


def _make_kernel(B, N, C, num_heads, head_dim):
    nh = num_heads

    def kernel(x_ref, headmask_ref, auxw_ref, auxb_ref, avg_ref, lng_ref, lnb_ref,
               pos_ref, qkw_ref, vfoldw_ref, projb_ref, o_ref):
        headmask = headmask_ref[...]     # (nh, C)   lane mask selecting head h's channels
        auxw = auxw_ref[...]             # (C, C)    aux_w_t tiled vertically nh times
        auxb = auxb_ref[...]             # (1, C)
        avg = avg_ref[...]               # (C, C)    per-head-group averaging matrix
        lng = lng_ref[...]               # (1, C)    LayerNorm gamma tiled over heads
        lnb = lnb_ref[...]               # (1, C)
        pos = pos_ref[...]               # (nh, C)
        qkw = qkw_ref[...]               # (C, 2C)   Q (pre-scaled) and K columns of Wqkv^T
        vfoldw = vfoldw_ref[...]         # (C, nh*C) per-head V columns folded with Wproj rows
        projb = projb_ref[...]           # (1, C)

        for b in range(B):               # B tiny + static -> fully unrolled, single grid step
            xb = x_ref[b]                                            # (N, C)

            # ---- auxiliary-token branch (fused) ----
            m = jnp.mean(xb, axis=0, keepdims=True)                  # (1, C) token mean
            aux_pre = jnp.dot(headmask * m, auxw,
                              preferred_element_type=jnp.float32) + auxb       # (nh, C)
            mu = jnp.dot(aux_pre, avg, preferred_element_type=jnp.float32)     # group means
            cen = aux_pre - mu
            var = jnp.dot(cen * cen, avg, preferred_element_type=jnp.float32)  # group variances
            normed = cen * jax.lax.rsqrt(var + 1e-5) * lng + lnb               # LayerNorm(head_dim)
            aux_tok = _gelu_erf(normed) + pos                                  # (nh, C)

            # ---- attention over T = N + nh tokens ----
            xcat = jnp.concatenate([xb, aux_tok], axis=0)                      # (T, C)
            qk = jnp.dot(xcat, qkw, preferred_element_type=jnp.float32)        # (T, 2C)
            vfold = jnp.dot(xcat, vfoldw, preferred_element_type=jnp.float32)  # (T, nh*C)

            y = projb                                                          # (1, C) -> broadcast
            for h in range(nh):
                lo = h * head_dim
                hi = lo + head_dim
                q = qk[:, lo:hi]                                               # (T, hd), pre-scaled
                k = qk[:, C + lo:C + hi]                                       # (T, hd)
                s = jax.lax.dot_general(q, k, _NT,
                                        preferred_element_type=jnp.float32)    # (T, T), no k.T
                s = s - jnp.max(s, axis=-1, keepdims=True)
                p = jnp.exp(s)
                p = p * pl.reciprocal(jnp.sum(p, axis=-1, keepdims=True), approx=True)
                y = y + jnp.dot(p, vfold[:, h * C:(h + 1) * C],
                                preferred_element_type=jnp.float32)            # (T, C) accumulate

            # cls <- cls + mean(aux tokens); fold into one store per batch via row-0 mask
            aux_mean = jnp.mean(y[N:, :], axis=0, keepdims=True)               # (1, C)
            row = jax.lax.broadcasted_iota(jnp.int32, (N, 1), 0)
            cls_add = (row == 0).astype(jnp.float32) * aux_mean                # row 0 only
            o_ref[b, :, :] = (y[0:N, :] + cls_add).astype(o_ref.dtype)

    return kernel


def prepare_params(params, num_heads):
    """One-time weight prep (constant folding done outside the kernel)."""
    dim = params["proj_w_t"].shape[0]
    hd = dim // num_heads
    scale = hd ** (-0.5)
    qkv_w_t = params["qkv_w_t"]          # (dim, 3*dim)
    proj_w_t = params["proj_w_t"]        # (dim, dim)

    # Q/K columns of Wqkv^T with the attention scale folded into Q.
    qkw = jnp.concatenate([qkv_w_t[:, :dim] * scale, qkv_w_t[:, dim:2 * dim]], axis=1)

    # Per-head V columns folded with the matching rows of the output projection.
    folds = [qkv_w_t[:, 2 * dim + h * hd: 2 * dim + (h + 1) * hd]
             @ proj_w_t[h * hd:(h + 1) * hd, :] for h in range(num_heads)]
    vfoldw = jnp.concatenate(folds, axis=1)                                    # (dim, nh*dim)

    # Auxiliary-branch constants (head-structured ops expressed as dense matmuls).
    cidx = jnp.arange(dim)
    headmask = (cidx[None, :] // hd == jnp.arange(num_heads)[:, None]).astype(jnp.float32)
    auxw_big = jnp.tile(params["aux_w_t"], (num_heads, 1))                     # (dim, dim)
    avg = ((cidx[:, None] // hd) == (cidx[None, :] // hd)).astype(jnp.float32) / hd
    lng = jnp.tile(params["ln_g"], num_heads)[None, :]
    lnb = jnp.tile(params["ln_b"], num_heads)[None, :]

    return {
        "headmask": headmask,
        "auxw_big": auxw_big,
        "auxb": params["aux_b"][None, :],
        "avg": avg,
        "lng": lng,
        "lnb": lnb,
        "pos": params["pos_embed"][0],
        "qkw": qkw,
        "vfoldw": vfoldw,
        "projb": params["proj_b"],
    }


def interactive_attention_forward(x, prepared, num_heads):
    """JAX/Pallas implementation of Interactive_Attention.forward (eval mode)."""
    B, N, C = x.shape
    head_dim = C // num_heads
    kernel = _make_kernel(B, N, C, num_heads, head_dim)
    # Single grid step: every operand fits whole in VMEM (~60 KB total), so no
    # BlockSpec tiling / grid pipeline is used at all.
    return pl.pallas_call(
        kernel,
        out_shape=jax.ShapeDtypeStruct((B, N, C), x.dtype),
    )(x, prepared["headmask"], prepared["auxw_big"], prepared["auxb"],
      prepared["avg"], prepared["lng"], prepared["lnb"], prepared["pos"],
      prepared["qkw"], prepared["vfoldw"], prepared["projb"])


def reference_forward(x, params, num_heads):
    """Pure-JAX reference of the full PyTorch forward (dropouts are identity)."""
    B, N, C = x.shape
    hd = C // num_heads
    scale = hd ** (-0.5)
    m = x.reshape(B, N, num_heads, hd).mean(axis=1)
    aux = jnp.einsum("bhd,dc->bhc", m, params["aux_w_t"]) + params["aux_b"]
    a4 = aux.reshape(B, num_heads, num_heads, hd)
    mu = a4.mean(-1, keepdims=True)
    var = jnp.mean((a4 - mu) ** 2, -1, keepdims=True)
    a4 = (a4 - mu) / jnp.sqrt(var + 1e-5) * params["ln_g"] + params["ln_b"]
    a4 = jax.nn.gelu(a4, approximate=False)
    aux_tok = a4.reshape(B, num_heads, C) + params["pos_embed"]
    xc = jnp.concatenate([x, aux_tok], axis=1)
    T = N + num_heads
    qkv = xc @ params["qkv_w_t"]
    qkv = qkv.reshape(B, T, 3, num_heads, hd).transpose(2, 0, 3, 1, 4)
    q, k, v = qkv[0], qkv[1], qkv[2]
    attn = jnp.einsum("bhqd,bhkd->bhqk", q, k) * scale
    attn = jax.nn.softmax(attn, axis=-1)
    o = jnp.einsum("bhqk,bhkd->bhqd", attn, v)
    o = o.transpose(0, 2, 1, 3).reshape(B, T, C)
    o = o @ params["proj_w_t"] + params["proj_b"]
    cls, patch, aux_out = o[:, :1], o[:, 1:N], o[:, N:]
    cls = cls + aux_out.mean(axis=1, keepdims=True)
    return jnp.concatenate([cls, patch], axis=1)


def init_params(key, dim, num_heads):
    """Deterministic synthetic weights with the shapes nn.Module.__init__ implies."""
    head_dim = dim // num_heads
    ks = jax.random.split(key, 6)
    return {
        # nn.Linear(dim, 3*dim, bias=False)  -> weight^T : (dim, 3*dim)
        "qkv_w_t": 0.02 * jax.random.normal(ks[0], (dim, 3 * dim), jnp.float32),
        # nn.Linear(dim, dim)                -> weight^T : (dim, dim), bias (1, dim)
        "proj_w_t": 0.02 * jax.random.normal(ks[1], (dim, dim), jnp.float32),
        "proj_b": 0.02 * jax.random.normal(ks[2], (1, dim), jnp.float32),
        # nn.Linear(head_dim, dim, bias=True)-> weight^T : (head_dim, dim), bias (dim,)
        "aux_w_t": 0.02 * jax.random.normal(ks[3], (head_dim, dim), jnp.float32),
        "aux_b": 0.02 * jax.random.normal(ks[4], (dim,), jnp.float32),
        # nn.LayerNorm(head_dim)
        "ln_g": jnp.ones((head_dim,), jnp.float32),
        "ln_b": jnp.zeros((head_dim,), jnp.float32),
        # nn.Parameter(1, num_heads, dim), trunc_normal std=0.02 (plain normal here)
        "pos_embed": 0.02 * jax.random.normal(ks[5], (1, num_heads, dim), jnp.float32),
    }


if __name__ == "__main__":
    B, num_heads, dim = 2, 8, 32
    H = W = 4
    N = H * W + 1          # 17 tokens = 1 cls + 16 patch tokens (N-1 must be a square)

    key = jax.random.PRNGKey(0)
    kx, kp = jax.random.split(key)
    x = jax.random.normal(kx, (B, N, dim), jnp.float32)
    params = init_params(kp, dim, num_heads)

    prepared = prepare_params(params, num_heads)   # one-time weight constant-folding
    out = interactive_attention_forward(x, prepared, num_heads)
    out = jax.block_until_ready(out)

    ref = reference_forward(x, params, num_heads)
    assert out.shape == (B, N, dim)
    assert bool(jnp.max(jnp.abs(out - ref)) < 5e-3), "Pallas kernel mismatch vs reference"
    print("KERNEL_OK")
</pallas_src>

<mosaic_0001>
module attributes {stable_mosaic.version = 11 : i64} {
  func.func @kernel(%arg0: memref<2x17x32xf32, #tpu.memory_space<vmem>>, %arg1: memref<8x32xf32, #tpu.memory_space<vmem>>, %arg2: memref<32x32xf32, #tpu.memory_space<vmem>>, %arg3: memref<1x32xf32, #tpu.memory_space<vmem>>, %arg4: memref<32x32xf32, #tpu.memory_space<vmem>>, %arg5: memref<1x32xf32, #tpu.memory_space<vmem>>, %arg6: memref<1x32xf32, #tpu.memory_space<vmem>>, %arg7: memref<8x32xf32, #tpu.memory_space<vmem>>, %arg8: memref<32x64xf32, #tpu.memory_space<vmem>>, %arg9: memref<32x256xf32, #tpu.memory_space<vmem>>, %arg10: memref<1x32xf32, #tpu.memory_space<vmem>>, %arg11: memref<2x17x32xf32, #tpu.memory_space<vmem>>) attributes {dimension_semantics = [], scalar_prefetch = 0 : i64, scratch_operands = 0 : i64, tpu.core_type = #tpu.core_type<tc>} {
    %c0 = arith.constant 0 : index
    %c0_0 = arith.constant 0 : index
    %0 = vector.load %arg1[%c0, %c0_0] : memref<8x32xf32, #tpu.memory_space<vmem>>, vector<8x32xf32>
    %c0_1 = arith.constant 0 : index
    %c0_2 = arith.constant 0 : index
    %1 = vector.load %arg2[%c0_1, %c0_2] : memref<32x32xf32, #tpu.memory_space<vmem>>, vector<32x32xf32>
    %c0_3 = arith.constant 0 : index
    %c0_4 = arith.constant 0 : index
    %2 = vector.load %arg3[%c0_3, %c0_4] : memref<1x32xf32, #tpu.memory_space<vmem>>, vector<1x32xf32>
    %c0_5 = arith.constant 0 : index
    %c0_6 = arith.constant 0 : index
    %3 = vector.load %arg4[%c0_5, %c0_6] : memref<32x32xf32, #tpu.memory_space<vmem>>, vector<32x32xf32>
    %c0_7 = arith.constant 0 : index
    %c0_8 = arith.constant 0 : index
    %4 = vector.load %arg5[%c0_7, %c0_8] : memref<1x32xf32, #tpu.memory_space<vmem>>, vector<1x32xf32>
    %c0_9 = arith.constant 0 : index
    %c0_10 = arith.constant 0 : index
    %5 = vector.load %arg6[%c0_9, %c0_10] : memref<1x32xf32, #tpu.memory_space<vmem>>, vector<1x32xf32>
    %c0_11 = arith.constant 0 : index
    %c0_12 = arith.constant 0 : index
    %6 = vector.load %arg7[%c0_11, %c0_12] : memref<8x32xf32, #tpu.memory_space<vmem>>, vector<8x32xf32>
    %c0_13 = arith.constant 0 : index
    %c0_14 = arith.constant 0 : index
    %7 = vector.load %arg8[%c0_13, %c0_14] : memref<32x64xf32, #tpu.memory_space<vmem>>, vector<32x64xf32>
    %c0_15 = arith.constant 0 : index
    %c0_16 = arith.constant 0 : index
    %8 = vector.load %arg9[%c0_15, %c0_16] : memref<32x256xf32, #tpu.memory_space<vmem>>, vector<32x256xf32>
    %c0_17 = arith.constant 0 : index
    %c0_18 = arith.constant 0 : index
    %9 = vector.load %arg10[%c0_17, %c0_18] : memref<1x32xf32, #tpu.memory_space<vmem>>, vector<1x32xf32>
    %c0_19 = arith.constant 0 : index
    %c0_20 = arith.constant 0 : index
    %c0_21 = arith.constant 0 : index
    %10 = vector.load %arg0[%c0_19, %c0_20, %c0_21] : memref<2x17x32xf32, #tpu.memory_space<vmem>>, vector<1x17x32xf32>
    %11 = vector.shape_cast %10 : vector<1x17x32xf32> to vector<17x32xf32>
    %cst = arith.constant dense<0.000000e+00> : vector<32xf32>
    %12 = vector.multi_reduction <add>, %11, %cst [0] : vector<17x32xf32> to vector<32xf32>
    %13 = vector.shape_cast %12 : vector<32xf32> to vector<1x32xf32>
    %cst_22 = arith.constant 1.700000e+01 : f32
    %14 = vector.broadcast %cst_22 : f32 to vector<1x32xf32>
    %15 = arith.divf %13, %14 : vector<1x32xf32>
    %16 = vector.broadcast %15 : vector<1x32xf32> to vector<8x32xf32>
    %17 = arith.mulf %0, %16 : vector<8x32xf32>
    %cst_23 = arith.constant dense<0.000000e+00> : vector<8x32xf32>
    %18 = tpu.matmul %17, %1, %cst_23 {dimension_numbers = #tpu.dot_dimension_numbers<[1], [0], [0], [1], [0, 0, 1, 1], [], []>} : vector<8x32xf32>, vector<32x32xf32>, vector<8x32xf32> -> vector<8x32xf32>
    %19 = vector.broadcast %2 : vector<1x32xf32> to vector<8x32xf32>
    %20 = arith.addf %18, %19 : vector<8x32xf32>
    %cst_24 = arith.constant dense<0.000000e+00> : vector<8x32xf32>
    %21 = tpu.matmul %20, %3, %cst_24 {dimension_numbers = #tpu.dot_dimension_numbers<[1], [0], [0], [1], [0, 0, 1, 1], [], []>} : vector<8x32xf32>, vector<32x32xf32>, vector<8x32xf32> -> vector<8x32xf32>
    %22 = arith.subf %20, %21 : vector<8x32xf32>
    %23 = arith.mulf %22, %22 : vector<8x32xf32>
    %cst_25 = arith.constant dense<0.000000e+00> : vector<8x32xf32>
    %24 = tpu.matmul %23, %3, %cst_25 {dimension_numbers = #tpu.dot_dimension_numbers<[1], [0], [0], [1], [0, 0, 1, 1], [], []>} : vector<8x32xf32>, vector<32x32xf32>, vector<8x32xf32> -> vector<8x32xf32>
    %cst_26 = arith.constant 9.99999974E-6 : f32
    %25 = vector.broadcast %cst_26 : f32 to vector<8x32xf32>
    %26 = arith.addf %24, %25 : vector<8x32xf32>
    %27 = math.rsqrt %26 : vector<8x32xf32>
    %28 = arith.mulf %22, %27 : vector<8x32xf32>
    %29 = vector.broadcast %4 : vector<1x32xf32> to vector<8x32xf32>
    %30 = arith.mulf %28, %29 : vector<8x32xf32>
    %31 = vector.broadcast %5 : vector<1x32xf32> to vector<8x32xf32>
    %32 = arith.addf %30, %31 : vector<8x32xf32>
    %cst_27 = arith.constant 0.707106769 : f32
    %33 = vector.broadcast %cst_27 : f32 to vector<8x32xf32>
    %34 = arith.mulf %32, %33 : vector<8x32xf32>
    %35 = math.absf %34 : vector<8x32xf32>
    %cst_28 = arith.constant 0.327591091 : f32
    %36 = vector.broadcast %cst_28 : f32 to vector<8x32xf32>
    %37 = arith.mulf %36, %35 : vector<8x32xf32>
    %cst_29 = arith.constant 1.000000e+00 : f32
    %38 = vector.broadcast %cst_29 : f32 to vector<8x32xf32>
    %39 = arith.addf %38, %37 : vector<8x32xf32>
    %cst_30 = arith.constant 1.000000e+00 : f32
    %40 = vector.broadcast %cst_30 : f32 to vector<8x32xf32>
    %41 = arith.divf %40, %39 : vector<8x32xf32>
    %cst_31 = arith.constant 1.06140542 : f32
    %42 = vector.broadcast %cst_31 : f32 to vector<8x32xf32>
    %43 = arith.mulf %41, %42 : vector<8x32xf32>
    %cst_32 = arith.constant -1.45315206 : f32
    %44 = vector.broadcast %cst_32 : f32 to vector<8x32xf32>
    %45 = arith.addf %44, %43 : vector<8x32xf32>
    %46 = arith.mulf %41, %45 : vector<8x32xf32>
    %cst_33 = arith.constant 1.42141378 : f32
    %47 = vector.broadcast %cst_33 : f32 to vector<8x32xf32>
    %48 = arith.addf %47, %46 : vector<8x32xf32>
    %49 = arith.mulf %41, %48 : vector<8x32xf32>
    %cst_34 = arith.constant -0.284496725 : f32
    %50 = vector.broadcast %cst_34 : f32 to vector<8x32xf32>
    %51 = arith.addf %50, %49 : vector<8x32xf32>
    %52 = arith.mulf %41, %51 : vector<8x32xf32>
    %cst_35 = arith.constant 0.254829586 : f32
    %53 = vector.broadcast %cst_35 : f32 to vector<8x32xf32>
    %54 = arith.addf %53, %52 : vector<8x32xf32>
    %55 = arith.mulf %41, %54 : vector<8x32xf32>
    %cst_36 = arith.constant 0.000000e+00 : f32
    %56 = vector.broadcast %cst_36 : f32 to vector<8x32xf32>
    %57 = arith.subf %56, %35 : vector<8x32xf32>
    %58 = arith.mulf %57, %35 : vector<8x32xf32>
    %59 = math.exp %58 : vector<8x32xf32>
    %60 = arith.mulf %55, %59 : vector<8x32xf32>
    %cst_37 = arith.constant 1.000000e+00 : f32
    %61 = vector.broadcast %cst_37 : f32 to vector<8x32xf32>
    %62 = arith.subf %61, %60 : vector<8x32xf32>
    %cst_38 = arith.constant 0.000000e+00 : f32
    %63 = vector.broadcast %cst_38 : f32 to vector<8x32xf32>
    %64 = arith.cmpf oge, %34, %63 : vector<8x32xf32>
    %cst_39 = arith.constant 0.000000e+00 : f32
    %65 = vector.broadcast %cst_39 : f32 to vector<8x32xf32>
    %66 = arith.subf %65, %62 : vector<8x32xf32>
    %67 = arith.select %64, %62, %66 : vector<8x32xi1>, vector<8x32xf32>
    %cst_40 = arith.constant 5.000000e-01 : f32
    %68 = vector.broadcast %cst_40 : f32 to vector<8x32xf32>
    %69 = arith.mulf %68, %32 : vector<8x32xf32>
    %cst_41 = arith.constant 1.000000e+00 : f32
    %70 = vector.broadcast %cst_41 : f32 to vector<8x32xf32>
    %71 = arith.addf %70, %67 : vector<8x32xf32>
    %72 = arith.mulf %69, %71 : vector<8x32xf32>
    %73 = arith.addf %72, %6 : vector<8x32xf32>
    %74 = tpu.concatenate %11, %73 in 0 : vector<17x32xf32>, vector<8x32xf32> -> vector<25x32xf32>
    %cst_42 = arith.constant dense<0.000000e+00> : vector<25x64xf32>
    %75 = tpu.matmul %74, %7, %cst_42 {dimension_numbers = #tpu.dot_dimension_numbers<[1], [0], [0], [1], [0, 0, 1, 1], [], []>} : vector<25x32xf32>, vector<32x64xf32>, vector<25x64xf32> -> vector<25x64xf32>
    %cst_43 = arith.constant dense<0.000000e+00> : vector<25x256xf32>
    %76 = tpu.matmul %74, %8, %cst_43 {dimension_numbers = #tpu.dot_dimension_numbers<[1], [0], [0], [1], [0, 0, 1, 1], [], []>} : vector<25x32xf32>, vector<32x256xf32>, vector<25x256xf32> -> vector<25x256xf32>
    %77 = vector.extract_strided_slice %75 {offsets = [0, 0], sizes = [25, 4], strides = [1, 1]} : vector<25x64xf32> to vector<25x4xf32>
    %78 = vector.extract_strided_slice %75 {offsets = [0, 32], sizes = [25, 4], strides = [1, 1]} : vector<25x64xf32> to vector<25x4xf32>
    %cst_44 = arith.constant dense<0.000000e+00> : vector<25x25xf32>
    %79 = tpu.matmul %77, %78, %cst_44 {dimension_numbers = #tpu.dot_dimension_numbers<[1], [1], [0], [0], [0, 0, 1, 0], [], []>} : vector<25x4xf32>, vector<25x4xf32>, vector<25x25xf32> -> vector<25x25xf32>
    %cst_45 = arith.constant dense<0xFF800000> : vector<25xf32>
    %80 = vector.multi_reduction <maximumf>, %79, %cst_45 [1] : vector<25x25xf32> to vector<25xf32>
    %81 = vector.shape_cast %80 : vector<25xf32> to vector<25x1xf32>
    %82 = vector.broadcast %81 : vector<25x1xf32> to vector<25x25xf32>
    %83 = arith.subf %79, %82 : vector<25x25xf32>
    %84 = math.exp %83 : vector<25x25xf32>
    %cst_46 = arith.constant dense<0.000000e+00> : vector<25xf32>
    %85 = vector.multi_reduction <add>, %84, %cst_46 [1] : vector<25x25xf32> to vector<25xf32>
    %86 = vector.shape_cast %85 : vector<25xf32> to vector<25x1xf32>
    %87 = tpu.reciprocal %86 {approx = true} : vector<25x1xf32> -> vector<25x1xf32>
    %88 = vector.broadcast %87 : vector<25x1xf32> to vector<25x25xf32>
    %89 = arith.mulf %84, %88 : vector<25x25xf32>
    %90 = vector.extract_strided_slice %76 {offsets = [0, 0], sizes = [25, 32], strides = [1, 1]} : vector<25x256xf32> to vector<25x32xf32>
    %cst_47 = arith.constant dense<0.000000e+00> : vector<25x32xf32>
    %91 = tpu.matmul %89, %90, %cst_47 {dimension_numbers = #tpu.dot_dimension_numbers<[1], [0], [0], [1], [0, 0, 1, 1], [], []>} : vector<25x25xf32>, vector<25x32xf32>, vector<25x32xf32> -> vector<25x32xf32>
    %92 = vector.broadcast %9 : vector<1x32xf32> to vector<25x32xf32>
    %93 = arith.addf %92, %91 : vector<25x32xf32>
    %94 = vector.extract_strided_slice %75 {offsets = [0, 4], sizes = [25, 4], strides = [1, 1]} : vector<25x64xf32> to vector<25x4xf32>
    %95 = vector.extract_strided_slice %75 {offsets = [0, 36], sizes = [25, 4], strides = [1, 1]} : vector<25x64xf32> to vector<25x4xf32>
    %cst_48 = arith.constant dense<0.000000e+00> : vector<25x25xf32>
    %96 = tpu.matmul %94, %95, %cst_48 {dimension_numbers = #tpu.dot_dimension_numbers<[1], [1], [0], [0], [0, 0, 1, 0], [], []>} : vector<25x4xf32>, vector<25x4xf32>, vector<25x25xf32> -> vector<25x25xf32>
    %cst_49 = arith.constant dense<0xFF800000> : vector<25xf32>
    %97 = vector.multi_reduction <maximumf>, %96, %cst_49 [1] : vector<25x25xf32> to vector<25xf32>
    %98 = vector.shape_cast %97 : vector<25xf32> to vector<25x1xf32>
    %99 = vector.broadcast %98 : vector<25x1xf32> to vector<25x25xf32>
    %100 = arith.subf %96, %99 : vector<25x25xf32>
    %101 = math.exp %100 : vector<25x25xf32>
    %cst_50 = arith.constant dense<0.000000e+00> : vector<25xf32>
    %102 = vector.multi_reduction <add>, %101, %cst_50 [1] : vector<25x25xf32> to vector<25xf32>
    %103 = vector.shape_cast %102 : vector<25xf32> to vector<25x1xf32>
    %104 = tpu.reciprocal %103 {approx = true} : vector<25x1xf32> -> vector<25x1xf32>
    %105 = vector.broadcast %104 : vector<25x1xf32> to vector<25x25xf32>
    %106 = arith.mulf %101, %105 : vector<25x25xf32>
    %107 = vector.extract_strided_slice %76 {offsets = [0, 32], sizes = [25, 32], strides = [1, 1]} : vector<25x256xf32> to vector<25x32xf32>
    %cst_51 = arith.constant dense<0.000000e+00> : vector<25x32xf32>
    %108 = tpu.matmul %106, %107, %cst_51 {dimension_numbers = #tpu.dot_dimension_numbers<[1], [0], [0], [1], [0, 0, 1, 1], [], []>} : vector<25x25xf32>, vector<25x32xf32>, vector<25x32xf32> -> vector<25x32xf32>
    %109 = arith.addf %93, %108 : vector<25x32xf32>
    %110 = vector.extract_strided_slice %75 {offsets = [0, 8], sizes = [25, 4], strides = [1, 1]} : vector<25x64xf32> to vector<25x4xf32>
    %111 = vector.extract_strided_slice %75 {offsets = [0, 40], sizes = [25, 4], strides = [1, 1]} : vector<25x64xf32> to vector<25x4xf32>
    %cst_52 = arith.constant dense<0.000000e+00> : vector<25x25xf32>
    %112 = tpu.matmul %110, %111, %cst_52 {dimension_numbers = #tpu.dot_dimension_numbers<[1], [1], [0], [0], [0, 0, 1, 0], [], []>} : vector<25x4xf32>, vector<25x4xf32>, vector<25x25xf32> -> vector<25x25xf32>
    %cst_53 = arith.constant dense<0xFF800000> : vector<25xf32>
    %113 = vector.multi_reduction <maximumf>, %112, %cst_53 [1] : vector<25x25xf32> to vector<25xf32>
    %114 = vector.shape_cast %113 : vector<25xf32> to vector<25x1xf32>
    %115 = vector.broadcast %114 : vector<25x1xf32> to vector<25x25xf32>
    %116 = arith.subf %112, %115 : vector<25x25xf32>
    %117 = math.exp %116 : vector<25x25xf32>
    %cst_54 = arith.constant dense<0.000000e+00> : vector<25xf32>
    %118 = vector.multi_reduction <add>, %117, %cst_54 [1] : vector<25x25xf32> to vector<25xf32>
    %119 = vector.shape_cast %118 : vector<25xf32> to vector<25x1xf32>
    %120 = tpu.reciprocal %119 {approx = true} : vector<25x1xf32> -> vector<25x1xf32>
    %121 = vector.broadcast %120 : vector<25x1xf32> to vector<25x25xf32>
    %122 = arith.mulf %117, %121 : vector<25x25xf32>
    %123 = vector.extract_strided_slice %76 {offsets = [0, 64], sizes = [25, 32], strides = [1, 1]} : vector<25x256xf32> to vector<25x32xf32>
    %cst_55 = arith.constant dense<0.000000e+00> : vector<25x32xf32>
    %124 = tpu.matmul %122, %123, %cst_55 {dimension_numbers = #tpu.dot_dimension_numbers<[1], [0], [0], [1], [0, 0, 1, 1], [], []>} : vector<25x25xf32>, vector<25x32xf32>, vector<25x32xf32> -> vector<25x32xf32>
    %125 = arith.addf %109, %124 : vector<25x32xf32>
    %126 = vector.extract_strided_slice %75 {offsets = [0, 12], sizes = [25, 4], strides = [1, 1]} : vector<25x64xf32> to vector<25x4xf32>
    %127 = vector.extract_strided_slice %75 {offsets = [0, 44], sizes = [25, 4], strides = [1, 1]} : vector<25x64xf32> to vector<25x4xf32>
    %cst_56 = arith.constant dense<0.000000e+00> : vector<25x25xf32>
    %128 = tpu.matmul %126, %127, %cst_56 {dimension_numbers = #tpu.dot_dimension_numbers<[1], [1], [0], [0], [0, 0, 1, 0], [], []>} : vector<25x4xf32>, vector<25x4xf32>, vector<25x25xf32> -> vector<25x25xf32>
    %cst_57 = arith.constant dense<0xFF800000> : vector<25xf32>
    %129 = vector.multi_reduction <maximumf>, %128, %cst_57 [1] : vector<25x25xf32> to vector<25xf32>
    %130 = vector.shape_cast %129 : vector<25xf32> to vector<25x1xf32>
    %131 = vector.broadcast %130 : vector<25x1xf32> to vector<25x25xf32>
    %132 = arith.subf %128, %131 : vector<25x25xf32>
    %133 = math.exp %132 : vector<25x25xf32>
    %cst_58 = arith.constant dense<0.000000e+00> : vector<25xf32>
    %134 = vector.multi_reduction <add>, %133, %cst_58 [1] : vector<25x25xf32> to vector<25xf32>
    %135 = vector.shape_cast %134 : vector<25xf32> to vector<25x1xf32>
    %136 = tpu.reciprocal %135 {approx = true} : vector<25x1xf32> -> vector<25x1xf32>
    %137 = vector.broadcast %136 : vector<25x1xf32> to vector<25x25xf32>
    %138 = arith.mulf %133, %137 : vector<25x25xf32>
    %139 = vector.extract_strided_slice %76 {offsets = [0, 96], sizes = [25, 32], strides = [1, 1]} : vector<25x256xf32> to vector<25x32xf32>
    %cst_59 = arith.constant dense<0.000000e+00> : vector<25x32xf32>
    %140 = tpu.matmul %138, %139, %cst_59 {dimension_numbers = #tpu.dot_dimension_numbers<[1], [0], [0], [1], [0, 0, 1, 1], [], []>} : vector<25x25xf32>, vector<25x32xf32>, vector<25x32xf32> -> vector<25x32xf32>
    %141 = arith.addf %125, %140 : vector<25x32xf32>
    %142 = vector.extract_strided_slice %75 {offsets = [0, 16], sizes = [25, 4], strides = [1, 1]} : vector<25x64xf32> to vector<25x4xf32>
    %143 = vector.extract_strided_slice %75 {offsets = [0, 48], sizes = [25, 4], strides = [1, 1]} : vector<25x64xf32> to vector<25x4xf32>
    %cst_60 = arith.constant dense<0.000000e+00> : vector<25x25xf32>
    %144 = tpu.matmul %142, %143, %cst_60 {dimension_numbers = #tpu.dot_dimension_numbers<[1], [1], [0], [0], [0, 0, 1, 0], [], []>} : vector<25x4xf32>, vector<25x4xf32>, vector<25x25xf32> -> vector<25x25xf32>
    %cst_61 = arith.constant dense<0xFF800000> : vector<25xf32>
    %145 = vector.multi_reduction <maximumf>, %144, %cst_61 [1] : vector<25x25xf32> to vector<25xf32>
    %146 = vector.shape_cast %145 : vector<25xf32> to vector<25x1xf32>
    %147 = vector.broadcast %146 : vector<25x1xf32> to vector<25x25xf32>
    %148 = arith.subf %144, %147 : vector<25x25xf32>
    %149 = math.exp %148 : vector<25x25xf32>
    %cst_62 = arith.constant dense<0.000000e+00> : vector<25xf32>
    %150 = vector.multi_reduction <add>, %149, %cst_62 [1] : vector<25x25xf32> to vector<25xf32>
    %151 = vector.shape_cast %150 : vector<25xf32> to vector<25x1xf32>
    %152 = tpu.reciprocal %151 {approx = true} : vector<25x1xf32> -> vector<25x1xf32>
    %153 = vector.broadcast %152 : vector<25x1xf32> to vector<25x25xf32>
    %154 = arith.mulf %149, %153 : vector<25x25xf32>
    %155 = vector.extract_strided_slice %76 {offsets = [0, 128], sizes = [25, 32], strides = [1, 1]} : vector<25x256xf32> to vector<25x32xf32>
    %cst_63 = arith.constant dense<0.000000e+00> : vector<25x32xf32>
    %156 = tpu.matmul %154, %155, %cst_63 {dimension_numbers = #tpu.dot_dimension_numbers<[1], [0], [0], [1], [0, 0, 1, 1], [], []>} : vector<25x25xf32>, vector<25x32xf32>, vector<25x32xf32> -> vector<25x32xf32>
    %157 = arith.addf %141, %156 : vector<25x32xf32>
    %158 = vector.extract_strided_slice %75 {offsets = [0, 20], sizes = [25, 4], strides = [1, 1]} : vector<25x64xf32> to vector<25x4xf32>
    %159 = vector.extract_strided_slice %75 {offsets = [0, 52], sizes = [25, 4], strides = [1, 1]} : vector<25x64xf32> to vector<25x4xf32>
    %cst_64 = arith.constant dense<0.000000e+00> : vector<25x25xf32>
    %160 = tpu.matmul %158, %159, %cst_64 {dimension_numbers = #tpu.dot_dimension_numbers<[1], [1], [0], [0], [0, 0, 1, 0], [], []>} : vector<25x4xf32>, vector<25x4xf32>, vector<25x25xf32> -> vector<25x25xf32>
    %cst_65 = arith.constant dense<0xFF800000> : vector<25xf32>
    %161 = vector.multi_reduction <maximumf>, %160, %cst_65 [1] : vector<25x25xf32> to vector<25xf32>
    %162 = vector.shape_cast %161 : vector<25xf32> to vector<25x1xf32>
    %163 = vector.broadcast %162 : vector<25x1xf32> to vector<25x25xf32>
    %164 = arith.subf %160, %163 : vector<25x25xf32>
    %165 = math.exp %164 : vector<25x25xf32>
    %cst_66 = arith.constant dense<0.000000e+00> : vector<25xf32>
    %166 = vector.multi_reduction <add>, %165, %cst_66 [1] : vector<25x25xf32> to vector<25xf32>
    %167 = vector.shape_cast %166 : vector<25xf32> to vector<25x1xf32>
    %168 = tpu.reciprocal %167 {approx = true} : vector<25x1xf32> -> vector<25x1xf32>
    %169 = vector.broadcast %168 : vector<25x1xf32> to vector<25x25xf32>
    %170 = arith.mulf %165, %169 : vector<25x25xf32>
    %171 = vector.extract_strided_slice %76 {offsets = [0, 160], sizes = [25, 32], strides = [1, 1]} : vector<25x256xf32> to vector<25x32xf32>
    %cst_67 = arith.constant dense<0.000000e+00> : vector<25x32xf32>
    %172 = tpu.matmul %170, %171, %cst_67 {dimension_numbers = #tpu.dot_dimension_numbers<[1], [0], [0], [1], [0, 0, 1, 1], [], []>} : vector<25x25xf32>, vector<25x32xf32>, vector<25x32xf32> -> vector<25x32xf32>
    %173 = arith.addf %157, %172 : vector<25x32xf32>
    %174 = vector.extract_strided_slice %75 {offsets = [0, 24], sizes = [25, 4], strides = [1, 1]} : vector<25x64xf32> to vector<25x4xf32>
    %175 = vector.extract_strided_slice %75 {offsets = [0, 56], sizes = [25, 4], strides = [1, 1]} : vector<25x64xf32> to vector<25x4xf32>
    %cst_68 = arith.constant dense<0.000000e+00> : vector<25x25xf32>
    %176 = tpu.matmul %174, %175, %cst_68 {dimension_numbers = #tpu.dot_dimension_numbers<[1], [1], [0], [0], [0, 0, 1, 0], [], []>} : vector<25x4xf32>, vector<25x4xf32>, vector<25x25xf32> -> vector<25x25xf32>
    %cst_69 = arith.constant dense<0xFF800000> : vector<25xf32>
    %177 = vector.multi_reduction <maximumf>, %176, %cst_69 [1] : vector<25x25xf32> to vector<25xf32>
    %178 = vector.shape_cast %177 : vector<25xf32> to vector<25x1xf32>
    %179 = vector.broadcast %178 : vector<25x1xf32> to vector<25x25xf32>
    %180 = arith.subf %176, %179 : vector<25x25xf32>
    %181 = math.exp %180 : vector<25x25xf32>
    %cst_70 = arith.constant dense<0.000000e+00> : vector<25xf32>
    %182 = vector.multi_reduction <add>, %181, %cst_70 [1] : vector<25x25xf32> to vector<25xf32>
    %183 = vector.shape_cast %182 : vector<25xf32> to vector<25x1xf32>
    %184 = tpu.reciprocal %183 {approx = true} : vector<25x1xf32> -> vector<25x1xf32>
    %185 = vector.broadcast %184 : vector<25x1xf32> to vector<25x25xf32>
    %186 = arith.mulf %181, %185 : vector<25x25xf32>
    %187 = vector.extract_strided_slice %76 {offsets = [0, 192], sizes = [25, 32], strides = [1, 1]} : vector<25x256xf32> to vector<25x32xf32>
    %cst_71 = arith.constant dense<0.000000e+00> : vector<25x32xf32>
    %188 = tpu.matmul %186, %187, %cst_71 {dimension_numbers = #tpu.dot_dimension_numbers<[1], [0], [0], [1], [0, 0, 1, 1], [], []>} : vector<25x25xf32>, vector<25x32xf32>, vector<25x32xf32> -> vector<25x32xf32>
    %189 = arith.addf %173, %188 : vector<25x32xf32>
    %190 = vector.extract_strided_slice %75 {offsets = [0, 28], sizes = [25, 4], strides = [1, 1]} : vector<25x64xf32> to vector<25x4xf32>
    %191 = vector.extract_strided_slice %75 {offsets = [0, 60], sizes = [25, 4], strides = [1, 1]} : vector<25x64xf32> to vector<25x4xf32>
    %cst_72 = arith.constant dense<0.000000e+00> : vector<25x25xf32>
    %192 = tpu.matmul %190, %191, %cst_72 {dimension_numbers = #tpu.dot_dimension_numbers<[1], [1], [0], [0], [0, 0, 1, 0], [], []>} : vector<25x4xf32>, vector<25x4xf32>, vector<25x25xf32> -> vector<25x25xf32>
    %cst_73 = arith.constant dense<0xFF800000> : vector<25xf32>
    %193 = vector.multi_reduction <maximumf>, %192, %cst_73 [1] : vector<25x25xf32> to vector<25xf32>
    %194 = vector.shape_cast %193 : vector<25xf32> to vector<25x1xf32>
    %195 = vector.broadcast %194 : vector<25x1xf32> to vector<25x25xf32>
    %196 = arith.subf %192, %195 : vector<25x25xf32>
    %197 = math.exp %196 : vector<25x25xf32>
    %cst_74 = arith.constant dense<0.000000e+00> : vector<25xf32>
    %198 = vector.multi_reduction <add>, %197, %cst_74 [1] : vector<25x25xf32> to vector<25xf32>
    %199 = vector.shape_cast %198 : vector<25xf32> to vector<25x1xf32>
    %200 = tpu.reciprocal %199 {approx = true} : vector<25x1xf32> -> vector<25x1xf32>
    %201 = vector.broadcast %200 : vector<25x1xf32> to vector<25x25xf32>
    %202 = arith.mulf %197, %201 : vector<25x25xf32>
    %203 = vector.extract_strided_slice %76 {offsets = [0, 224], sizes = [25, 32], strides = [1, 1]} : vector<25x256xf32> to vector<25x32xf32>
    %cst_75 = arith.constant dense<0.000000e+00> : vector<25x32xf32>
    %204 = tpu.matmul %202, %203, %cst_75 {dimension_numbers = #tpu.dot_dimension_numbers<[1], [0], [0], [1], [0, 0, 1, 1], [], []>} : vector<25x25xf32>, vector<25x32xf32>, vector<25x32xf32> -> vector<25x32xf32>
    %205 = arith.addf %189, %204 : vector<25x32xf32>
    %206 = vector.extract_strided_slice %205 {offsets = [17, 0], sizes = [8, 32], strides = [1, 1]} : vector<25x32xf32> to vector<8x32xf32>
    %cst_76 = arith.constant dense<0.000000e+00> : vector<32xf32>
    %207 = vector.multi_reduction <add>, %206, %cst_76 [0] : vector<8x32xf32> to vector<32xf32>
    %208 = vector.shape_cast %207 : vector<32xf32> to vector<1x32xf32>
    %cst_77 = arith.constant 8.000000e+00 : f32
    %209 = vector.broadcast %cst_77 : f32 to vector<1x32xf32>
    %210 = arith.divf %208, %209 : vector<1x32xf32>
    %211 = tpu.iota {dimensions = array<i32: 0>} : vector<17x1xi32>
    %c0_i32 = arith.constant 0 : i32
    %212 = vector.broadcast %c0_i32 : i32 to vector<17x1xi32>
    %213 = arith.cmpi eq, %211, %212 : vector<17x1xi32>
    %214 = arith.extui %213 : vector<17x1xi1> to vector<17x1xi32>
    %215 = arith.sitofp %214 : vector<17x1xi32> to vector<17x1xf32>
    %216 = vector.broadcast %215 : vector<17x1xf32> to vector<17x32xf32>
    %217 = vector.broadcast %210 : vector<1x32xf32> to vector<17x32xf32>
    %218 = arith.mulf %216, %217 : vector<17x32xf32>
    %219 = vector.extract_strided_slice %205 {offsets = [0, 0], sizes = [17, 32], strides = [1, 1]} : vector<25x32xf32> to vector<17x32xf32>
    %220 = arith.addf %219, %218 : vector<17x32xf32>
    %c0_78 = arith.constant 0 : index
    %c0_79 = arith.constant 0 : index
    %c0_80 = arith.constant 0 : index
    %221 = vector.load %arg11[%c0_78, %c0_79, %c0_80] : memref<2x17x32xf32, #tpu.memory_space<vmem>>, vector<1x17x32xf32>
    %222 = vector.shape_cast %221 : vector<1x17x32xf32> to vector<17x32xf32>
    %223 = vector.shape_cast %220 : vector<17x32xf32> to vector<1x17x32xf32>
    tpu.vector_store %arg11[%c0_78, %c0_79, %c0_80], %223 {strides = array<i32>} : memref<2x17x32xf32, #tpu.memory_space<vmem>>, vector<1x17x32xf32>,
    %c1 = arith.constant 1 : index
    %c0_81 = arith.constant 0 : index
    %c0_82 = arith.constant 0 : index
    %224 = vector.load %arg0[%c1, %c0_81, %c0_82] : memref<2x17x32xf32, #tpu.memory_space<vmem>>, vector<1x17x32xf32>
    %225 = vector.shape_cast %224 : vector<1x17x32xf32> to vector<17x32xf32>
    %cst_83 = arith.constant dense<0.000000e+00> : vector<32xf32>
    %226 = vector.multi_reduction <add>, %225, %cst_83 [0] : vector<17x32xf32> to vector<32xf32>
    %227 = vector.shape_cast %226 : vector<32xf32> to vector<1x32xf32>
    %cst_84 = arith.constant 1.700000e+01 : f32
    %228 = vector.broadcast %cst_84 : f32 to vector<1x32xf32>
    %229 = arith.divf %227, %228 : vector<1x32xf32>
    %230 = vector.broadcast %229 : vector<1x32xf32> to vector<8x32xf32>
    %231 = arith.mulf %0, %230 : vector<8x32xf32>
    %cst_85 = arith.constant dense<0.000000e+00> : vector<8x32xf32>
    %232 = tpu.matmul %231, %1, %cst_85 {dimension_numbers = #tpu.dot_dimension_numbers<[1], [0], [0], [1], [0, 0, 1, 1], [], []>} : vector<8x32xf32>, vector<32x32xf32>, vector<8x32xf32> -> vector<8x32xf32>
    %233 = vector.broadcast %2 : vector<1x32xf32> to vector<8x32xf32>
    %234 = arith.addf %232, %233 : vector<8x32xf32>
    %cst_86 = arith.constant dense<0.000000e+00> : vector<8x32xf32>
    %235 = tpu.matmul %234, %3, %cst_86 {dimension_numbers = #tpu.dot_dimension_numbers<[1], [0], [0], [1], [0, 0, 1, 1], [], []>} : vector<8x32xf32>, vector<32x32xf32>, vector<8x32xf32> -> vector<8x32xf32>
    %236 = arith.subf %234, %235 : vector<8x32xf32>
    %237 = arith.mulf %236, %236 : vector<8x32xf32>
    %cst_87 = arith.constant dense<0.000000e+00> : vector<8x32xf32>
    %238 = tpu.matmul %237, %3, %cst_87 {dimension_numbers = #tpu.dot_dimension_numbers<[1], [0], [0], [1], [0, 0, 1, 1], [], []>} : vector<8x32xf32>, vector<32x32xf32>, vector<8x32xf32> -> vector<8x32xf32>
    %cst_88 = arith.constant 9.99999974E-6 : f32
    %239 = vector.broadcast %cst_88 : f32 to vector<8x32xf32>
    %240 = arith.addf %238, %239 : vector<8x32xf32>
    %241 = math.rsqrt %240 : vector<8x32xf32>
    %242 = arith.mulf %236, %241 : vector<8x32xf32>
    %243 = vector.broadcast %4 : vector<1x32xf32> to vector<8x32xf32>
    %244 = arith.mulf %242, %243 : vector<8x32xf32>
    %245 = vector.broadcast %5 : vector<1x32xf32> to vector<8x32xf32>
    %246 = arith.addf %244, %245 : vector<8x32xf32>
    %cst_89 = arith.constant 0.707106769 : f32
    %247 = vector.broadcast %cst_89 : f32 to vector<8x32xf32>
    %248 = arith.mulf %246, %247 : vector<8x32xf32>
    %249 = math.absf %248 : vector<8x32xf32>
    %cst_90 = arith.constant 0.327591091 : f32
    %250 = vector.broadcast %cst_90 : f32 to vector<8x32xf32>
    %251 = arith.mulf %250, %249 : vector<8x32xf32>
    %cst_91 = arith.constant 1.000000e+00 : f32
    %252 = vector.broadcast %cst_91 : f32 to vector<8x32xf32>
    %253 = arith.addf %252, %251 : vector<8x32xf32>
    %cst_92 = arith.constant 1.000000e+00 : f32
    %254 = vector.broadcast %cst_92 : f32 to vector<8x32xf32>
    %255 = arith.divf %254, %253 : vector<8x32xf32>
    %cst_93 = arith.constant 1.06140542 : f32
    %256 = vector.broadcast %cst_93 : f32 to vector<8x32xf32>
    %257 = arith.mulf %255, %256 : vector<8x32xf32>
    %cst_94 = arith.constant -1.45315206 : f32
    %258 = vector.broadcast %cst_94 : f32 to vector<8x32xf32>
    %259 = arith.addf %258, %257 : vector<8x32xf32>
    %260 = arith.mulf %255, %259 : vector<8x32xf32>
    %cst_95 = arith.constant 1.42141378 : f32
    %261 = vector.broadcast %cst_95 : f32 to vector<8x32xf32>
    %262 = arith.addf %261, %260 : vector<8x32xf32>
    %263 = arith.mulf %255, %262 : vector<8x32xf32>
    %cst_96 = arith.constant -0.284496725 : f32
    %264 = vector.broadcast %cst_96 : f32 to vector<8x32xf32>
    %265 = arith.addf %264, %263 : vector<8x32xf32>
    %266 = arith.mulf %255, %265 : vector<8x32xf32>
    %cst_97 = arith.constant 0.254829586 : f32
    %267 = vector.broadcast %cst_97 : f32 to vector<8x32xf32>
    %268 = arith.addf %267, %266 : vector<8x32xf32>
    %269 = arith.mulf %255, %268 : vector<8x32xf32>
    %cst_98 = arith.constant 0.000000e+00 : f32
    %270 = vector.broadcast %cst_98 : f32 to vector<8x32xf32>
    %271 = arith.subf %270, %249 : vector<8x32xf32>
    %272 = arith.mulf %271, %249 : vector<8x32xf32>
    %273 = math.exp %272 : vector<8x32xf32>
    %274 = arith.mulf %269, %273 : vector<8x32xf32>
    %cst_99 = arith.constant 1.000000e+00 : f32
    %275 = vector.broadcast %cst_99 : f32 to vector<8x32xf32>
    %276 = arith.subf %275, %274 : vector<8x32xf32>
    %cst_100 = arith.constant 0.000000e+00 : f32
    %277 = vector.broadcast %cst_100 : f32 to vector<8x32xf32>
    %278 = arith.cmpf oge, %248, %277 : vector<8x32xf32>
    %cst_101 = arith.constant 0.000000e+00 : f32
    %279 = vector.broadcast %cst_101 : f32 to vector<8x32xf32>
    %280 = arith.subf %279, %276 : vector<8x32xf32>
    %281 = arith.select %278, %276, %280 : vector<8x32xi1>, vector<8x32xf32>
    %cst_102 = arith.constant 5.000000e-01 : f32
    %282 = vector.broadcast %cst_102 : f32 to vector<8x32xf32>
    %283 = arith.mulf %282, %246 : vector<8x32xf32>
    %cst_103 = arith.constant 1.000000e+00 : f32
    %284 = vector.broadcast %cst_103 : f32 to vector<8x32xf32>
    %285 = arith.addf %284, %281 : vector<8x32xf32>
    %286 = arith.mulf %283, %285 : vector<8x32xf32>
    %287 = arith.addf %286, %6 : vector<8x32xf32>
    %288 = tpu.concatenate %225, %287 in 0 : vector<17x32xf32>, vector<8x32xf32> -> vector<25x32xf32>
    %cst_104 = arith.constant dense<0.000000e+00> : vector<25x64xf32>
    %289 = tpu.matmul %288, %7, %cst_104 {dimension_numbers = #tpu.dot_dimension_numbers<[1], [0], [0], [1], [0, 0, 1, 1], [], []>} : vector<25x32xf32>, vector<32x64xf32>, vector<25x64xf32> -> vector<25x64xf32>
    %cst_105 = arith.constant dense<0.000000e+00> : vector<25x256xf32>
    %290 = tpu.matmul %288, %8, %cst_105 {dimension_numbers = #tpu.dot_dimension_numbers<[1], [0], [0], [1], [0, 0, 1, 1], [], []>} : vector<25x32xf32>, vector<32x256xf32>, vector<25x256xf32> -> vector<25x256xf32>
    %291 = vector.extract_strided_slice %289 {offsets = [0, 0], sizes = [25, 4], strides = [1, 1]} : vector<25x64xf32> to vector<25x4xf32>
    %292 = vector.extract_strided_slice %289 {offsets = [0, 32], sizes = [25, 4], strides = [1, 1]} : vector<25x64xf32> to vector<25x4xf32>
    %cst_106 = arith.constant dense<0.000000e+00> : vector<25x25xf32>
    %293 = tpu.matmul %291, %292, %cst_106 {dimension_numbers = #tpu.dot_dimension_numbers<[1], [1], [0], [0], [0, 0, 1, 0], [], []>} : vector<25x4xf32>, vector<25x4xf32>, vector<25x25xf32> -> vector<25x25xf32>
    %cst_107 = arith.constant dense<0xFF800000> : vector<25xf32>
    %294 = vector.multi_reduction <maximumf>, %293, %cst_107 [1] : vector<25x25xf32> to vector<25xf32>
    %295 = vector.shape_cast %294 : vector<25xf32> to vector<25x1xf32>
    %296 = vector.broadcast %295 : vector<25x1xf32> to vector<25x25xf32>
    %297 = arith.subf %293, %296 : vector<25x25xf32>
    %298 = math.exp %297 : vector<25x25xf32>
    %cst_108 = arith.constant dense<0.000000e+00> : vector<25xf32>
    %299 = vector.multi_reduction <add>, %298, %cst_108 [1] : vector<25x25xf32> to vector<25xf32>
    %300 = vector.shape_cast %299 : vector<25xf32> to vector<25x1xf32>
    %301 = tpu.reciprocal %300 {approx = true} : vector<25x1xf32> -> vector<25x1xf32>
    %302 = vector.broadcast %301 : vector<25x1xf32> to vector<25x25xf32>
    %303 = arith.mulf %298, %302 : vector<25x25xf32>
    %304 = vector.extract_strided_slice %290 {offsets = [0, 0], sizes = [25, 32], strides = [1, 1]} : vector<25x256xf32> to vector<25x32xf32>
    %cst_109 = arith.constant dense<0.000000e+00> : vector<25x32xf32>
    %305 = tpu.matmul %303, %304, %cst_109 {dimension_numbers = #tpu.dot_dimension_numbers<[1], [0], [0], [1], [0, 0, 1, 1], [], []>} : vector<25x25xf32>, vector<25x32xf32>, vector<25x32xf32> -> vector<25x32xf32>
    %306 = vector.broadcast %9 : vector<1x32xf32> to vector<25x32xf32>
    %307 = arith.addf %306, %305 : vector<25x32xf32>
    %308 = vector.extract_strided_slice %289 {offsets = [0, 4], sizes = [25, 4], strides = [1, 1]} : vector<25x64xf32> to vector<25x4xf32>
    %309 = vector.extract_strided_slice %289 {offsets = [0, 36], sizes = [25, 4], strides = [1, 1]} : vector<25x64xf32> to vector<25x4xf32>
    %cst_110 = arith.constant dense<0.000000e+00> : vector<25x25xf32>
    %310 = tpu.matmul %308, %309, %cst_110 {dimension_numbers = #tpu.dot_dimension_numbers<[1], [1], [0], [0], [0, 0, 1, 0], [], []>} : vector<25x4xf32>, vector<25x4xf32>, vector<25x25xf32> -> vector<25x25xf32>
    %cst_111 = arith.constant dense<0xFF800000> : vector<25xf32>
    %311 = vector.multi_reduction <maximumf>, %310, %cst_111 [1] : vector<25x25xf32> to vector<25xf32>
    %312 = vector.shape_cast %311 : vector<25xf32> to vector<25x1xf32>
    %313 = vector.broadcast %312 : vector<25x1xf32> to vector<25x25xf32>
    %314 = arith.subf %310, %313 : vector<25x25xf32>
    %315 = math.exp %314 : vector<25x25xf32>
    %cst_112 = arith.constant dense<0.000000e+00> : vector<25xf32>
    %316 = vector.multi_reduction <add>, %315, %cst_112 [1] : vector<25x25xf32> to vector<25xf32>
    %317 = vector.shape_cast %316 : vector<25xf32> to vector<25x1xf32>
    %318 = tpu.reciprocal %317 {approx = true} : vector<25x1xf32> -> vector<25x1xf32>
    %319 = vector.broadcast %318 : vector<25x1xf32> to vector<25x25xf32>
    %320 = arith.mulf %315, %319 : vector<25x25xf32>
    %321 = vector.extract_strided_slice %290 {offsets = [0, 32], sizes = [25, 32], strides = [1, 1]} : vector<25x256xf32> to vector<25x32xf32>
    %cst_113 = arith.constant dense<0.000000e+00> : vector<25x32xf32>
    %322 = tpu.matmul %320, %321, %cst_113 {dimension_numbers = #tpu.dot_dimension_numbers<[1], [0], [0], [1], [0, 0, 1, 1], [], []>} : vector<25x25xf32>, vector<25x32xf32>, vector<25x32xf32> -> vector<25x32xf32>
    %323 = arith.addf %307, %322 : vector<25x32xf32>
    %324 = vector.extract_strided_slice %289 {offsets = [0, 8], sizes = [25, 4], strides = [1, 1]} : vector<25x64xf32> to vector<25x4xf32>
    %325 = vector.extract_strided_slice %289 {offsets = [0, 40], sizes = [25, 4], strides = [1, 1]} : vector<25x64xf32> to vector<25x4xf32>
    %cst_114 = arith.constant dense<0.000000e+00> : vector<25x25xf32>
    %326 = tpu.matmul %324, %325, %cst_114 {dimension_numbers = #tpu.dot_dimension_numbers<[1], [1], [0], [0], [0, 0, 1, 0], [], []>} : vector<25x4xf32>, vector<25x4xf32>, vector<25x25xf32> -> vector<25x25xf32>
    %cst_115 = arith.constant dense<0xFF800000> : vector<25xf32>
    %327 = vector.multi_reduction <maximumf>, %326, %cst_115 [1] : vector<25x25xf32> to vector<25xf32>
    %328 = vector.shape_cast %327 : vector<25xf32> to vector<25x1xf32>
    %329 = vector.broadcast %328 : vector<25x1xf32> to vector<25x25xf32>
    %330 = arith.subf %326, %329 : vector<25x25xf32>
    %331 = math.exp %330 : vector<25x25xf32>
    %cst_116 = arith.constant dense<0.000000e+00> : vector<25xf32>
    %332 = vector.multi_reduction <add>, %331, %cst_116 [1] : vector<25x25xf32> to vector<25xf32>
    %333 = vector.shape_cast %332 : vector<25xf32> to vector<25x1xf32>
    %334 = tpu.reciprocal %333 {approx = true} : vector<25x1xf32> -> vector<25x1xf32>
    %335 = vector.broadcast %334 : vector<25x1xf32> to vector<25x25xf32>
    %336 = arith.mulf %331, %335 : vector<25x25xf32>
    %337 = vector.extract_strided_slice %290 {offsets = [0, 64], sizes = [25, 32], strides = [1, 1]} : vector<25x256xf32> to vector<25x32xf32>
    %cst_117 = arith.constant dense<0.000000e+00> : vector<25x32xf32>
    %338 = tpu.matmul %336, %337, %cst_117 {dimension_numbers = #tpu.dot_dimension_numbers<[1], [0], [0], [1], [0, 0, 1, 1], [], []>} : vector<25x25xf32>, vector<25x32xf32>, vector<25x32xf32> -> vector<25x32xf32>
    %339 = arith.addf %323, %338 : vector<25x32xf32>
    %340 = vector.extract_strided_slice %289 {offsets = [0, 12], sizes = [25, 4], strides = [1, 1]} : vector<25x64xf32> to vector<25x4xf32>
    %341 = vector.extract_strided_slice %289 {offsets = [0, 44], sizes = [25, 4], strides = [1, 1]} : vector<25x64xf32> to vector<25x4xf32>
    %cst_118 = arith.constant dense<0.000000e+00> : vector<25x25xf32>
    %342 = tpu.matmul %340, %341, %cst_118 {dimension_numbers = #tpu.dot_dimension_numbers<[1], [1], [0], [0], [0, 0, 1, 0], [], []>} : vector<25x4xf32>, vector<25x4xf32>, vector<25x25xf32> -> vector<25x25xf32>
    %cst_119 = arith.constant dense<0xFF800000> : vector<25xf32>
    %343 = vector.multi_reduction <maximumf>, %342, %cst_119 [1] : vector<25x25xf32> to vector<25xf32>
    %344 = vector.shape_cast %343 : vector<25xf32> to vector<25x1xf32>
    %345 = vector.broadcast %344 : vector<25x1xf32> to vector<25x25xf32>
    %346 = arith.subf %342, %345 : vector<25x25xf32>
    %347 = math.exp %346 : vector<25x25xf32>
    %cst_120 = arith.constant dense<0.000000e+00> : vector<25xf32>
    %348 = vector.multi_reduction <add>, %347, %cst_120 [1] : vector<25x25xf32> to vector<25xf32>
    %349 = vector.shape_cast %348 : vector<25xf32> to vector<25x1xf32>
    %350 = tpu.reciprocal %349 {approx = true} : vector<25x1xf32> -> vector<25x1xf32>
    %351 = vector.broadcast %350 : vector<25x1xf32> to vector<25x25xf32>
    %352 = arith.mulf %347, %351 : vector<25x25xf32>
    %353 = vector.extract_strided_slice %290 {offsets = [0, 96], sizes = [25, 32], strides = [1, 1]} : vector<25x256xf32> to vector<25x32xf32>
    %cst_121 = arith.constant dense<0.000000e+00> : vector<25x32xf32>
    %354 = tpu.matmul %352, %353, %cst_121 {dimension_numbers = #tpu.dot_dimension_numbers<[1], [0], [0], [1], [0, 0, 1, 1], [], []>} : vector<25x25xf32>, vector<25x32xf32>, vector<25x32xf32> -> vector<25x32xf32>
    %355 = arith.addf %339, %354 : vector<25x32xf32>
    %356 = vector.extract_strided_slice %289 {offsets = [0, 16], sizes = [25, 4], strides = [1, 1]} : vector<25x64xf32> to vector<25x4xf32>
    %357 = vector.extract_strided_slice %289 {offsets = [0, 48], sizes = [25, 4], strides = [1, 1]} : vector<25x64xf32> to vector<25x4xf32>
    %cst_122 = arith.constant dense<0.000000e+00> : vector<25x25xf32>
    %358 = tpu.matmul %356, %357, %cst_122 {dimension_numbers = #tpu.dot_dimension_numbers<[1], [1], [0], [0], [0, 0, 1, 0], [], []>} : vector<25x4xf32>, vector<25x4xf32>, vector<25x25xf32> -> vector<25x25xf32>
    %cst_123 = arith.constant dense<0xFF800000> : vector<25xf32>
    %359 = vector.multi_reduction <maximumf>, %358, %cst_123 [1] : vector<25x25xf32> to vector<25xf32>
    %360 = vector.shape_cast %359 : vector<25xf32> to vector<25x1xf32>
    %361 = vector.broadcast %360 : vector<25x1xf32> to vector<25x25xf32>
    %362 = arith.subf %358, %361 : vector<25x25xf32>
    %363 = math.exp %362 : vector<25x25xf32>
    %cst_124 = arith.constant dense<0.000000e+00> : vector<25xf32>
    %364 = vector.multi_reduction <add>, %363, %cst_124 [1] : vector<25x25xf32> to vector<25xf32>
    %365 = vector.shape_cast %364 : vector<25xf32> to vector<25x1xf32>
    %366 = tpu.reciprocal %365 {approx = true} : vector<25x1xf32> -> vector<25x1xf32>
    %367 = vector.broadcast %366 : vector<25x1xf32> to vector<25x25xf32>
    %368 = arith.mulf %363, %367 : vector<25x25xf32>
    %369 = vector.extract_strided_slice %290 {offsets = [0, 128], sizes = [25, 32], strides = [1, 1]} : vector<25x256xf32> to vector<25x32xf32>
    %cst_125 = arith.constant dense<0.000000e+00> : vector<25x32xf32>
    %370 = tpu.matmul %368, %369, %cst_125 {dimension_numbers = #tpu.dot_dimension_numbers<[1], [0], [0], [1], [0, 0, 1, 1], [], []>} : vector<25x25xf32>, vector<25x32xf32>, vector<25x32xf32> -> vector<25x32xf32>
    %371 = arith.addf %355, %370 : vector<25x32xf32>
    %372 = vector.extract_strided_slice %289 {offsets = [0, 20], sizes = [25, 4], strides = [1, 1]} : vector<25x64xf32> to vector<25x4xf32>
    %373 = vector.extract_strided_slice %289 {offsets = [0, 52], sizes = [25, 4], strides = [1, 1]} : vector<25x64xf32> to vector<25x4xf32>
    %cst_126 = arith.constant dense<0.000000e+00> : vector<25x25xf32>
    %374 = tpu.matmul %372, %373, %cst_126 {dimension_numbers = #tpu.dot_dimension_numbers<[1], [1], [0], [0], [0, 0, 1, 0], [], []>} : vector<25x4xf32>, vector<25x4xf32>, vector<25x25xf32> -> vector<25x25xf32>
    %cst_127 = arith.constant dense<0xFF800000> : vector<25xf32>
    %375 = vector.multi_reduction <maximumf>, %374, %cst_127 [1] : vector<25x25xf32> to vector<25xf32>
    %376 = vector.shape_cast %375 : vector<25xf32> to vector<25x1xf32>
    %377 = vector.broadcast %376 : vector<25x1xf32> to vector<25x25xf32>
    %378 = arith.subf %374, %377 : vector<25x25xf32>
    %379 = math.exp %378 : vector<25x25xf32>
    %cst_128 = arith.constant dense<0.000000e+00> : vector<25xf32>
    %380 = vector.multi_reduction <add>, %379, %cst_128 [1] : vector<25x25xf32> to vector<25xf32>
    %381 = vector.shape_cast %380 : vector<25xf32> to vector<25x1xf32>
    %382 = tpu.reciprocal %381 {approx = true} : vector<25x1xf32> -> vector<25x1xf32>
    %383 = vector.broadcast %382 : vector<25x1xf32> to vector<25x25xf32>
    %384 = arith.mulf %379, %383 : vector<25x25xf32>
    %385 = vector.extract_strided_slice %290 {offsets = [0, 160], sizes = [25, 32], strides = [1, 1]} : vector<25x256xf32> to vector<25x32xf32>
    %cst_129 = arith.constant dense<0.000000e+00> : vector<25x32xf32>
    %386 = tpu.matmul %384, %385, %cst_129 {dimension_numbers = #tpu.dot_dimension_numbers<[1], [0], [0], [1], [0, 0, 1, 1], [], []>} : vector<25x25xf32>, vector<25x32xf32>, vector<25x32xf32> -> vector<25x32xf32>
    %387 = arith.addf %371, %386 : vector<25x32xf32>
    %388 = vector.extract_strided_slice %289 {offsets = [0, 24], sizes = [25, 4], strides = [1, 1]} : vector<25x64xf32> to vector<25x4xf32>
    %389 = vector.extract_strided_slice %289 {offsets = [0, 56], sizes = [25, 4], strides = [1, 1]} : vector<25x64xf32> to vector<25x4xf32>
    %cst_130 = arith.constant dense<0.000000e+00> : vector<25x25xf32>
    %390 = tpu.matmul %388, %389, %cst_130 {dimension_numbers = #tpu.dot_dimension_numbers<[1], [1], [0], [0], [0, 0, 1, 0], [], []>} : vector<25x4xf32>, vector<25x4xf32>, vector<25x25xf32> -> vector<25x25xf32>
    %cst_131 = arith.constant dense<0xFF800000> : vector<25xf32>
    %391 = vector.multi_reduction <maximumf>, %390, %cst_131 [1] : vector<25x25xf32> to vector<25xf32>
    %392 = vector.shape_cast %391 : vector<25xf32> to vector<25x1xf32>
    %393 = vector.broadcast %392 : vector<25x1xf32> to vector<25x25xf32>
    %394 = arith.subf %390, %393 : vector<25x25xf32>
    %395 = math.exp %394 : vector<25x25xf32>
    %cst_132 = arith.constant dense<0.000000e+00> : vector<25xf32>
    %396 = vector.multi_reduction <add>, %395, %cst_132 [1] : vector<25x25xf32> to vector<25xf32>
    %397 = vector.shape_cast %396 : vector<25xf32> to vector<25x1xf32>
    %398 = tpu.reciprocal %397 {approx = true} : vector<25x1xf32> -> vector<25x1xf32>
    %399 = vector.broadcast %398 : vector<25x1xf32> to vector<25x25xf32>
    %400 = arith.mulf %395, %399 : vector<25x25xf32>
    %401 = vector.extract_strided_slice %290 {offsets = [0, 192], sizes = [25, 32], strides = [1, 1]} : vector<25x256xf32> to vector<25x32xf32>
    %cst_133 = arith.constant dense<0.000000e+00> : vector<25x32xf32>
    %402 = tpu.matmul %400, %401, %cst_133 {dimension_numbers = #tpu.dot_dimension_numbers<[1], [0], [0], [1], [0, 0, 1, 1], [], []>} : vector<25x25xf32>, vector<25x32xf32>, vector<25x32xf32> -> vector<25x32xf32>
    %403 = arith.addf %387, %402 : vector<25x32xf32>
    %404 = vector.extract_strided_slice %289 {offsets = [0, 28], sizes = [25, 4], strides = [1, 1]} : vector<25x64xf32> to vector<25x4xf32>
    %405 = vector.extract_strided_slice %289 {offsets = [0, 60], sizes = [25, 4], strides = [1, 1]} : vector<25x64xf32> to vector<25x4xf32>
    %cst_134 = arith.constant dense<0.000000e+00> : vector<25x25xf32>
    %406 = tpu.matmul %404, %405, %cst_134 {dimension_numbers = #tpu.dot_dimension_numbers<[1], [1], [0], [0], [0, 0, 1, 0], [], []>} : vector<25x4xf32>, vector<25x4xf32>, vector<25x25xf32> -> vector<25x25xf32>
    %cst_135 = arith.constant dense<0xFF800000> : vector<25xf32>
    %407 = vector.multi_reduction <maximumf>, %406, %cst_135 [1] : vector<25x25xf32> to vector<25xf32>
    %408 = vector.shape_cast %407 : vector<25xf32> to vector<25x1xf32>
    %409 = vector.broadcast %408 : vector<25x1xf32> to vector<25x25xf32>
    %410 = arith.subf %406, %409 : vector<25x25xf32>
    %411 = math.exp %410 : vector<25x25xf32>
    %cst_136 = arith.constant dense<0.000000e+00> : vector<25xf32>
    %412 = vector.multi_reduction <add>, %411, %cst_136 [1] : vector<25x25xf32> to vector<25xf32>
    %413 = vector.shape_cast %412 : vector<25xf32> to vector<25x1xf32>
    %414 = tpu.reciprocal %413 {approx = true} : vector<25x1xf32> -> vector<25x1xf32>
    %415 = vector.broadcast %414 : vector<25x1xf32> to vector<25x25xf32>
    %416 = arith.mulf %411, %415 : vector<25x25xf32>
    %417 = vector.extract_strided_slice %290 {offsets = [0, 224], sizes = [25, 32], strides = [1, 1]} : vector<25x256xf32> to vector<25x32xf32>
    %cst_137 = arith.constant dense<0.000000e+00> : vector<25x32xf32>
    %418 = tpu.matmul %416, %417, %cst_137 {dimension_numbers = #tpu.dot_dimension_numbers<[1], [0], [0], [1], [0, 0, 1, 1], [], []>} : vector<25x25xf32>, vector<25x32xf32>, vector<25x32xf32> -> vector<25x32xf32>
    %419 = arith.addf %403, %418 : vector<25x32xf32>
    %420 = vector.extract_strided_slice %419 {offsets = [17, 0], sizes = [8, 32], strides = [1, 1]} : vector<25x32xf32> to vector<8x32xf32>
    %cst_138 = arith.constant dense<0.000000e+00> : vector<32xf32>
    %421 = vector.multi_reduction <add>, %420, %cst_138 [0] : vector<8x32xf32> to vector<32xf32>
    %422 = vector.shape_cast %421 : vector<32xf32> to vector<1x32xf32>
    %cst_139 = arith.constant 8.000000e+00 : f32
    %423 = vector.broadcast %cst_139 : f32 to vector<1x32xf32>
    %424 = arith.divf %422, %423 : vector<1x32xf32>
    %425 = tpu.iota {dimensions = array<i32: 0>} : vector<17x1xi32>
    %c0_i32_140 = arith.constant 0 : i32
    %426 = vector.broadcast %c0_i32_140 : i32 to vector<17x1xi32>
    %427 = arith.cmpi eq, %425, %426 : vector<17x1xi32>
    %428 = arith.extui %427 : vector<17x1xi1> to vector<17x1xi32>
    %429 = arith.sitofp %428 : vector<17x1xi32> to vector<17x1xf32>
    %430 = vector.broadcast %429 : vector<17x1xf32> to vector<17x32xf32>
    %431 = vector.broadcast %424 : vector<1x32xf32> to vector<17x32xf32>
    %432 = arith.mulf %430, %431 : vector<17x32xf32>
    %433 = vector.extract_strided_slice %419 {offsets = [0, 0], sizes = [17, 32], strides = [1, 1]} : vector<25x32xf32> to vector<17x32xf32>
    %434 = arith.addf %433, %432 : vector<17x32xf32>
    %c1_141 = arith.constant 1 : index
    %c0_142 = arith.constant 0 : index
    %c0_143 = arith.constant 0 : index
    %435 = vector.load %arg11[%c1_141, %c0_142, %c0_143] : memref<2x17x32xf32, #tpu.memory_space<vmem>>, vector<1x17x32xf32>
    %436 = vector.shape_cast %435 : vector<1x17x32xf32> to vector<17x32xf32>
    %437 = vector.shape_cast %434 : vector<17x32xf32> to vector<1x17x32xf32>
    tpu.vector_store %arg11[%c1_141, %c0_142, %c0_143], %437 {strides = array<i32>} : memref<2x17x32xf32, #tpu.memory_space<vmem>>, vector<1x17x32xf32>,
    return
  }
}

</mosaic_0001>

<bundles_post_ra>
// kernel: tpu_custom_call.1
= control target key start
LH: loop header
LB: loop body
LE: loop exit
PB: predicated region body
PF: predicated region fallthrough
CT: control target
= control target key end

     0   :  { %16 = vsyncpa [#allocation3], 0  ;;  %s8452_s0 = inlined_call_operand.vmem [shape: f32[2,17,32], index: 0, kind: input, shape index: {}]   ;;  %s8453_s1 = inlined_call_operand.hbm [shape: f32[8,32], index: 1, kind: input, shape index: {}]   ;;  %s8454_s2 = inlined_call_operand.vmem [shape: f32[32,32], index: 2, kind: input, shape index: {}]   ;;  %s8455_s3 = inlined_call_operand.vmem [shape: f32[1,32], index: 3, kind: input, shape index: {}]   ;;  %s8456_s4 = inlined_call_operand.hbm [shape: f32[32,32], index: 4, kind: input, shape index: {}]   ;;  %s8457_s5 = inlined_call_operand.vmem [shape: f32[1,32], index: 5, kind: input, shape index: {}]   ;;  %s8458_s6 = inlined_call_operand.hbm [shape: f32[1,32], index: 6, kind: input, shape index: {}]   ;;  %s8459_s7 = inlined_call_operand.hbm [shape: f32[8,32], index: 7, kind: input, shape index: {}]   ;;  %s8460_s8 = inlined_call_operand.hbm [shape: f32[32,64], index: 8, kind: input, shape index: {}]   ;;  %s8461_s9 = inlined_call_operand.vmem [shape: f32[32,256], index: 9, kind: input, shape index: {}]   ;;  %s8462_s10 = inlined_call_operand.vmem [shape: f32[1,32], index: 10, kind: input, shape index: {}]   ;;  %s8463_s11 = inlined_call_operand.vmem [shape: f32[2,17,32], index: 11, kind: output, shape index: {}]  }
   0x1   :  { %17 = vsyncpa [#allocation5], 0 }
   0x2   :  { %18 = vsyncpa [#allocation8], 0  ;;  %s7018_s17 = smov [#allocation4]  }
   0x3   :  { %s40_s18 = sshll.u32 %s7018_s17, 4  ;;  %s41_s18 = int_to_ptr.vmem [resolvable:$true] %s40_s18 }
   0x4   :  { %s6920_s19 = scalar_lea.vmem %s41_s18, 512  ;;  %p6925_p1 = scmp.lt.s32.totalorder %s41_s18, %s41_s18 }
   0x5   :  { %p6921_p0 = scmp.ne.s32.totalorder %s41_s18, %s6920_s19  ;;  %p6926_p2 = scmp.lt.s32.totalorder %s6920_s19, %s6920_s19 }
   0x7   :  { %p6927_p3 = por %p6926_p2, %p6925_p1 }
   0x9   :  { %p6928_p4 = pnand %p6927_p3, %p6921_p0 }
   0xb   :  { %6931 = shalt.err (!%p6928_p4)
}
   0xc   :  { %s7019_s20 = smov 128   ;;  %s7020_s21 = smov 8  }
   0xd   :  { %46 = dma.hbm_to_vmem [thread:$0]  %s8456_s4, 512, %s41_s18, [#allocation5], %s7019_s20, %s7019_s20, %s7020_s21  }
   0xe   :  { %s7021_s24 = smov [#allocation7]   ;;  %s7022_s26 = smov [#allocation2]  }
   0xf   :  { %s65_s25 = sshll.u32 %s7021_s24, 4  ;;  %s27_s27 = sshll.u32 %s7022_s26, 4  ;;  %s66_s25 = int_to_ptr.vmem [resolvable:$true] %s65_s25  ;;  %s28_s27 = int_to_ptr.vmem [resolvable:$true] %s27_s27 }
  0x10   :  { %s6940_s28 = scalar_lea.vmem %s66_s25, 128  ;;  %p6945_p6 = scmp.lt.s32.totalorder %s66_s25, %s66_s25 }
  0x11   :  { %p6941_p5 = scmp.ne.s32.totalorder %s66_s25, %s6940_s28  ;;  %p6946_p7 = scmp.lt.s32.totalorder %s6940_s28, %s6940_s28 }
  0x13   :  { %p6947_p8 = por %p6946_p7, %p6945_p6 }
  0x15   :  { %p6948_p9 = pnand %p6947_p8, %p6941_p5 }
  0x17   :  { %6951 = shalt.err (!%p6948_p9)
}
  0x18   :  { %68 = dma.hbm_to_vmem [thread:$0]  %s8459_s7, 128, %s66_s25, [#allocation8]  }
  0x19   :  { %s6960_s12 = scalar_lea.vmem %s28_s27, 128  ;;  %p6965_p11 = scmp.lt.s32.totalorder %s28_s27, %s28_s27 }
  0x1a   :  { %p6961_p10 = scmp.ne.s32.totalorder %s28_s27, %s6960_s12  ;;  %p6966_p12 = scmp.lt.s32.totalorder %s6960_s12, %s6960_s12 }
  0x1c   :  { %p6967_p13 = por %p6966_p12, %p6965_p11 }
  0x1e   :  { %p6968_p0 = pnand %p6967_p13, %p6961_p10 }
  0x20   :  { %6971 = shalt.err (!%p6968_p0)
}
  0x21   :  { %30 = dma.hbm_to_vmem [thread:$0]  %s8453_s1, 128, %s28_s27, [#allocation3]  }
  0x22   :  { %s7023_s14 = smov [#allocation6]   ;;  %s7024_s16 = smov [#allocation9]  }
  0x23   :  { %s55_s15 = sshll.u32 %s7023_s14, 4  ;;  %s74_s17 = sshll.u32 %s7024_s16, 4  ;;  %s56_s15 = int_to_ptr.vmem [resolvable:$true] %s55_s15  ;;  %s75_s17 = int_to_ptr.vmem [resolvable:$true] %s74_s17 }
  0x24   :  { %s6980_s18 = scalar_lea.vmem %s56_s15, 16  ;;  %s6984_s7 = scalar_lea.vmem %s56_s15, 32 }
  0x25   :  { %p6981_p1 = scmp.ne.s32.totalorder %s56_s15, %s6980_s18  ;;  %p6985_p2 = scmp.lt.s32.totalorder %s56_s15, %s56_s15 }
  0x26   :  { %p6986_p3 = scmp.lt.s32.totalorder %s6984_s7, %s6980_s18 }
  0x28   :  { %p6987_p4 = por %p6986_p3, %p6985_p2 }
  0x2a   :  { %p6988_p5 = pnand %p6987_p4, %p6981_p1 }
  0x2c   :  { %6991 = shalt.err (!%p6988_p5)
}
  0x2d   :  { %58 = dma.hbm_to_vmem [thread:$0]  %s8458_s6, 16, %s56_s15, [#allocation5]  }
  0x2e   :  { %s7000_s23 = scalar_lea.vmem %s75_s17, 512  ;;  %p7005_p7 = scmp.lt.s32.totalorder %s75_s17, %s75_s17 }
  0x2f   :  { %p7001_p6 = scmp.ne.s32.totalorder %s75_s17, %s7000_s23  ;;  %p7006_p8 = scmp.lt.s32.totalorder %s7000_s23, %s7000_s23 }
  0x31   :  { %p7007_p9 = por %p7006_p8, %p7005_p7 }
  0x33   :  { %p7008_p10 = pnand %p7007_p9, %p7001_p6 }
  0x35   :  { %7011 = shalt.err (!%p7008_p10)
}
  0x36   :  { %80 = dma.hbm_to_vmem [thread:$0]  %s8460_s8, 512, %s75_s17, [#allocation8], %s7019_s20, %s7019_s20, %s7020_s21  }
  0x37   :  { %7012 = dma.done.wait [#allocation3], 128  }
  0x38   :  { %7013 = vsyncadd [#allocation3], 4294967168 }
  0x39   :  { %7014 = dma.done.wait [#allocation5], 528  }
  0x3a   :  { %7015 = vsyncadd [#allocation5], 4294966768 }
  0x3b   :  { %7016 = dma.done.wait [#allocation8], 640  }
  0x3c   :  { %7017 = vsyncadd [#allocation8], 4294966656  ;;  %v7025_v0 = vmov 0.0   ;;  %vm7026_vm0 = vmmov 0   ;;  %vm129_vm1 = vcmask 261120   ;;  %v104_v1 = vld [vmem:[%s8454_s2 + $0x18] sm:$0xff] }
  0x3d   :  { %6050 = vmatprep.subr.mxu0 %v7025_v0  ;;  %6058 = vmatprep.mubr.msk.f32.mxu0 %vm7026_vm0, %v7025_v0  ;;  %v103_v2 = vld [vmem:[%s8454_s2 + $0x10] sm:$0xff]  ;;  %vm133_vm2 = vcmask 253952   ;;  %v7140_v3 = vld [vmem:[%s8452_s0] sm:$0xff]  ;;  %v102_v4 = vld [vmem:[%s8454_s2 + $0x8] sm:$0xff]  ;;  %vm419_vm4 = vcmask 1040384   ;;  %vm618_vm5 = vcmask 31744  }
  0x3e   :  { %6061 = vmatprep.subr.mxu1 %v7025_v0  ;;  %6069 = vmatprep.mubr.msk.f32.mxu1 %vm7026_vm0, %v7025_v0  ;;  %v7149_v5 = vld [vmem:[%s8452_s0 + $0x8] sm:$0xff]  ;;  %v7154_v6 = vld [vmem:[%s8452_s0 + $0x10] sm:$0x1]  ;;  %v130_v7 = vsel %vm129_vm1, %v7140_v3, 0.0  ;;  %v101_v10 = vld [vmem:[%s8454_s2] sm:$0xff]  ;;  %s7027_s12 = smov 96  }
  0x3f   :  { %6051 = vmatpush3.msra.mxu0 %v104_v1  ;;  %v131_v8 = vsel %vm129_vm1, %v7149_v5, 0.0  ;;  %v134_v9 = vsel %vm133_vm2, %v7154_v6, 0.0  ;;  %v109_v12 = vld [vmem:[#allocation4 + $0x18] sm:$0xff]  ;;  %v108_v13 = vld [vmem:[#allocation4 + $0x10] sm:$0xff]  ;;  %v107_v24 = vld [vmem:[#allocation4 + $0x8] sm:$0xff]  ;;  %s7028_s4 = smov 92  }
  0x40   :  { %6052 = vmatprep.subr.mxu0 %v7025_v0  ;;  %v132_v11 = vadd.f32 %v131_v8, %v130_v7  ;;  %6062 = vmatpush3.msra.mxu1 %v109_v12  ;;  %v100_v21 = vld [vmem:[#allocation2] sm:$0xff]  ;;  %v106_v25 = vld [vmem:[#allocation4] sm:$0xff]  ;;  %v124_v34 = vld [vmem:[%s8461_s9 + $0x38] sm:$0xff]  ;;  %s7029_s13 = smov 124   ;;  %vm720_vm6 = vcmask 203776   ;;  %vm730_vm7 = vcmask 196608  }
  0x41   :  { %6053 = vmatpush3.msra.mxu0 %v103_v2  ;;  %6063 = vmatprep.subr.mxu1 %v7025_v0  ;;  %v5507_v26 = vld [vmem:[%s8455_s3] ss:$0 sm:$0xff]  ;;  %v116_v35 = vld [vmem:[#allocation9 + $0x18] sm:$0xff]  ;;  %v115_v38 = vld [vmem:[#allocation9 + $0x10] sm:$0xff]  ;;  %s7030_s14 = smov 88   ;;  %s7031_s15 = smov 120  }
  0x42   :  { %6054 = vmatprep.subr.mxu0 %v7025_v0  ;;  %v135_v14 = vadd.f32 %v134_v9, %v132_v11  ;;  %6064 = vmatpush3.msra.mxu1 %v108_v13  ;;  %v123_v36 = vld [vmem:[%s8461_s9 + $0x30] sm:$0xff]  ;;  %v122_v37 = vld [vmem:[%s8461_s9 + $0x28] sm:$0xff]  ;;  %v121_v39 = vld [vmem:[%s8461_s9 + $0x20] sm:$0xff]  ;;  %s7032_s16 = smov 64   ;;  %s7033_s7 = smov 84   ;;  %vm2799_vm8 = vcmask 1046528  }
  0x43   :  { %6055 = vmatpush3.msra.mxu0 %v102_v4  ;;  %6065 = vmatprep.subr.mxu1 %v7025_v0  ;;  %v120_v40 = vld [vmem:[%s8461_s9 + $0x18] sm:$0xff]  ;;  %v119_v42 = vld [vmem:[%s8461_s9 + $0x10] sm:$0xff]  ;;  %v118_v43 = vld [vmem:[%s8461_s9 + $0x8] sm:$0xff]  ;;  %s7034_s19 = smov 116   ;;  %s7035_s22 = smov 32  }
  0x44   :  { %6056 = vmatprep.subr.mxu0 %v7025_v0  ;;  %v136_v15 = vrot.slane %v135_v14, 4  ;;  %6066 = vmatpush3.msra.mxu1 %v107_v24  ;;  %v114_v41 = vld [vmem:[#allocation9 + $0x8] sm:$0xff]  ;;  %v113_v44 = vld [vmem:[#allocation9] sm:$0xff]  ;;  %v5512_v52 = vld [vmem:[#allocation6] ss:$0 sm:$0xff]  ;;  %s7036_s23 = smov 80  }
  0x45   :  { %6057 = vmatpush3.msra.mxu0 %v101_v10  ;;  %6067 = vmatprep.subr.mxu1 %v7025_v0  ;;  %v117_v45 = vld [vmem:[%s8461_s9] sm:$0xff]  ;;  %s7037_s1 = smov 112   ;;  %s7038_s24 = smov 76  }
  0x46   :  { %6072 = vmatprep.subr.mxu0 %v7025_v0  ;;  %v137_v16 = vadd.f32 %v136_v15, %v135_v14  ;;  %6068 = vmatpush3.msra.mxu1 %v106_v25  ;;  %v5511_v50 = vld [vmem:[%s8457_s5] ss:$0 sm:$0xff]  ;;  %s7039_s6 = smov 108   ;;  %s7040_s8 = smov 72  }
  0x47   :  { %6083 = vmatprep.subr.mxu1 %v116_v35  ;;  %s7041_s20 = smov 104   ;;  %s7042_s21 = smov 68  }
  0x48   :  { %v138_v17 = vrot.slane %v137_v16, 2  ;;  %s7043_s25 = smov 100  }
  0x4a   :  { %v139_v18 = vadd.f32 %v138_v17, %v137_v16  ;;  %v112_v17 = vld [vmem:[#allocation7] sm:$0xff] }
  0x4c   :  { %v140_v19 = vrot.slane %v139_v18, 1 }
  0x4e   :  { %v141_v20 = vadd.f32 %v140_v19, %v139_v18 }
  0x50   :  { %v143_v22 = vmul.f32 0.05882353, %v141_v20 }
  0x52   :  { %v144_v23 = vmul.f32 %v143_v22, %v100_v21 }
  0x54   :  { %6059 = vmatmul.mubr.msk.f32.vlgmr.msra.gmra.mxu0 %vm129_vm1, %v144_v23 }
  0x55   :  { %6073 = vmatpush3.msra.mxu0 %v109_v12  ;;  %6080 = vmatprep.mubr.msk.f32.mxu0 %vm7026_vm0, %v7025_v0 }
  0x56   :  { %6074 = vmatprep.subr.mxu0 %v7025_v0 }
  0x57   :  { %6075 = vmatpush3.msra.mxu0 %v108_v13 }
  0x58   :  { %6076 = vmatprep.subr.mxu0 %v7025_v0 }
  0x59   :  { %6077 = vmatpush3.msra.mxu0 %v107_v24 }
  0x5a   :  { %6078 = vmatprep.subr.mxu0 %v7025_v0 }
  0x5b   :  { %6079 = vmatpush3.msra.mxu0 %v106_v25 }
  0x5c   :  { %541 = vmatprep.subr.mxu0 %v124_v34 }
 0x114   :  { %v220_v27 = vpop.f32.mrf.mxu0 }
 0x115   :  { %v221_v28 = vadd.f32 %v5507_v26, %v220_v27 }
 0x116   :  { %v6060_v29 = vpop.f32.mrf.mxu0 }
 0x117   :  { %6070 = vmatmul.mubr.msk.f32.vlgmr.msra.gmra.mxu1 %vm129_vm1, %v221_v28 }
 0x118   :  { %6091 = vmatprep.mubr.msk.f32.mxu1 %vm129_vm1, %v7140_v3  ;;  %6084 = vmatpush3.msra.mxu1 %v116_v35 }
 0x119   :  { %6085 = vmatprep.subr.mxu1 %v115_v38 }
 0x11a   :  { %6086 = vmatpush3.msra.mxu1 %v115_v38 }
 0x11b   :  { %6087 = vmatprep.subr.mxu1 %v114_v41 }
 0x11c   :  { %6088 = vmatpush3.msra.mxu1 %v114_v41 }
 0x11d   :  { %6089 = vmatprep.subr.mxu1 %v113_v44 }
 0x11e   :  { %6090 = vmatpush3.msra.mxu1 %v113_v44 }
 0x11f   :  { %6092 = vmatmul.mubr.msk.f32.vlgmr.msra.gmra.mxu1 %vm129_vm1, %v7149_v5 }
 0x1d7   :  { %v293_v30 = vpop.f32.mrf.mxu1 }
 0x1d8   :  { %v297_v31 = vsub.f32 %v221_v28, %v293_v30 }
 0x1d9   :  { %v6071_v32 = vpop.f32.mrf.mxu1 }
 0x1da   :  { %v298_v33 = vmul.f32 %v297_v31, %v297_v31 }
 0x1dc   :  { %6081 = vmatmul.mubr.msk.f32.vlgmr.msra.gmra.mxu0 %vm129_vm1, %v298_v33 }
 0x1dd   :  { %581 = vmatprep.mubr.f32.mxu0 %v7025_v0  ;;  %542 = vmatpush1.msra.mxu0 %v123_v36 }
 0x1de   :  { %543 = vmatprep.subr.mxu0 %v122_v37 }
 0x1df   :  { %544 = vmatpush1.msra.mxu0 %v121_v39  ;;  %v7227_v22 = vpop.f32.mrf.mxu1 }
 0x1e0   :  { %545 = vmatprep.subr.mxu0 %v120_v40  ;;  %612 = vrot.lane.b32.xlu1 %v7227_v22, %s7027_s12 }
 0x1e1   :  { %546 = vmatpush1.msra.mxu0 %v119_v42  ;;  %v7231_v23 = vpop.f32.mrf.mxu1 }
 0x1e2   :  { %547 = vmatprep.subr.mxu0 %v118_v43 }
 0x1e3   :  { %548 = vmatpush1.msra.mxu0 %v117_v45 }
 0x1e4   :  { %5517 = vmatmul.mubr.msk.f32.vlgmr.msra.gmra.mxu0 %vm129_vm1, %v7140_v3  ;;  %610 = vrot.lane.b32.xlu1 %v7231_v23, %s7027_s12 }
 0x1e5   :  { %587 = vmatprep.mubr.f32.mxu0 %v7025_v0 }
 0x1e8   :  { %5518 = vmatmul.mubr.msk.f32.gmra.mxu0 %vm129_vm1, %v7149_v5 }
 0x1e9   :  { %593 = vmatprep.mubr.f32.mxu0 %v7025_v0 }
 0x252   :  { %v613_v32 = vpop.permute.xlu1 %612 }
 0x256   :  { %v611_v33 = vpop.permute.xlu1 %610 }
 0x29c   :  { %v368_v46 = vpop.f32.mrf.mxu0 }
 0x29d   :  { %v369_v47 = vadd.f32 1e-05, %v368_v46 }
 0x29e   :  { %v6082_v48 = vpop.f32.mrf.mxu0 }
 0x29f   :  { %6618 = vrsqrt.f32 %v369_v47 }
 0x2ac   :  { %v6619_v49 = vpop.eup %6618 }
 0x2ad   :  { %v373_v51 = vmul.f32 %v6619_v49, %v297_v31 }
 0x2af   :  { %v380_v53 = vmul.f32 %v5511_v50, %v373_v51 }
 0x2b1   :  { %v387_v54 = vadd.f32 %v5512_v52, %v380_v53 }
 0x2b3   :  { %v388_v55 = vmul.f32 0.70710677, %v387_v54  ;;  %v412_v15 = vmul.f32 0.5, %v387_v54 }
 0x2b5   :  { %v389_v56 = vand.u32 2147483647, %v388_v55  ;;  %vm409_vm3 = vcmp.ge.f32.partialorder %v388_v55, 0.0 }
 0x2b7   :  { %v390_v57 = vmul.f32 0.3275911, %v389_v56  ;;  %v403_v59 = vsub.f32 0.0, %v389_v56 }
 0x2b9   :  { %v391_v58 = vadd.f32 1.0, %v390_v57  ;;  %v404_v60 = vmul.f32 %v403_v59, %v389_v56 }
 0x2bb   :  { %6620 = vrcp.f32 %v391_v58  ;;  %v405_v63 = vmul.f32 1.442695, %v404_v60 }
 0x2bd   :  { %6622 = vpow2.f32 %v405_v63 }
 0x2c8   :  { %v6621_v61 = vpop.eup %6620 }
 0x2c9   :  { %v394_v62 = vmul.f32 1.0614054, %v6621_v61 }
 0x2ca   :  { %v6623_v10 = vpop.eup %6622 }
 0x2cb   :  { %v395_v1 = vadd.f32 -1.4531521, %v394_v62 }
 0x2cd   :  { %v396_v2 = vmul.f32 %v6621_v61, %v395_v1 }
 0x2cf   :  { %v397_v3 = vadd.f32 1.4214138, %v396_v2 }
 0x2d1   :  { %v398_v4 = vmul.f32 %v6621_v61, %v397_v3 }
 0x2d3   :  { %v399_v5 = vadd.f32 -0.28449672, %v398_v4 }
 0x2d5   :  { %v400_v7 = vmul.f32 %v6621_v61, %v399_v5 }
 0x2d7   :  { %v401_v8 = vadd.f32 0.2548296, %v400_v7 }
 0x2d9   :  { %v402_v9 = vmul.f32 %v6621_v61, %v401_v8 }
 0x2db   :  { %v407_v11 = vmul.f32 %v6623_v10, %v402_v9 }
 0x2dd   :  { %v408_v12 = vsub.f32 1.0, %v407_v11 }
 0x2df   :  { %v410_v13 = vsub.f32 0.0, %v408_v12 }
 0x2e1   :  { %v411_v14 = vsel %vm409_vm3, %v408_v12, %v410_v13 }
 0x2e2   :  { %v413_v16 = vadd.f32 1.0, %v411_v14 }
 0x2e4   :  { %v414_v18 = vmul.f32 %v413_v16, %v412_v15 }
 0x2e6   :  { %v415_v19 = vadd.f32 %v414_v18, %v112_v17 }
 0x2e8   :  { %v417_v20 = vrot.slane %v415_v19, 7 }
 0x2ea   :  { %v420_v21 = vsel %vm419_vm4, %v7154_v6, %v417_v20  ;;  %v7237_v6 = vpop.f32.mrf.mxu0 }
 0x2eb   :  { %6094 = vmatprep.mubr.msk.f32.mxu1 %vm129_vm1, %v420_v21  ;;  %5519 = vmatmul.mubr.msk.f32.gmra.mxu0 %vm129_vm1, %v420_v21 }
 0x2ec   :  { %6095 = vmatmul.mubr.msk.f32.gmra.mxu1 %vm129_vm1, %v417_v20  ;;  %599 = vmatprep.mubr.f32.mxu0 %v7025_v0  ;;  %v7239_v24 = vpop.f32.mrf.mxu0 }
 0x2ed   :  { %6105 = vmatprep.mubr.msk.f32.mxu1 %vm618_vm5, %v7231_v23 }
 0x2ee   :  { %v7241_v25 = vpop.f32.mrf.mxu0 }
 0x2ef   :  { %5520 = vmatmul.mubr.msk.f32.gmra.mxu0 %vm129_vm1, %v417_v20 }
 0x2f0   :  { %v7243_v26 = vpop.f32.mrf.mxu0 }
 0x3ab   :  { %v7245_v27 = vpop.f32.mrf.mxu0 }
 0x3ac   :  { %v7247_v28 = vpop.f32.mrf.mxu1 }
 0x3ad   :  { %616 = vrot.lane.b32.xlu0 %v7247_v28, %s7027_s12  ;;  %v7251_v29 = vpop.f32.mrf.mxu0 }
 0x3ae   :  { %v7253_v30 = vpop.f32.mrf.mxu1 }
 0x3af   :  { %888 = vrot.lane.b32.xlu1 %v7253_v30, %s7028_s4  ;;  %v7257_v31 = vpop.f32.mrf.mxu0 }
 0x3b0   :  { %6111 = vmatprep.subr.msk.mxu0 %vm419_vm4, %v7257_v31 }
 0x3b1   :  { %614 = vrot.lane.b32.xlu0 %v7253_v30, %s7027_s12  ;;  %6112 = vmatpush3.msk.msra.mxu0 %vm419_vm4, %v7257_v31 }
 0x3b2   :  { %6113 = vmatprep.subr.mxu0 %v7245_v27 }
 0x3b3   :  { %884 = vrot.lane.b32.xlu1 %v7231_v23, %s7028_s4  ;;  %6114 = vmatpush3.msra.mxu0 %v7245_v27 }
 0x3b4   :  { %6115 = vmatprep.subr.mxu0 %v7241_v25 }
 0x3b5   :  { %890 = vrot.lane.b32.xlu0 %v7247_v28, %s7028_s4  ;;  %6116 = vmatpush3.msra.mxu0 %v7241_v25 }
 0x3b6   :  { %6117 = vmatprep.subr.mxu0 %v7237_v6 }
 0x3b7   :  { %878 = vrot.lane.b32.xlu1 %v7227_v22, %s7029_s13  ;;  %6118 = vmatpush3.msra.mxu0 %v7237_v6 }
 0x3b9   :  { %886 = vrot.lane.b32.xlu0 %v7227_v22, %s7028_s4 }
 0x3bb   :  { %882 = vrot.lane.b32.xlu1 %v7247_v28, %s7029_s13 }
 0x3bd   :  { %876 = vrot.lane.b32.xlu0 %v7231_v23, %s7029_s13 }
 0x3bf   :  { %1042 = vrot.lane.b32.xlu1 %v7241_v25, %s7027_s12 }
 0x3c1   :  { %880 = vrot.lane.b32.xlu0 %v7253_v30, %s7029_s13 }
 0x3c3   :  { %1040 = vrot.lane.b32.xlu1 %v7237_v6, %s7027_s12 }
 0x3c5   :  { %1044 = vrot.lane.b32.xlu0 %v7245_v27, %s7027_s12 }
 0x3c7   :  { %1046 = vrot.lane.b32.xlu1 %v7257_v31, %s7027_s12 }
 0x41f   :  { %v617_v34 = vpop.permute.xlu0 %616 }
 0x420   :  { %6097 = vmatprep.subr.msk.mxu1 %vm618_vm5, %v617_v34 }
 0x421   :  { %6098 = vmatpush3.xpose.msk.msra.mxu1 %vm618_vm5, %v617_v34  ;;  %v889_v35 = vpop.permute.xlu1 %888 }
 0x423   :  { %v615_v36 = vpop.permute.xlu0 %614 }
 0x424   :  { %6099 = vmatprep.subr.msk.mxu1 %vm618_vm5, %v615_v36 }
 0x425   :  { %v885_v37 = vpop.permute.xlu1 %884  ;;  %6100 = vmatpush3.xpose.msk.msra.mxu1 %vm618_vm5, %v615_v36 }
 0x426   :  { %6101 = vmatprep.subr.msk.mxu1 %vm618_vm5, %v613_v32 }
 0x427   :  { %v891_v38 = vpop.permute.xlu0 %890 }
 0x429   :  { %v879_v39 = vpop.permute.xlu1 %878  ;;  %6102 = vmatpush3.xpose.msk.msra.mxu1 %vm618_vm5, %v613_v32 }
 0x42a   :  { %6103 = vmatprep.subr.msk.mxu1 %vm618_vm5, %v611_v33 }
 0x42b   :  { %v887_v41 = vpop.permute.xlu0 %886 }
 0x42d   :  { %v883_v40 = vpop.permute.xlu1 %882  ;;  %6104 = vmatpush3.xpose.msk.msra.mxu1 %vm618_vm5, %v611_v33 }
 0x42e   :  { %6125 = vmatprep.subr.msk.mxu1 %vm618_vm5, %v891_v38 }
 0x42f   :  { %v877_v43 = vpop.permute.xlu0 %876 }
 0x430   :  { %6106 = vmatmul.mubr.msk.f32.vlgmr.msra.gmra.mxu1 %vm618_vm5, %v7227_v22 }
 0x431   :  { %6108 = vmatprep.mubr.msk.f32.mxu1 %vm618_vm5, %v7253_v30  ;;  %6126 = vmatpush3.xpose.msk.msra.mxu1 %vm618_vm5, %v891_v38  ;;  %v7307_v42 = vpop.permute.xlu1 %1042 }
 0x432   :  { %6127 = vmatprep.subr.msk.mxu1 %vm618_vm5, %v889_v35 }
 0x433   :  { %v881_v46 = vpop.permute.xlu0 %880 }
 0x434   :  { %6109 = vmatmul.mubr.msk.f32.gmra.mxu1 %vm618_vm5, %v7247_v28 }
 0x435   :  { %6128 = vmatpush3.xpose.msk.msra.mxu1 %vm618_vm5, %v889_v35  ;;  %6133 = vmatprep.mubr.msk.f32.mxu1 %vm618_vm5, %v877_v43  ;;  %v7314_v44 = vpop.permute.xlu1 %1040 }
 0x436   :  { %6129 = vmatprep.subr.msk.mxu1 %vm618_vm5, %v887_v41 }
 0x437   :  { %v7339_v63 = vpop.permute.xlu0 %1044 }
 0x439   :  { %6130 = vmatpush3.xpose.msk.msra.mxu1 %vm618_vm5, %v887_v41  ;;  %v7318_v45 = vpop.permute.xlu1 %1046 }
 0x43a   :  { %6131 = vmatprep.subr.msk.mxu1 %vm618_vm5, %v885_v37  ;;  %6139 = vmatprep.subr.msk.mxu0 %vm419_vm4, %v7318_v45 }
 0x43d   :  { %6132 = vmatpush3.xpose.msk.msra.mxu1 %vm618_vm5, %v885_v37 }
 0x440   :  { %6134 = vmatmul.mubr.msk.f32.vlgmr.msra.gmra.mxu1 %vm618_vm5, %v879_v39 }
 0x441   :  { %6136 = vmatprep.mubr.msk.f32.mxu1 %vm618_vm5, %v881_v46 }
 0x444   :  { %6137 = vmatmul.mubr.msk.f32.gmra.mxu1 %vm618_vm5, %v883_v40 }
 0x4f0   :  { %v6107_v47 = vpop.f32.mrf.mxu1 }
 0x4f1   :  { %v724_v48 = vsel %vm720_vm6, %v6107_v47, -inf }
 0x4f2   :  { %v701_v49 = vpop.f32.mrf.mxu1  ;;  %725 = vmax.xlane.f32.xlu1 %v724_v48 }
 0x4f3   :  { %v721_v50 = vsel %vm720_vm6, %v701_v49, -inf }
 0x4f4   :  { %v6110_v51 = vpop.f32.mrf.mxu1  ;;  %722 = vmax.xlane.f32.xlu0 %v721_v50 }
 0x4f5   :  { %v731_v52 = vsel %vm730_vm7, %v6110_v51, -inf }
 0x4f6   :  { %v711_v53 = vpop.f32.mrf.mxu1 }
 0x4f7   :  { %v727_v54 = vsel %vm720_vm6, %v711_v53, -inf }
 0x4f8   :  { %732 = vmax.xlane.f32.xlu0 %v731_v52 }
 0x4fc   :  { %728 = vmax.xlane.f32.xlu0 %v727_v54 }
 0x500   :  { %v6135_v55 = vpop.f32.mrf.mxu1 }
 0x501   :  { %v996_v56 = vsel %vm720_vm6, %v6135_v55, -inf }
 0x502   :  { %v974_v57 = vpop.f32.mrf.mxu1  ;;  %997 = vmax.xlane.f32.xlu0 %v996_v56 }
 0x503   :  { %v993_v58 = vsel %vm720_vm6, %v974_v57, -inf }
 0x504   :  { %v6138_v59 = vpop.f32.mrf.mxu1  ;;  %994 = vmax.xlane.f32.xlu1 %v993_v58 }
 0x505   :  { %v1002_v60 = vsel %vm730_vm7, %v6138_v59, -inf }
 0x506   :  { %v984_v61 = vpop.f32.mrf.mxu1  ;;  %1003 = vmax.xlane.f32.xlu0 %v1002_v60 }
 0x507   :  { %v999_v62 = vsel %vm720_vm6, %v984_v61, -inf }
 0x508   :  { %1000 = vmax.xlane.f32.xlu1 %v999_v62 }
 0x519   :  { %1166 = vrot.lane.b32.xlu1 %v7253_v30, %s7030_s14 }
 0x51c   :  { %1168 = vrot.lane.b32.xlu0 %v7247_v28, %s7030_s14 }
 0x57b   :  { %v726_v1 = vpop.xlane.xlu1 %725 }
 0x57c   :  { %v735_v2 = vsub.f32 %v6107_v47, %v726_v1 }
 0x57d   :  { %v723_v3 = vpop.xlane.xlu0 %722 }
 0x57e   :  { %v740_v4 = vmul.f32 1.442695, %v735_v2  ;;  %v734_v5 = vsub.f32 %v701_v49, %v723_v3 }
 0x580   :  { %6624 = vpow2.f32 %v740_v4  ;;  %v738_v7 = vmul.f32 1.442695, %v734_v5 }
 0x581   :  { %v733_v8 = vpop.xlane.xlu0 %732 }
 0x582   :  { %6626 = vpow2.f32 %v738_v7  ;;  %v737_v9 = vsub.f32 %v6110_v51, %v733_v8 }
 0x584   :  { %v744_v10 = vmul.f32 1.442695, %v737_v9 }
 0x585   :  { %v729_v11 = vpop.xlane.xlu0 %728 }
 0x586   :  { %6628 = vpow2.f32 %v744_v10  ;;  %v736_v12 = vsub.f32 %v711_v53, %v729_v11 }
 0x588   :  { %v742_v13 = vmul.f32 1.442695, %v736_v12 }
 0x58a   :  { %6630 = vpow2.f32 %v742_v13 }
 0x58b   :  { %v998_v14 = vpop.xlane.xlu0 %997 }
 0x58c   :  { %v1006_v15 = vsub.f32 %v6135_v55, %v998_v14 }
 0x58d   :  { %v7341_v16 = vpop.eup %6624  ;;  %v995_v17 = vpop.xlane.xlu1 %994 }
 0x58e   :  { %v1011_v18 = vmul.f32 1.442695, %v1006_v15  ;;  %v1005_v19 = vsub.f32 %v974_v57, %v995_v17  ;;  %v749_v20 = vsel %vm720_vm6, %v7341_v16, 0.0 }
 0x58f   :  { %v6627_v21 = vpop.eup %6626  ;;  %750 = vadd.xlane.f32.xlu0 %v749_v20  ;;  %v1004_v43 = vpop.xlane.xlu0 %1003 }
 0x590   :  { %6632 = vpow2.f32 %v1011_v18  ;;  %v1009_v32 = vmul.f32 1.442695, %v1005_v19  ;;  %v746_v33 = vsel %vm720_vm6, %v6627_v21, 0.0  ;;  %v1008_v47 = vsub.f32 %v6138_v59, %v1004_v43 }
 0x591   :  { %747 = vadd.xlane.f32.xlu1 %v746_v33  ;;  %v1001_v46 = vpop.xlane.xlu1 %1000 }
 0x592   :  { %6634 = vpow2.f32 %v1009_v32  ;;  %v1007_v48 = vsub.f32 %v984_v61, %v1001_v46  ;;  %v1015_v49 = vmul.f32 1.442695, %v1008_v47 }
 0x593   :  { %v7346_v34 = vpop.eup %6628  ;;  %v1169_v55 = vpop.permute.xlu0 %1168 }
 0x594   :  { %v755_v35 = vsel %vm730_vm7, %v7346_v34, 0.0  ;;  %v1013_v50 = vmul.f32 1.442695, %v1007_v48  ;;  %6636 = vpow2.f32 %v1015_v49 }
 0x595   :  { %756 = vadd.xlane.f32.xlu0 %v755_v35  ;;  %v1167_v56 = vpop.permute.xlu1 %1166 }
 0x596   :  { %6638 = vpow2.f32 %v1013_v50 }
 0x597   :  { %v6631_v36 = vpop.eup %6630 }
 0x598   :  { %v752_v37 = vsel %vm720_vm6, %v6631_v36, 0.0 }
 0x599   :  { %753 = vadd.xlane.f32.xlu1 %v752_v37 }
 0x59d   :  { %v7351_v38 = vpop.eup %6632 }
 0x59e   :  { %v1020_v39 = vsel %vm720_vm6, %v7351_v38, 0.0 }
 0x59f   :  { %v7355_v40 = vpop.eup %6634  ;;  %1021 = vadd.xlane.f32.xlu0 %v1020_v39 }
 0x5a0   :  { %v1017_v41 = vsel %vm720_vm6, %v7355_v40, 0.0 }
 0x5a1   :  { %1018 = vadd.xlane.f32.xlu1 %v1017_v41  ;;  %v7363_v51 = vpop.eup %6636 }
 0x5a2   :  { %v1026_v53 = vsel %vm730_vm7, %v7363_v51, 0.0 }
 0x5a3   :  { %v7365_v52 = vpop.eup %6638 }
 0x5a4   :  { %v1023_v54 = vsel %vm720_vm6, %v7365_v52, 0.0 }
 0x5b2   :  { %1162 = vrot.lane.b32.xlu1 %v7231_v23, %s7030_s14 }
 0x5b5   :  { %1164 = vrot.lane.b32.xlu0 %v7227_v22, %s7030_s14 }
 0x5d4   :  { %1027 = vadd.xlane.f32.xlu0 %v1026_v53 }
 0x5d6   :  { %1024 = vadd.xlane.f32.xlu1 %v1023_v54 }
 0x5e7   :  { %1156 = vrot.lane.b32.xlu1 %v7227_v22, %s7031_s15 }
 0x5ea   :  { %1154 = vrot.lane.b32.xlu0 %v7231_v23, %s7031_s15 }
 0x5eb   :  { %1160 = vrot.lane.b32.xlu1 %v7247_v28, %s7031_s15 }
 0x5ee   :  { %1158 = vrot.lane.b32.xlu0 %v7253_v30, %s7031_s15 }
 0x5ef   :  { %1321 = vrot.lane.b32.xlu1 %v7257_v31, %s7032_s16 }
 0x5f2   :  { %1319 = vrot.lane.b32.xlu0 %v7245_v27, %s7032_s16 }
 0x5f3   :  { %1317 = vrot.lane.b32.xlu1 %v7241_v25, %s7032_s16 }
 0x5f7   :  { %1315 = vrot.lane.b32.xlu1 %v7237_v6, %s7032_s16 }
 0x618   :  { %v751_v57 = vpop.xlane.xlu0 %750 }
 0x619   :  { %6640 = vrcp.f32 %v751_v57 }
 0x61a   :  { %v748_v58 = vpop.xlane.xlu1 %747 }
 0x61b   :  { %6642 = vrcp.f32 %v748_v58 }
 0x61e   :  { %v757_v59 = vpop.xlane.xlu0 %756 }
 0x61f   :  { %6644 = vrcp.f32 %v757_v59 }
 0x622   :  { %v754_v60 = vpop.xlane.xlu1 %753 }
 0x623   :  { %6646 = vrcp.f32 %v754_v60 }
 0x626   :  { %v6641_v61 = vpop.eup %6640 }
 0x627   :  { %v763_v3 = vmul.f32 %v6641_v61, %v7341_v16 }
 0x628   :  { %v6643_v62 = vpop.eup %6642  ;;  %v1022_v1 = vpop.xlane.xlu0 %1021 }
 0x629   :  { %v762_v2 = vmul.f32 %v6643_v62, %v6627_v21  ;;  %6648 = vrcp.f32 %v1022_v1 }
 0x62a   :  { %v1019_v4 = vpop.xlane.xlu1 %1018 }
 0x62b   :  { %6650 = vrcp.f32 %v1019_v4  ;;  %6119 = vmatprep.mubr.msk.f32.mxu0 %vm720_vm6, %v762_v2 }
 0x62c   :  { %6120 = vmatmul.mubr.msk.f32.vlgmr.msra.gmra.mxu0 %vm720_vm6, %v763_v3  ;;  %v6645_v5 = vpop.eup %6644 }
 0x62d   :  { %6140 = vmatpush3.msk.msra.mxu0 %vm419_vm4, %v7318_v45  ;;  %v765_v9 = vmul.f32 %v6645_v5, %v7346_v34 }
 0x62e   :  { %6141 = vmatprep.subr.mxu0 %v7339_v63 }
 0x62f   :  { %6142 = vmatpush3.msra.mxu0 %v7339_v63 }
 0x630   :  { %v6647_v7 = vpop.eup %6646  ;;  %6143 = vmatprep.subr.mxu0 %v7307_v42 }
 0x631   :  { %6144 = vmatpush3.msra.mxu0 %v7307_v42  ;;  %v764_v8 = vmul.f32 %v6647_v7, %v6631_v36  ;;  %v1165_v42 = vpop.permute.xlu0 %1164  ;;  %v7423_v36 = vpop.f32.mrf.mxu0 }
 0x632   :  { %6145 = vmatprep.subr.mxu0 %v7314_v44 }
 0x633   :  { %6146 = vmatpush3.msra.mxu0 %v7314_v44  ;;  %6122 = vmatprep.mubr.msk.f32.mxu0 %vm720_vm6, %v764_v8  ;;  %v1163_v44 = vpop.permute.xlu1 %1162 }
 0x634   :  { %6153 = vmatprep.subr.msk.mxu0 %vm618_vm5, %v1169_v55  ;;  %6123 = vmatmul.mubr.msk.f32.gmra.mxu0 %vm720_vm6, %v765_v9 }
 0x636   :  { %v6649_v45 = vpop.eup %6648 }
 0x637   :  { %v1034_v11 = vmul.f32 %v6649_v45, %v7351_v38 }
 0x638   :  { %v6651_v63 = vpop.eup %6650 }
 0x639   :  { %v1033_v10 = vmul.f32 %v6651_v63, %v7355_v40  ;;  %v5534_v40 = vld [vmem:[%s8462_s10] ss:$0 sm:$0xff] }
 0x63b   :  { %6147 = vmatprep.mubr.msk.f32.mxu0 %vm720_vm6, %v1033_v10 }
 0x63c   :  { %6148 = vmatmul.mubr.msk.f32.vlgmr.msra.gmra.mxu0 %vm720_vm6, %v1034_v11 }
 0x63d   :  { %6154 = vmatpush3.xpose.msk.msra.mxu0 %vm618_vm5, %v1169_v55 }
 0x63e   :  { %6155 = vmatprep.subr.msk.mxu0 %vm618_vm5, %v1167_v56 }
 0x641   :  { %6156 = vmatpush3.xpose.msk.msra.mxu0 %vm618_vm5, %v1167_v56 }
 0x642   :  { %6157 = vmatprep.subr.msk.mxu0 %vm618_vm5, %v1165_v42 }
 0x645   :  { %6158 = vmatpush3.xpose.msk.msra.mxu0 %vm618_vm5, %v1165_v42 }
 0x646   :  { %6159 = vmatprep.subr.msk.mxu0 %vm618_vm5, %v1163_v44 }
 0x649   :  { %6160 = vmatpush3.xpose.msk.msra.mxu0 %vm618_vm5, %v1163_v44 }
 0x65d   :  { %v1028_v12 = vpop.xlane.xlu0 %1027 }
 0x65e   :  { %6652 = vrcp.f32 %v1028_v12 }
 0x65f   :  { %v1025_v13 = vpop.xlane.xlu1 %1024 }
 0x660   :  { %6654 = vrcp.f32 %v1025_v13 }
 0x661   :  { %v1155_v14 = vpop.permute.xlu0 %1154 }
 0x663   :  { %v1157_v15 = vpop.permute.xlu1 %1156 }
 0x665   :  { %v1159_v16 = vpop.permute.xlu0 %1158 }
 0x667   :  { %v1161_v17 = vpop.permute.xlu1 %1160 }
 0x669   :  { %v1320_v21 = vpop.permute.xlu0 %1319 }
 0x66b   :  { %v1322_v18 = vpop.permute.xlu1 %1321  ;;  %v6653_v19 = vpop.eup %6652 }
 0x66c   :  { %6167 = vmatprep.subr.msk.mxu1 %vm419_vm4, %v1322_v18  ;;  %v1036_v34 = vmul.f32 %v6653_v19, %v7363_v51 }
 0x66d   :  { %v6655_v20 = vpop.eup %6654  ;;  %6168 = vmatpush3.msk.msra.mxu1 %vm419_vm4, %v1322_v18 }
 0x66e   :  { %6169 = vmatprep.subr.mxu1 %v1320_v21  ;;  %v1035_v32 = vmul.f32 %v6655_v20, %v7365_v52 }
 0x66f   :  { %6170 = vmatpush3.msra.mxu1 %v1320_v21  ;;  %v1318_v33 = vpop.permute.xlu1 %1317 }
 0x670   :  { %6150 = vmatprep.mubr.msk.f32.mxu0 %vm720_vm6, %v1035_v32  ;;  %6171 = vmatprep.subr.mxu1 %v1318_v33 }
 0x671   :  { %6151 = vmatmul.mubr.msk.f32.gmra.mxu0 %vm720_vm6, %v1036_v34  ;;  %6172 = vmatpush3.msra.mxu1 %v1318_v33 }
 0x672   :  { %6161 = vmatprep.mubr.msk.f32.mxu0 %vm618_vm5, %v1155_v14 }
 0x673   :  { %v1316_v35 = vpop.permute.xlu1 %1315 }
 0x674   :  { %6173 = vmatprep.subr.mxu1 %v1316_v35 }
 0x675   :  { %6162 = vmatmul.mubr.msk.f32.vlgmr.msra.gmra.mxu0 %vm618_vm5, %v1157_v15  ;;  %6174 = vmatpush3.msra.mxu1 %v1316_v35 }
 0x676   :  { %6164 = vmatprep.mubr.msk.f32.mxu0 %vm618_vm5, %v1159_v16 }
 0x679   :  { %6165 = vmatmul.mubr.msk.f32.gmra.mxu0 %vm618_vm5, %v1161_v17 }
 0x6ec   :  { %v6121_v37 = vpop.f32.mrf.mxu0 }
 0x6ed   :  { %v873_v43 = vadd.f32 %v6121_v37, %v5534_v40 }
 0x6ee   :  { %v847_v38 = vpop.f32.mrf.mxu0 }
 0x6ef   :  { %v872_v47 = vadd.f32 %v5534_v40, %v847_v38 }
 0x6f4   :  { %v6124_v39 = vpop.f32.mrf.mxu0 }
 0x6f5   :  { %v875_v51 = vadd.f32 %v6124_v39, %v5534_v40 }
 0x6f6   :  { %v857_v41 = vpop.f32.mrf.mxu0 }
 0x6f7   :  { %v874_v53 = vadd.f32 %v5534_v40, %v857_v41 }
 0x6fc   :  { %v6149_v46 = vpop.f32.mrf.mxu0 }
 0x6fd   :  { %v7428_v48 = vadd.f32 %v6149_v46, %v873_v43 }
 0x6fe   :  { %v1131_v49 = vpop.f32.mrf.mxu0 }
 0x6ff   :  { %v7430_v50 = vadd.f32 %v1131_v49, %v872_v47 }
 0x731   :  { %v6152_v52 = vpop.f32.mrf.mxu0 }
 0x732   :  { %v7432_v54 = vadd.f32 %v6152_v52, %v875_v51 }
 0x733   :  { %v1141_v55 = vpop.f32.mrf.mxu0 }
 0x734   :  { %v7434_v56 = vadd.f32 %v1141_v55, %v874_v53 }
 0x735   :  { %v6163_v57 = vpop.f32.mrf.mxu0 }
 0x736   :  { %v1274_v58 = vsel %vm720_vm6, %v6163_v57, -inf }
 0x737   :  { %1275 = vmax.xlane.f32.xlu1 %v1274_v58  ;;  %v1252_v59 = vpop.f32.mrf.mxu0 }
 0x738   :  { %v1271_v60 = vsel %vm720_vm6, %v1252_v59, -inf }
 0x739   :  { %1272 = vmax.xlane.f32.xlu0 %v1271_v60  ;;  %v6166_v61 = vpop.f32.mrf.mxu0 }
 0x73a   :  { %v1280_v62 = vsel %vm730_vm7, %v6166_v61, -inf }
 0x73b   :  { %v1262_v1 = vpop.f32.mrf.mxu0 }
 0x73c   :  { %v1277_v2 = vsel %vm720_vm6, %v1262_v1, -inf }
 0x73d   :  { %1281 = vmax.xlane.f32.xlu0 %v1280_v62 }
 0x741   :  { %1278 = vmax.xlane.f32.xlu0 %v1277_v2 }
 0x748   :  { %1441 = vrot.lane.b32.xlu1 %v7253_v30, %s7033_s7 }
 0x757   :  { %1443 = vrot.lane.b32.xlu0 %v7247_v28, %s7033_s7 }
 0x7c0   :  { %v1276_v3 = vpop.xlane.xlu1 %1275 }
 0x7c1   :  { %v1284_v4 = vsub.f32 %v6163_v57, %v1276_v3 }
 0x7c2   :  { %v1273_v5 = vpop.xlane.xlu0 %1272 }
 0x7c3   :  { %v1289_v7 = vmul.f32 1.442695, %v1284_v4  ;;  %v1283_v8 = vsub.f32 %v1252_v59, %v1273_v5 }
 0x7c4   :  { %v1442_v21 = vpop.permute.xlu1 %1441 }
 0x7c5   :  { %6656 = vpow2.f32 %v1289_v7  ;;  %v1287_v9 = vmul.f32 1.442695, %v1283_v8 }
 0x7c6   :  { %v1282_v45 = vpop.xlane.xlu0 %1281 }
 0x7c7   :  { %6658 = vpow2.f32 %v1287_v9  ;;  %v1286_v13 = vsub.f32 %v6166_v61, %v1282_v45 }
 0x7c9   :  { %v1293_v15 = vmul.f32 1.442695, %v1286_v13 }
 0x7ca   :  { %v1279_v63 = vpop.xlane.xlu0 %1278 }
 0x7cb   :  { %v1285_v14 = vsub.f32 %v1262_v1, %v1279_v63  ;;  %6660 = vpow2.f32 %v1293_v15 }
 0x7cd   :  { %v1291_v16 = vmul.f32 1.442695, %v1285_v14 }
 0x7ce   :  { %v1444_v10 = vpop.permute.xlu0 %1443 }
 0x7cf   :  { %6181 = vmatprep.subr.msk.mxu1 %vm618_vm5, %v1444_v10  ;;  %6662 = vpow2.f32 %v1291_v16 }
 0x7d2   :  { %v6657_v11 = vpop.eup %6656 }
 0x7d3   :  { %v1298_v42 = vsel %vm720_vm6, %v6657_v11, 0.0 }
 0x7d4   :  { %v6659_v44 = vpop.eup %6658  ;;  %1299 = vadd.xlane.f32.xlu0 %v1298_v42 }
 0x7d5   :  { %v1295_v12 = vsel %vm720_vm6, %v6659_v44, 0.0 }
 0x7d6   :  { %1296 = vadd.xlane.f32.xlu1 %v1295_v12 }
 0x7d8   :  { %v6661_v17 = vpop.eup %6660 }
 0x7d9   :  { %v1304_v19 = vsel %vm730_vm7, %v6661_v17, 0.0 }
 0x7dc   :  { %v6663_v18 = vpop.eup %6662 }
 0x7dd   :  { %v1301_v20 = vsel %vm720_vm6, %v6663_v18, 0.0 }
 0x7e7   :  { %1437 = vrot.lane.b32.xlu1 %v7231_v23, %s7033_s7 }
 0x7ea   :  { %1439 = vrot.lane.b32.xlu0 %v7227_v22, %s7033_s7 }
 0x809   :  { %1305 = vadd.xlane.f32.xlu0 %v1304_v19 }
 0x80b   :  { %1302 = vadd.xlane.f32.xlu1 %v1301_v20 }
 0x81c   :  { %1431 = vrot.lane.b32.xlu1 %v7227_v22, %s7034_s19 }
 0x81f   :  { %1429 = vrot.lane.b32.xlu0 %v7231_v23, %s7034_s19 }
 0x820   :  { %1435 = vrot.lane.b32.xlu1 %v7247_v28, %s7034_s19 }
 0x823   :  { %1433 = vrot.lane.b32.xlu0 %v7253_v30, %s7034_s19 }
 0x824   :  { %1596 = vrot.lane.b32.xlu1 %v7257_v31, %s7035_s22 }
 0x827   :  { %1594 = vrot.lane.b32.xlu0 %v7245_v27, %s7035_s22 }
 0x828   :  { %1592 = vrot.lane.b32.xlu1 %v7241_v25, %s7035_s22 }
 0x82c   :  { %1590 = vrot.lane.b32.xlu1 %v7237_v6, %s7035_s22 }
 0x85d   :  { %v1300_v32 = vpop.xlane.xlu0 %1299 }
 0x85e   :  { %6664 = vrcp.f32 %v1300_v32 }
 0x85f   :  { %v1297_v33 = vpop.xlane.xlu1 %1296 }
 0x860   :  { %6666 = vrcp.f32 %v1297_v33 }
 0x861   :  { %v1440_v25 = vpop.permute.xlu0 %1439 }
 0x863   :  { %v1438_v6 = vpop.permute.xlu1 %1437 }
 0x86b   :  { %v6665_v34 = vpop.eup %6664 }
 0x86c   :  { %v1312_v38 = vmul.f32 %v6665_v34, %v6657_v11 }
 0x86d   :  { %v6667_v35 = vpop.eup %6666 }
 0x86e   :  { %v1311_v37 = vmul.f32 %v6667_v35, %v6659_v44 }
 0x870   :  { %6175 = vmatprep.mubr.msk.f32.mxu1 %vm720_vm6, %v1311_v37 }
 0x871   :  { %6176 = vmatmul.mubr.msk.f32.vlgmr.msra.gmra.mxu1 %vm720_vm6, %v1312_v38 }
 0x872   :  { %6182 = vmatpush3.xpose.msk.msra.mxu1 %vm618_vm5, %v1444_v10 }
 0x873   :  { %6183 = vmatprep.subr.msk.mxu1 %vm618_vm5, %v1442_v21 }
 0x876   :  { %6184 = vmatpush3.xpose.msk.msra.mxu1 %vm618_vm5, %v1442_v21 }
 0x877   :  { %6185 = vmatprep.subr.msk.mxu1 %vm618_vm5, %v1440_v25 }
 0x87a   :  { %6186 = vmatpush3.xpose.msk.msra.mxu1 %vm618_vm5, %v1440_v25 }
 0x87b   :  { %6187 = vmatprep.subr.msk.mxu1 %vm618_vm5, %v1438_v6 }
 0x87e   :  { %6188 = vmatpush3.xpose.msk.msra.mxu1 %vm618_vm5, %v1438_v6 }
 0x87f   :  { %6223 = vmatprep.subr.msk.mxu1 %vm419_vm4, %v7423_v36 }
 0x892   :  { %v1306_v27 = vpop.xlane.xlu0 %1305 }
 0x893   :  { %6668 = vrcp.f32 %v1306_v27 }
 0x894   :  { %v1303_v31 = vpop.xlane.xlu1 %1302 }
 0x895   :  { %6670 = vrcp.f32 %v1303_v31 }
 0x896   :  { %v1430_v39 = vpop.permute.xlu0 %1429 }
 0x898   :  { %v1432_v40 = vpop.permute.xlu1 %1431 }
 0x89a   :  { %v1434_v41 = vpop.permute.xlu0 %1433 }
 0x89c   :  { %v1436_v43 = vpop.permute.xlu1 %1435 }
 0x89e   :  { %v1595_v51 = vpop.permute.xlu0 %1594 }
 0x8a0   :  { %v1597_v46 = vpop.permute.xlu1 %1596  ;;  %v6669_v47 = vpop.eup %6668 }
 0x8a1   :  { %6195 = vmatprep.subr.msk.mxu0 %vm419_vm4, %v1597_v46  ;;  %v1314_v55 = vmul.f32 %v6669_v47, %v6661_v17 }
 0x8a2   :  { %v6671_v49 = vpop.eup %6670  ;;  %6196 = vmatpush3.msk.msra.mxu0 %vm419_vm4, %v1597_v46 }
 0x8a3   :  { %6197 = vmatprep.subr.mxu0 %v1595_v51  ;;  %v1313_v52 = vmul.f32 %v6671_v49, %v6663_v18 }
 0x8a4   :  { %v1593_v53 = vpop.permute.xlu1 %1592  ;;  %6198 = vmatpush3.msra.mxu0 %v1595_v51 }
 0x8a5   :  { %6178 = vmatprep.mubr.msk.f32.mxu1 %vm720_vm6, %v1313_v52  ;;  %6199 = vmatprep.subr.mxu0 %v1593_v53 }
 0x8a6   :  { %6179 = vmatmul.mubr.msk.f32.gmra.mxu1 %vm720_vm6, %v1314_v55  ;;  %6200 = vmatpush3.msra.mxu0 %v1593_v53 }
 0x8a7   :  { %6189 = vmatprep.mubr.msk.f32.mxu1 %vm618_vm5, %v1430_v39 }
 0x8a8   :  { %v1591_v57 = vpop.permute.xlu1 %1590 }
 0x8a9   :  { %6201 = vmatprep.subr.mxu0 %v1591_v57 }
 0x8aa   :  { %6190 = vmatmul.mubr.msk.f32.vlgmr.msra.gmra.mxu1 %vm618_vm5, %v1432_v40  ;;  %6202 = vmatpush3.msra.mxu0 %v1591_v57 }
 0x8ab   :  { %6224 = vmatpush3.msk.msra.mxu1 %vm419_vm4, %v7423_v36  ;;  %6192 = vmatprep.mubr.msk.f32.mxu1 %vm618_vm5, %v1434_v41 }
 0x8ac   :  { %6225 = vmatprep.subr.mxu1 %v7251_v29 }
 0x8ad   :  { %6226 = vmatpush3.msra.mxu1 %v7251_v29 }
 0x8ae   :  { %6227 = vmatprep.subr.mxu1 %v7243_v26  ;;  %6193 = vmatmul.mubr.msk.f32.gmra.mxu1 %vm618_vm5, %v1436_v43 }
 0x8af   :  { %6228 = vmatpush3.msra.mxu1 %v7243_v26 }
 0x8b0   :  { %6229 = vmatprep.subr.mxu1 %v7239_v24 }
 0x8b1   :  { %6230 = vmatpush3.msra.mxu1 %v7239_v24 }
 0x931   :  { %v6177_v58 = vpop.f32.mrf.mxu1 }
 0x932   :  { %v7497_v59 = vadd.f32 %v6177_v58, %v7428_v48 }
 0x933   :  { %v1406_v60 = vpop.f32.mrf.mxu1 }
 0x934   :  { %v7500_v61 = vadd.f32 %v1406_v60, %v7430_v50 }
 0x966   :  { %v6180_v62 = vpop.f32.mrf.mxu1 }
 0x967   :  { %v7503_v1 = vadd.f32 %v6180_v62, %v7432_v54 }
 0x968   :  { %v1416_v2 = vpop.f32.mrf.mxu1 }
 0x969   :  { %v7506_v3 = vadd.f32 %v1416_v2, %v7434_v56 }
 0x96a   :  { %v6191_v4 = vpop.f32.mrf.mxu1 }
 0x96b   :  { %v1549_v5 = vsel %vm720_vm6, %v6191_v4, -inf }
 0x96c   :  { %1550 = vmax.xlane.f32.xlu1 %v1549_v5  ;;  %v1527_v7 = vpop.f32.mrf.mxu1 }
 0x96d   :  { %v1546_v48 = vsel %vm720_vm6, %v1527_v7, -inf }
 0x96e   :  { %1547 = vmax.xlane.f32.xlu0 %v1546_v48  ;;  %v6194_v8 = vpop.f32.mrf.mxu1 }
 0x96f   :  { %v1555_v50 = vsel %vm730_vm7, %v6194_v8, -inf }
 0x970   :  { %v1537_v9 = vpop.f32.mrf.mxu1 }
 0x971   :  { %v1552_v54 = vsel %vm720_vm6, %v1537_v9, -inf }
 0x972   :  { %1556 = vmax.xlane.f32.xlu0 %v1555_v50 }
 0x976   :  { %1553 = vmax.xlane.f32.xlu0 %v1552_v54 }
 0x97d   :  { %1716 = vrot.lane.b32.xlu1 %v7253_v30, %s7036_s23 }
 0x98c   :  { %1718 = vrot.lane.b32.xlu0 %v7247_v28, %s7036_s23 }
 0x9f5   :  { %v1551_v56 = vpop.xlane.xlu1 %1550 }
 0x9f6   :  { %v1559_v45 = vsub.f32 %v6191_v4, %v1551_v56 }
 0x9f7   :  { %v1548_v63 = vpop.xlane.xlu0 %1547 }
 0x9f8   :  { %v1564_v10 = vmul.f32 1.442695, %v1559_v45  ;;  %v1558_v11 = vsub.f32 %v1527_v7, %v1548_v63 }
 0x9f9   :  { %v1717_v37 = vpop.permute.xlu1 %1716 }
 0x9fa   :  { %6672 = vpow2.f32 %v1564_v10  ;;  %v1562_v42 = vmul.f32 1.442695, %v1558_v11 }
 0x9fb   :  { %v1557_v44 = vpop.xlane.xlu0 %1556 }
 0x9fc   :  { %6674 = vpow2.f32 %v1562_v42  ;;  %v1561_v18 = vsub.f32 %v6194_v8, %v1557_v44 }
 0x9fe   :  { %v1568_v20 = vmul.f32 1.442695, %v1561_v18 }
 0x9ff   :  { %v1554_v12 = vpop.xlane.xlu0 %1553 }
 0xa00   :  { %v1560_v19 = vsub.f32 %v1537_v9, %v1554_v12  ;;  %6676 = vpow2.f32 %v1568_v20 }
 0xa02   :  { %v1566_v21 = vmul.f32 1.442695, %v1560_v19 }
 0xa03   :  { %v1719_v13 = vpop.permute.xlu0 %1718 }
 0xa04   :  { %6209 = vmatprep.subr.msk.mxu0 %vm618_vm5, %v1719_v13  ;;  %6678 = vpow2.f32 %v1566_v21 }
 0xa07   :  { %v6673_v14 = vpop.eup %6672 }
 0xa08   :  { %v1573_v15 = vsel %vm720_vm6, %v6673_v14, 0.0 }
 0xa09   :  { %v6675_v16 = vpop.eup %6674  ;;  %1574 = vadd.xlane.f32.xlu0 %v1573_v15 }
 0xa0a   :  { %v1570_v17 = vsel %vm720_vm6, %v6675_v16, 0.0 }
 0xa0b   :  { %1571 = vadd.xlane.f32.xlu1 %v1570_v17 }
 0xa0d   :  { %v6677_v32 = vpop.eup %6676 }
 0xa0e   :  { %v1579_v34 = vsel %vm730_vm7, %v6677_v32, 0.0 }
 0xa11   :  { %v6679_v33 = vpop.eup %6678 }
 0xa12   :  { %v1576_v35 = vsel %vm720_vm6, %v6679_v33, 0.0 }
 0xa1c   :  { %1712 = vrot.lane.b32.xlu1 %v7231_v23, %s7036_s23 }
 0xa1f   :  { %1714 = vrot.lane.b32.xlu0 %v7227_v22, %s7036_s23 }
 0xa3e   :  { %1580 = vadd.xlane.f32.xlu0 %v1579_v34 }
 0xa40   :  { %1577 = vadd.xlane.f32.xlu1 %v1576_v35 }
 0xa51   :  { %1706 = vrot.lane.b32.xlu1 %v7227_v22, %s7037_s1 }
 0xa54   :  { %1704 = vrot.lane.b32.xlu0 %v7231_v23, %s7037_s1 }
 0xa55   :  { %1710 = vrot.lane.b32.xlu1 %v7247_v28, %s7037_s1 }
 0xa58   :  { %1708 = vrot.lane.b32.xlu0 %v7253_v30, %s7037_s1 }
 0xa92   :  { %v1575_v38 = vpop.xlane.xlu0 %1574 }
 0xa93   :  { %6680 = vrcp.f32 %v1575_v38 }
 0xa94   :  { %v1572_v25 = vpop.xlane.xlu1 %1571 }
 0xa95   :  { %6682 = vrcp.f32 %v1572_v25 }
 0xa96   :  { %v1715_v40 = vpop.permute.xlu0 %1714 }
 0xa98   :  { %v1713_v41 = vpop.permute.xlu1 %1712 }
 0xaa0   :  { %v6681_v6 = vpop.eup %6680 }
 0xaa1   :  { %v1587_v39 = vmul.f32 %v6681_v6, %v6673_v14 }
 0xaa2   :  { %v6683_v27 = vpop.eup %6682 }
 0xaa3   :  { %v1586_v31 = vmul.f32 %v6683_v27, %v6675_v16 }
 0xaa5   :  { %6203 = vmatprep.mubr.msk.f32.mxu0 %vm720_vm6, %v1586_v31 }
 0xaa6   :  { %6204 = vmatmul.mubr.msk.f32.vlgmr.msra.gmra.mxu0 %vm720_vm6, %v1587_v39 }
 0xaa7   :  { %6210 = vmatpush3.xpose.msk.msra.mxu0 %vm618_vm5, %v1719_v13 }
 0xaa8   :  { %6211 = vmatprep.subr.msk.mxu0 %vm618_vm5, %v1717_v37 }
 0xaab   :  { %6212 = vmatpush3.xpose.msk.msra.mxu0 %vm618_vm5, %v1717_v37 }
 0xaac   :  { %6213 = vmatprep.subr.msk.mxu0 %vm618_vm5, %v1715_v40 }
 0xaaf   :  { %6214 = vmatpush3.xpose.msk.msra.mxu0 %vm618_vm5, %v1715_v40 }
 0xab0   :  { %6215 = vmatprep.subr.msk.mxu0 %vm618_vm5, %v1713_v41 }
 0xab3   :  { %6216 = vmatpush3.xpose.msk.msra.mxu0 %vm618_vm5, %v1713_v41 }
 0xac7   :  { %v1581_v43 = vpop.xlane.xlu0 %1580 }
 0xac8   :  { %6684 = vrcp.f32 %v1581_v43 }
 0xac9   :  { %v1578_v46 = vpop.xlane.xlu1 %1577 }
 0xaca   :  { %6686 = vrcp.f32 %v1578_v46 }
 0xacb   :  { %v1705_v52 = vpop.permute.xlu0 %1704 }
 0xacd   :  { %v1707_v55 = vpop.permute.xlu1 %1706 }
 0xacf   :  { %v1709_v57 = vpop.permute.xlu0 %1708 }
 0xad1   :  { %v1711_v58 = vpop.permute.xlu1 %1710 }
 0xad5   :  { %v6685_v47 = vpop.eup %6684 }
 0xad6   :  { %v1589_v53 = vmul.f32 %v6685_v47, %v6677_v32 }
 0xad7   :  { %v6687_v49 = vpop.eup %6686 }
 0xad8   :  { %v1588_v51 = vmul.f32 %v6687_v49, %v6679_v33 }
 0xada   :  { %6206 = vmatprep.mubr.msk.f32.mxu0 %vm720_vm6, %v1588_v51 }
 0xadb   :  { %6207 = vmatmul.mubr.msk.f32.gmra.mxu0 %vm720_vm6, %v1589_v53 }
 0xadc   :  { %6217 = vmatprep.mubr.msk.f32.mxu0 %vm618_vm5, %v1705_v52 }
 0xadf   :  { %6218 = vmatmul.mubr.msk.f32.vlgmr.msra.gmra.mxu0 %vm618_vm5, %v1707_v55 }
 0xae0   :  { %6220 = vmatprep.mubr.msk.f32.mxu0 %vm618_vm5, %v1709_v57 }
 0xae3   :  { %6221 = vmatmul.mubr.msk.f32.gmra.mxu0 %vm618_vm5, %v1711_v58 }
 0xb66   :  { %v6205_v60 = vpop.f32.mrf.mxu0 }
 0xb67   :  { %v7549_v62 = vadd.f32 %v6205_v60, %v7497_v59 }
 0xb68   :  { %v1681_v2 = vpop.f32.mrf.mxu0 }
 0xb69   :  { %v7552_v4 = vadd.f32 %v1681_v2, %v7500_v61 }
 0xb9b   :  { %v6208_v5 = vpop.f32.mrf.mxu0 }
 0xb9c   :  { %v7555_v7 = vadd.f32 %v6208_v5, %v7503_v1 }
 0xb9d   :  { %v1691_v48 = vpop.f32.mrf.mxu0 }
 0xb9e   :  { %v7558_v8 = vadd.f32 %v1691_v48, %v7506_v3 }
 0xb9f   :  { %v6219_v50 = vpop.f32.mrf.mxu0 }
 0xba0   :  { %v1824_v9 = vsel %vm720_vm6, %v6219_v50, -inf }
 0xba1   :  { %1825 = vmax.xlane.f32.xlu1 %v1824_v9  ;;  %v1802_v54 = vpop.f32.mrf.mxu0 }
 0xba2   :  { %v1821_v59 = vsel %vm720_vm6, %v1802_v54, -inf }
 0xba3   :  { %1822 = vmax.xlane.f32.xlu0 %v1821_v59  ;;  %v6222_v56 = vpop.f32.mrf.mxu0 }
 0xba4   :  { %v1830_v1 = vsel %vm730_vm7, %v6222_v56, -inf }
 0xba5   :  { %v1812_v45 = vpop.f32.mrf.mxu0 }
 0xba6   :  { %v1827_v61 = vsel %vm720_vm6, %v1812_v45, -inf }
 0xba7   :  { %1828 = vmax.xlane.f32.xlu0 %v1827_v61 }
 0xbab   :  { %1831 = vmax.xlane.f32.xlu0 %v1830_v1 }
 0xbb2   :  { %1983 = vrot.lane.b32.xlu1 %v7247_v28, %s7038_s24 }
 0xbb6   :  { %1979 = vrot.lane.b32.xlu1 %v7227_v22, %s7038_s24 }
 0xc2a   :  { %v1826_v3 = vpop.xlane.xlu1 %1825 }
 0xc2b   :  { %v1834_v63 = vsub.f32 %v6219_v50, %v1826_v3 }
 0xc2c   :  { %v1823_v10 = vpop.xlane.xlu0 %1822 }
 0xc2d   :  { %v1839_v11 = vmul.f32 1.442695, %v1834_v63  ;;  %v1833_v42 = vsub.f32 %v1802_v54, %v1823_v10 }
 0xc2e   :  { %v1984_v44 = vpop.permute.xlu1 %1983 }
 0xc2f   :  { %6688 = vpow2.f32 %v1839_v11  ;;  %v1837_v12 = vmul.f32 1.442695, %v1833_v42  ;;  %6237 = vmatprep.subr.msk.mxu1 %vm618_vm5, %v1984_v44 }
 0xc30   :  { %v1829_v17 = vpop.xlane.xlu0 %1828 }
 0xc31   :  { %6690 = vpow2.f32 %v1837_v12  ;;  %v1835_v20 = vsub.f32 %v1812_v45, %v1829_v17 }
 0xc32   :  { %v1980_v38 = vpop.permute.xlu1 %1979 }
 0xc33   :  { %v1841_v32 = vmul.f32 1.442695, %v1835_v20 }
 0xc34   :  { %v1832_v18 = vpop.xlane.xlu0 %1831 }
 0xc35   :  { %v1836_v19 = vsub.f32 %v6222_v56, %v1832_v18 }
 0xc37   :  { %v1843_v21 = vmul.f32 1.442695, %v1836_v19 }
 0xc39   :  { %6692 = vpow2.f32 %v1843_v21 }
 0xc3a   :  { %6694 = vpow2.f32 %v1841_v32 }
 0xc3c   :  { %v6689_v13 = vpop.eup %6688 }
 0xc3d   :  { %v1848_v14 = vsel %vm720_vm6, %v6689_v13, 0.0 }
 0xc3e   :  { %v6691_v15 = vpop.eup %6690  ;;  %1849 = vadd.xlane.f32.xlu0 %v1848_v14 }
 0xc3f   :  { %v1845_v16 = vsel %vm720_vm6, %v6691_v15, 0.0 }
 0xc40   :  { %1846 = vadd.xlane.f32.xlu1 %v1845_v16 }
 0xc46   :  { %v6693_v33 = vpop.eup %6692 }
 0xc47   :  { %v6695_v34 = vpop.eup %6694  ;;  %v1854_v35 = vsel %vm730_vm7, %v6693_v33, 0.0 }
 0xc48   :  { %v1851_v37 = vsel %vm720_vm6, %v6695_v34, 0.0 }
 0xc51   :  { %1977 = vrot.lane.b32.xlu1 %v7231_v23, %s7038_s24 }
 0xc54   :  { %1981 = vrot.lane.b32.xlu0 %v7253_v30, %s7038_s24 }
 0xc73   :  { %1855 = vadd.xlane.f32.xlu0 %v1854_v35 }
 0xc75   :  { %1852 = vadd.xlane.f32.xlu1 %v1851_v37 }
 0xc86   :  { %1971 = vrot.lane.b32.xlu1 %v7227_v22, %s7039_s6 }
 0xc89   :  { %1969 = vrot.lane.b32.xlu0 %v7231_v23, %s7039_s6 }
 0xc8a   :  { %1975 = vrot.lane.b32.xlu1 %v7247_v28, %s7039_s6 }
 0xc8d   :  { %1973 = vrot.lane.b32.xlu0 %v7253_v30, %s7039_s6 }
 0xc8e   :  { %2139 = vrot.lane.b32.xlu1 %v7423_v36, %s7027_s12 }
 0xc91   :  { %2137 = vrot.lane.b32.xlu0 %v7251_v29, %s7027_s12 }
 0xc92   :  { %2135 = vrot.lane.b32.xlu1 %v7243_v26, %s7027_s12 }
 0xc96   :  { %2133 = vrot.lane.b32.xlu1 %v7239_v24, %s7027_s12 }
 0xcc7   :  { %v1850_v25 = vpop.xlane.xlu0 %1849 }
 0xcc8   :  { %6696 = vrcp.f32 %v1850_v25 }
 0xcc9   :  { %v1847_v6 = vpop.xlane.xlu1 %1846 }
 0xcca   :  { %6698 = vrcp.f32 %v1847_v6 }
 0xccb   :  { %v1982_v41 = vpop.permute.xlu0 %1981 }
 0xccd   :  { %v1978_v43 = vpop.permute.xlu1 %1977 }
 0xcd5   :  { %v6697_v27 = vpop.eup %6696 }
 0xcd6   :  { %v1862_v40 = vmul.f32 %v6697_v27, %v6689_v13 }
 0xcd7   :  { %v6699_v31 = vpop.eup %6698 }
 0xcd8   :  { %v1861_v39 = vmul.f32 %v6699_v31, %v6691_v15 }
 0xcda   :  { %6231 = vmatprep.mubr.msk.f32.mxu1 %vm720_vm6, %v1861_v39 }
 0xcdb   :  { %6232 = vmatmul.mubr.msk.f32.vlgmr.msra.gmra.mxu1 %vm720_vm6, %v1862_v40 }
 0xcdc   :  { %6238 = vmatpush3.xpose.msk.msra.mxu1 %vm618_vm5, %v1984_v44 }
 0xcdd   :  { %6239 = vmatprep.subr.msk.mxu1 %vm618_vm5, %v1982_v41 }
 0xce0   :  { %6240 = vmatpush3.xpose.msk.msra.mxu1 %vm618_vm5, %v1982_v41 }
 0xce1   :  { %6241 = vmatprep.subr.msk.mxu1 %vm618_vm5, %v1980_v38 }
 0xce4   :  { %6242 = vmatpush3.xpose.msk.msra.mxu1 %vm618_vm5, %v1980_v38 }
 0xce5   :  { %6243 = vmatprep.subr.msk.mxu1 %vm618_vm5, %v1978_v43 }
 0xce8   :  { %6244 = vmatpush3.xpose.msk.msra.mxu1 %vm618_vm5, %v1978_v43 }
 0xcfc   :  { %v1856_v46 = vpop.xlane.xlu0 %1855 }
 0xcfd   :  { %6700 = vrcp.f32 %v1856_v46 }
 0xcfe   :  { %v1853_v47 = vpop.xlane.xlu1 %1852 }
 0xcff   :  { %6702 = vrcp.f32 %v1853_v47 }
 0xd00   :  { %v1970_v49 = vpop.permute.xlu0 %1969 }
 0xd02   :  { %v1972_v51 = vpop.permute.xlu1 %1971 }
 0xd04   :  { %v1974_v52 = vpop.permute.xlu0 %1973 }
 0xd06   :  { %v1976_v53 = vpop.permute.xlu1 %1975 }
 0xd08   :  { %v2138_v60 = vpop.permute.xlu0 %2137 }
 0xd0a   :  { %v2140_v55 = vpop.permute.xlu1 %2139  ;;  %v6701_v57 = vpop.eup %6700 }
 0xd0b   :  { %6251 = vmatprep.subr.msk.mxu0 %vm419_vm4, %v2140_v55  ;;  %v1864_v48 = vmul.f32 %v6701_v57, %v6693_v33 }
 0xd0c   :  { %v6703_v58 = vpop.eup %6702  ;;  %6252 = vmatpush3.msk.msra.mxu0 %vm419_vm4, %v2140_v55 }
 0xd0d   :  { %6253 = vmatprep.subr.mxu0 %v2138_v60  ;;  %v1863_v2 = vmul.f32 %v6703_v58, %v6695_v34 }
 0xd0e   :  { %v2136_v5 = vpop.permute.xlu1 %2135  ;;  %6254 = vmatpush3.msra.mxu0 %v2138_v60 }
 0xd0f   :  { %6234 = vmatprep.mubr.msk.f32.mxu1 %vm720_vm6, %v1863_v2  ;;  %6255 = vmatprep.subr.mxu0 %v2136_v5 }
 0xd10   :  { %6235 = vmatmul.mubr.msk.f32.gmra.mxu1 %vm720_vm6, %v1864_v48  ;;  %6256 = vmatpush3.msra.mxu0 %v2136_v5 }
 0xd11   :  { %6245 = vmatprep.mubr.msk.f32.mxu1 %vm618_vm5, %v1970_v49 }
 0xd12   :  { %v2134_v50 = vpop.permute.xlu1 %2133 }
 0xd13   :  { %6257 = vmatprep.subr.mxu0 %v2134_v50 }
 0xd14   :  { %6246 = vmatmul.mubr.msk.f32.vlgmr.msra.gmra.mxu1 %vm618_vm5, %v1972_v51  ;;  %6258 = vmatpush3.msra.mxu0 %v2134_v50 }
 0xd15   :  { %6248 = vmatprep.mubr.msk.f32.mxu1 %vm618_vm5, %v1974_v52 }
 0xd18   :  { %6249 = vmatmul.mubr.msk.f32.gmra.mxu1 %vm618_vm5, %v1976_v53 }
 0xd9b   :  { %v6233_v9 = vpop.f32.mrf.mxu1 }
 0xd9c   :  { %v7611_v54 = vadd.f32 %v6233_v9, %v7549_v62 }
 0xd9d   :  { %v1946_v59 = vpop.f32.mrf.mxu1 }
 0xd9e   :  { %v7614_v56 = vadd.f32 %v1946_v59, %v7552_v4 }
 0xdd0   :  { %v6236_v45 = vpop.f32.mrf.mxu1 }
 0xdd1   :  { %v7617_v61 = vadd.f32 %v6236_v45, %v7555_v7 }
 0xdd2   :  { %v1956_v1 = vpop.f32.mrf.mxu1 }
 0xdd3   :  { %v7620_v3 = vadd.f32 %v1956_v1, %v7558_v8 }
 0xdd4   :  { %v6247_v63 = vpop.f32.mrf.mxu1 }
 0xdd5   :  { %v2089_v10 = vsel %vm720_vm6, %v6247_v63, -inf }
 0xdd6   :  { %2090 = vmax.xlane.f32.xlu1 %v2089_v10  ;;  %v2067_v11 = vpop.f32.mrf.mxu1 }
 0xdd7   :  { %v2086_v62 = vsel %vm720_vm6, %v2067_v11, -inf }
 0xdd8   :  { %2087 = vmax.xlane.f32.xlu0 %v2086_v62  ;;  %v6250_v42 = vpop.f32.mrf.mxu1 }
 0xdd9   :  { %v2095_v4 = vsel %vm730_vm7, %v6250_v42, -inf }
 0xdda   :  { %v2077_v44 = vpop.f32.mrf.mxu1 }
 0xddb   :  { %v2092_v7 = vsel %vm720_vm6, %v2077_v44, -inf }
 0xddc   :  { %2096 = vmax.xlane.f32.xlu0 %v2095_v4 }
 0xde0   :  { %2093 = vmax.xlane.f32.xlu0 %v2092_v7 }
 0xde7   :  { %2259 = vrot.lane.b32.xlu1 %v7253_v30, %s7040_s8 }
 0xdf6   :  { %2261 = vrot.lane.b32.xlu0 %v7247_v28, %s7040_s8 }
 0xe5f   :  { %v2091_v8 = vpop.xlane.xlu1 %2090 }
 0xe60   :  { %v2099_v12 = vsub.f32 %v6247_v63, %v2091_v8 }
 0xe61   :  { %v2088_v13 = vpop.xlane.xlu0 %2087 }
 0xe62   :  { %v2104_v14 = vmul.f32 1.442695, %v2099_v12  ;;  %v2098_v15 = vsub.f32 %v2067_v11, %v2088_v13 }
 0xe63   :  { %v2260_v39 = vpop.permute.xlu1 %2259 }
 0xe64   :  { %6704 = vpow2.f32 %v2104_v14  ;;  %v2102_v16 = vmul.f32 1.442695, %v2098_v15 }
 0xe65   :  { %v2097_v17 = vpop.xlane.xlu0 %2096 }
 0xe66   :  { %6706 = vpow2.f32 %v2102_v16  ;;  %v2101_v34 = vsub.f32 %v6250_v42, %v2097_v17 }
 0xe68   :  { %v2108_v37 = vmul.f32 1.442695, %v2101_v34 }
 0xe69   :  { %v2094_v18 = vpop.xlane.xlu0 %2093 }
 0xe6a   :  { %v2100_v35 = vsub.f32 %v2077_v44, %v2094_v18  ;;  %6708 = vpow2.f32 %v2108_v37 }
 0xe6c   :  { %v2106_v38 = vmul.f32 1.442695, %v2100_v35 }
 0xe6d   :  { %v2262_v19 = vpop.permute.xlu0 %2261 }
 0xe6e   :  { %6265 = vmatprep.subr.msk.mxu0 %vm618_vm5, %v2262_v19  ;;  %6710 = vpow2.f32 %v2106_v38 }
 0xe71   :  { %v6705_v20 = vpop.eup %6704 }
 0xe72   :  { %v2113_v21 = vsel %vm720_vm6, %v6705_v20, 0.0 }
 0xe73   :  { %v6707_v32 = vpop.eup %6706  ;;  %2114 = vadd.xlane.f32.xlu0 %v2113_v21 }
 0xe74   :  { %v2110_v33 = vsel %vm720_vm6, %v6707_v32, 0.0 }
 0xe75   :  { %2111 = vadd.xlane.f32.xlu1 %v2110_v33 }
 0xe77   :  { %v6709_v25 = vpop.eup %6708 }
 0xe78   :  { %v2119_v27 = vsel %vm730_vm7, %v6709_v25, 0.0 }
 0xe7b   :  { %v6711_v6 = vpop.eup %6710 }
 0xe7c   :  { %v2116_v31 = vsel %vm720_vm6, %v6711_v6, 0.0 }
 0xe86   :  { %2255 = vrot.lane.b32.xlu1 %v7231_v23, %s7040_s8 }
 0xe89   :  { %2257 = vrot.lane.b32.xlu0 %v7227_v22, %s7040_s8 }
 0xea8   :  { %2120 = vadd.xlane.f32.xlu0 %v2119_v27 }
 0xeaa   :  { %2117 = vadd.xlane.f32.xlu1 %v2116_v31 }
 0xebb   :  { %2249 = vrot.lane.b32.xlu1 %v7227_v22, %s7041_s20 }
 0xebe   :  { %2247 = vrot.lane.b32.xlu0 %v7231_v23, %s7041_s20 }
 0xebf   :  { %2253 = vrot.lane.b32.xlu1 %v7247_v28, %s7041_s20 }
 0xec2   :  { %2251 = vrot.lane.b32.xlu0 %v7253_v30, %s7041_s20 }
 0xec3   :  { %2414 = vrot.lane.b32.xlu1 %v7423_v36, %s7032_s16 }
 0xec6   :  { %2412 = vrot.lane.b32.xlu0 %v7251_v29, %s7032_s16 }
 0xec7   :  { %2410 = vrot.lane.b32.xlu1 %v7243_v26, %s7032_s16 }
 0xecb   :  { %2408 = vrot.lane.b32.xlu1 %v7239_v24, %s7032_s16 }
 0xefc   :  { %v2115_v40 = vpop.xlane.xlu0 %2114 }
 0xefd   :  { %6712 = vrcp.f32 %v2115_v40 }
 0xefe   :  { %v2112_v41 = vpop.xlane.xlu1 %2111 }
 0xeff   :  { %6714 = vrcp.f32 %v2112_v41 }
 0xf00   :  { %v2258_v51 = vpop.permute.xlu0 %2257 }
 0xf02   :  { %v2256_v52 = vpop.permute.xlu1 %2255 }
 0xf0a   :  { %v6713_v43 = vpop.eup %6712 }
 0xf0b   :  { %v2127_v49 = vmul.f32 %v6713_v43, %v6705_v20 }
 0xf0c   :  { %v6715_v46 = vpop.eup %6714 }
 0xf0d   :  { %v2126_v47 = vmul.f32 %v6715_v46, %v6707_v32 }
 0xf0f   :  { %6259 = vmatprep.mubr.msk.f32.mxu0 %vm720_vm6, %v2126_v47 }
 0xf10   :  { %6260 = vmatmul.mubr.msk.f32.vlgmr.msra.gmra.mxu0 %vm720_vm6, %v2127_v49 }
 0xf11   :  { %6266 = vmatpush3.xpose.msk.msra.mxu0 %vm618_vm5, %v2262_v19 }
 0xf12   :  { %6267 = vmatprep.subr.msk.mxu0 %vm618_vm5, %v2260_v39 }
 0xf15   :  { %6268 = vmatpush3.xpose.msk.msra.mxu0 %vm618_vm5, %v2260_v39 }
 0xf16   :  { %6269 = vmatprep.subr.msk.mxu0 %vm618_vm5, %v2258_v51 }
 0xf19   :  { %6270 = vmatpush3.xpose.msk.msra.mxu0 %vm618_vm5, %v2258_v51 }
 0xf1a   :  { %6271 = vmatprep.subr.msk.mxu0 %vm618_vm5, %v2256_v52 }
 0xf1d   :  { %6272 = vmatpush3.xpose.msk.msra.mxu0 %vm618_vm5, %v2256_v52 }
 0xf31   :  { %v2121_v53 = vpop.xlane.xlu0 %2120 }
 0xf32   :  { %6716 = vrcp.f32 %v2121_v53 }
 0xf33   :  { %v2118_v55 = vpop.xlane.xlu1 %2117 }
 0xf34   :  { %6718 = vrcp.f32 %v2118_v55 }
 0xf35   :  { %v2248_v57 = vpop.permute.xlu0 %2247 }
 0xf37   :  { %v2250_v58 = vpop.permute.xlu1 %2249 }
 0xf39   :  { %v2252_v60 = vpop.permute.xlu0 %2251 }
 0xf3b   :  { %v2254_v2 = vpop.permute.xlu1 %2253 }
 0xf3d   :  { %v2413_v9 = vpop.permute.xlu0 %2412 }
 0xf3f   :  { %v2415_v5 = vpop.permute.xlu1 %2414  ;;  %v6717_v48 = vpop.eup %6716 }
 0xf40   :  { %6279 = vmatprep.subr.msk.mxu1 %vm419_vm4, %v2415_v5  ;;  %v2129_v1 = vmul.f32 %v6717_v48, %v6709_v25 }
 0xf41   :  { %v6719_v50 = vpop.eup %6718  ;;  %6280 = vmatpush3.msk.msra.mxu1 %vm419_vm4, %v2415_v5 }
 0xf42   :  { %6281 = vmatprep.subr.mxu1 %v2413_v9  ;;  %v2128_v59 = vmul.f32 %v6719_v50, %v6711_v6 }
 0xf43   :  { %v2411_v45 = vpop.permute.xlu1 %2410  ;;  %6282 = vmatpush3.msra.mxu1 %v2413_v9 }
 0xf44   :  { %6262 = vmatprep.mubr.msk.f32.mxu0 %vm720_vm6, %v2128_v59  ;;  %6283 = vmatprep.subr.mxu1 %v2411_v45  ;;  %v7724_v59 = vld [vmem:[#allocation4 + $0x18] sm:$0xff] }
 0xf45   :  { %6263 = vmatmul.mubr.msk.f32.gmra.mxu0 %vm720_vm6, %v2129_v1  ;;  %6284 = vmatpush3.msra.mxu1 %v2411_v45  ;;  %v7728_v1 = vld [vmem:[#allocation4 + $0x10] sm:$0xff] }
 0xf46   :  { %6273 = vmatprep.mubr.msk.f32.mxu0 %vm618_vm5, %v2248_v57 }
 0xf47   :  { %v2409_v63 = vpop.permute.xlu1 %2408 }
 0xf48   :  { %6285 = vmatprep.subr.mxu1 %v2409_v63 }
 0xf49   :  { %6274 = vmatmul.mubr.msk.f32.vlgmr.msra.gmra.mxu0 %vm618_vm5, %v2250_v58  ;;  %6286 = vmatpush3.msra.mxu1 %v2409_v63  ;;  %v7733_v63 = vld [vmem:[#allocation4 + $0x8] sm:$0xff] }
 0xf4a   :  { %6276 = vmatprep.mubr.msk.f32.mxu0 %vm618_vm5, %v2252_v60 }
 0xf4d   :  { %6277 = vmatmul.mubr.msk.f32.gmra.mxu0 %vm618_vm5, %v2254_v2 }
 0xfd0   :  { %v6261_v10 = vpop.f32.mrf.mxu0 }
 0xfd1   :  { %v7673_v11 = vadd.f32 %v6261_v10, %v7611_v54  ;;  %v7739_v10 = vld [vmem:[#allocation4] sm:$0xff] }
 0xfd2   :  { %v2224_v62 = vpop.f32.mrf.mxu0 }
 0xfd3   :  { %v7676_v42 = vadd.f32 %v2224_v62, %v7614_v56  ;;  %v7742_v62 = vld [vmem:[#allocation9 + $0x18] sm:$0xff] }
0x1005   :  { %v6264_v4 = vpop.f32.mrf.mxu0 }
0x1006   :  { %v7679_v44 = vadd.f32 %v6264_v4, %v7617_v61 }
0x1007   :  { %v2234_v7 = vpop.f32.mrf.mxu0 }
0x1008   :  { %v7682_v8 = vadd.f32 %v2234_v7, %v7620_v3 }
0x1009   :  { %v6275_v12 = vpop.f32.mrf.mxu0 }
0x100a   :  { %v2367_v13 = vsel %vm720_vm6, %v6275_v12, -inf }
0x100b   :  { %2368 = vmax.xlane.f32.xlu1 %v2367_v13  ;;  %v2345_v14 = vpop.f32.mrf.mxu0 }
0x100c   :  { %v2364_v54 = vsel %vm720_vm6, %v2345_v14, -inf }
0x100d   :  { %2365 = vmax.xlane.f32.xlu0 %v2364_v54  ;;  %v6278_v15 = vpop.f32.mrf.mxu0 }
0x100e   :  { %v2373_v56 = vsel %vm730_vm7, %v6278_v15, -inf }
0x100f   :  { %v2355_v16 = vpop.f32.mrf.mxu0 }
0x1010   :  { %v2370_v61 = vsel %vm720_vm6, %v2355_v16, -inf }
0x1011   :  { %2374 = vmax.xlane.f32.xlu0 %v2373_v56 }
0x1015   :  { %2371 = vmax.xlane.f32.xlu0 %v2370_v61 }
0x101c   :  { %2534 = vrot.lane.b32.xlu1 %v7253_v30, %s7042_s21 }
0x102b   :  { %2536 = vrot.lane.b32.xlu0 %v7247_v28, %s7042_s21 }
0x1094   :  { %v2369_v3 = vpop.xlane.xlu1 %2368 }
0x1095   :  { %v2377_v17 = vsub.f32 %v6275_v12, %v2369_v3 }
0x1096   :  { %v2366_v18 = vpop.xlane.xlu0 %2365 }
0x1097   :  { %v2382_v19 = vmul.f32 1.442695, %v2377_v17  ;;  %v2376_v20 = vsub.f32 %v2345_v14, %v2366_v18 }
0x1098   :  { %v2535_v47 = vpop.permute.xlu1 %2534 }
0x1099   :  { %6720 = vpow2.f32 %v2382_v19  ;;  %v2380_v21 = vmul.f32 1.442695, %v2376_v20 }
0x109a   :  { %v2375_v32 = vpop.xlane.xlu0 %2374 }
0x109b   :  { %6722 = vpow2.f32 %v2380_v21  ;;  %v2379_v6 = vsub.f32 %v6278_v15, %v2375_v32 }
0x109d   :  { %v2386_v31 = vmul.f32 1.442695, %v2379_v6 }
0x109e   :  { %v2372_v33 = vpop.xlane.xlu0 %2371 }
0x109f   :  { %v2378_v27 = vsub.f32 %v2355_v16, %v2372_v33  ;;  %6724 = vpow2.f32 %v2386_v31 }
0x10a1   :  { %v2384_v39 = vmul.f32 1.442695, %v2378_v27 }
0x10a2   :  { %v2537_v34 = vpop.permute.xlu0 %2536 }
0x10a3   :  { %6293 = vmatprep.subr.msk.mxu1 %vm618_vm5, %v2537_v34  ;;  %6726 = vpow2.f32 %v2384_v39 }
0x10a6   :  { %v6721_v35 = vpop.eup %6720 }
0x10a7   :  { %v2391_v37 = vsel %vm720_vm6, %v6721_v35, 0.0 }
0x10a8   :  { %v6723_v38 = vpop.eup %6722  ;;  %2392 = vadd.xlane.f32.xlu0 %v2391_v37 }
0x10a9   :  { %v2388_v25 = vsel %vm720_vm6, %v6723_v38, 0.0 }
0x10aa   :  { %2389 = vadd.xlane.f32.xlu1 %v2388_v25 }
0x10ac   :  { %v6725_v40 = vpop.eup %6724 }
0x10ad   :  { %v2397_v43 = vsel %vm730_vm7, %v6725_v40, 0.0 }
0x10b0   :  { %v6727_v41 = vpop.eup %6726 }
0x10b1   :  { %v2394_v46 = vsel %vm720_vm6, %v6727_v41, 0.0 }
0x10bb   :  { %2530 = vrot.lane.b32.xlu1 %v7231_v23, %s7042_s21 }
0x10be   :  { %2532 = vrot.lane.b32.xlu0 %v7227_v22, %s7042_s21 }
0x10dd   :  { %2398 = vadd.xlane.f32.xlu0 %v2397_v43 }
0x10df   :  { %2395 = vadd.xlane.f32.xlu1 %v2394_v46 }
0x10f0   :  { %2524 = vrot.lane.b32.xlu1 %v7227_v22, %s7043_s25 }
0x10f3   :  { %2522 = vrot.lane.b32.xlu0 %v7231_v23, %s7043_s25 }
0x10f4   :  { %2528 = vrot.lane.b32.xlu1 %v7247_v28, %s7043_s25 }
0x10f7   :  { %2526 = vrot.lane.b32.xlu0 %v7253_v30, %s7043_s25 }
0x1131   :  { %v2393_v49 = vpop.xlane.xlu0 %2392 }
0x1132   :  { %6728 = vrcp.f32 %v2393_v49 }
0x1133   :  { %v2390_v51 = vpop.xlane.xlu1 %2389 }
0x1134   :  { %6730 = vrcp.f32 %v2390_v51 }
0x1135   :  { %v2533_v22 = vpop.permute.xlu0 %2532 }
0x1137   :  { %v2531_v23 = vpop.permute.xlu1 %2530 }
0x113f   :  { %v6729_v52 = vpop.eup %6728 }
0x1140   :  { %v2405_v57 = vmul.f32 %v6729_v52, %v6721_v35 }
0x1141   :  { %v6731_v53 = vpop.eup %6730 }
0x1142   :  { %v2404_v55 = vmul.f32 %v6731_v53, %v6723_v38 }
0x1144   :  { %6287 = vmatprep.mubr.msk.f32.mxu1 %vm720_vm6, %v2404_v55 }
0x1145   :  { %6288 = vmatmul.mubr.msk.f32.vlgmr.msra.gmra.mxu1 %vm720_vm6, %v2405_v57  ;;  %v7782_v57 = vld [vmem:[%s8452_s0 + $0x18] sm:$0xff] }
0x1146   :  { %6294 = vmatpush3.xpose.msk.msra.mxu1 %vm618_vm5, %v2537_v34 }
0x1147   :  { %6295 = vmatprep.subr.msk.mxu1 %vm618_vm5, %v2535_v47 }
0x114a   :  { %6296 = vmatpush3.xpose.msk.msra.mxu1 %vm618_vm5, %v2535_v47 }
0x114b   :  { %6297 = vmatprep.subr.msk.mxu1 %vm618_vm5, %v2533_v22 }
0x114e   :  { %6298 = vmatpush3.xpose.msk.msra.mxu1 %vm618_vm5, %v2533_v22  ;;  %v2839_v22 = vsel %vm129_vm1, %v7782_v57, 0.0 }
0x114f   :  { %6299 = vmatprep.subr.msk.mxu1 %vm618_vm5, %v2531_v23 }
0x1152   :  { %6300 = vmatpush3.xpose.msk.msra.mxu1 %vm618_vm5, %v2531_v23 }
0x1153   :  { %6332 = vmatprep.subr.mxu1 %v7025_v0 }
0x1166   :  { %v2399_v28 = vpop.xlane.xlu0 %2398 }
0x1167   :  { %6732 = vrcp.f32 %v2399_v28  ;;  %v7796_v28 = vld [vmem:[%s8452_s0 + $0x28] sm:$0x1] }
0x1168   :  { %v2396_v30 = vpop.xlane.xlu1 %2395 }
0x1169   :  { %6734 = vrcp.f32 %v2396_v30 }
0x116a   :  { %v2523_v5 = vpop.permute.xlu0 %2522 }
0x116c   :  { %v2525_v50 = vpop.permute.xlu1 %2524 }
0x116e   :  { %v2527_v9 = vpop.permute.xlu0 %2526 }
0x1170   :  { %v2529_v45 = vpop.permute.xlu1 %2528 }
0x1174   :  { %v6733_v58 = vpop.eup %6732 }
0x1175   :  { %v2407_v48 = vmul.f32 %v6733_v58, %v6725_v40  ;;  %v2842_v58 = vsel %vm133_vm2, %v7796_v28, 0.0 }
0x1176   :  { %v6735_v60 = vpop.eup %6734 }
0x1177   :  { %v2406_v2 = vmul.f32 %v6735_v60, %v6727_v41 }
0x1179   :  { %6290 = vmatprep.mubr.msk.f32.mxu1 %vm720_vm6, %v2406_v2 }
0x117a   :  { %6291 = vmatmul.mubr.msk.f32.gmra.mxu1 %vm720_vm6, %v2407_v48 }
0x117b   :  { %6301 = vmatprep.mubr.msk.f32.mxu1 %vm618_vm5, %v2523_v5 }
0x117e   :  { %6302 = vmatmul.mubr.msk.f32.vlgmr.msra.gmra.mxu1 %vm618_vm5, %v2525_v50 }
0x117f   :  { %6304 = vmatprep.mubr.msk.f32.mxu1 %vm618_vm5, %v2527_v9  ;;  %6333 = vmatpush3.msra.mxu1 %v7724_v59 }
0x1180   :  { %6334 = vmatprep.subr.mxu1 %v7025_v0 }
0x1181   :  { %6335 = vmatpush3.msra.mxu1 %v7728_v1 }
0x1182   :  { %6305 = vmatmul.mubr.msk.f32.gmra.mxu1 %vm618_vm5, %v2529_v45  ;;  %6336 = vmatprep.subr.mxu1 %v7025_v0 }
0x1183   :  { %6337 = vmatpush3.msra.mxu1 %v7733_v63  ;;  %6340 = vmatprep.mubr.msk.f32.mxu1 %vm7026_vm0, %v7025_v0 }
0x1184   :  { %6338 = vmatprep.subr.mxu1 %v7025_v0 }
0x1185   :  { %6339 = vmatpush3.msra.mxu1 %v7739_v10 }
0x1186   :  { %6354 = vmatprep.subr.mxu1 %v7742_v62 }
0x1205   :  { %v6289_v4 = vpop.f32.mrf.mxu1 }
0x1206   :  { %v7746_v7 = vadd.f32 %v6289_v4, %v7673_v11 }
0x1207   :  { %v2499_v12 = vpop.f32.mrf.mxu1 }
0x1208   :  { %v7749_v13 = vadd.f32 %v2499_v12, %v7676_v42 }
0x123a   :  { %v6292_v14 = vpop.f32.mrf.mxu1 }
0x123b   :  { %v7752_v54 = vadd.f32 %v6292_v14, %v7679_v44 }
0x123c   :  { %v2509_v15 = vpop.f32.mrf.mxu1 }
0x123d   :  { %v7755_v56 = vadd.f32 %v2509_v15, %v7682_v8  ;;  %v6891_v15 = vld [vmem:[%s8454_s2 + $0x18] sm:$0xff] }
0x123e   :  { %v6303_v16 = vpop.f32.mrf.mxu1 }
0x123f   :  { %v2642_v61 = vsel %vm720_vm6, %v6303_v16, -inf }
0x1240   :  { %2643 = vmax.xlane.f32.xlu1 %v2642_v61  ;;  %v2620_v3 = vpop.f32.mrf.mxu1  ;;  %v6892_v61 = vld [vmem:[%s8454_s2 + $0x10] sm:$0xff] }
0x1241   :  { %v2639_v11 = vsel %vm720_vm6, %v2620_v3, -inf }
0x1242   :  { %2640 = vmax.xlane.f32.xlu0 %v2639_v11  ;;  %v6306_v17 = vpop.f32.mrf.mxu1 }
0x1243   :  { %v2648_v44 = vsel %vm730_vm7, %v6306_v17, -inf }
0x1244   :  { %v2630_v18 = vpop.f32.mrf.mxu1 }
0x1245   :  { %v2645_v42 = vsel %vm720_vm6, %v2630_v18, -inf }
0x1246   :  { %2646 = vmax.xlane.f32.xlu0 %v2645_v42  ;;  %v6894_v42 = vld [vmem:[%s8454_s2] sm:$0xff] }
0x124a   :  { %2649 = vmax.xlane.f32.xlu0 %v2648_v44 }
0x1251   :  { %2689 = vrot.lane.b32.xlu1 %v7423_v36, %s7035_s22 }
0x12c9   :  { %v2644_v8 = vpop.xlane.xlu1 %2643 }
0x12ca   :  { %v2652_v19 = vsub.f32 %v6303_v16, %v2644_v8 }
0x12cb   :  { %v2641_v20 = vpop.xlane.xlu0 %2640 }
0x12cc   :  { %v2657_v21 = vmul.f32 1.442695, %v2652_v19  ;;  %v2651_v32 = vsub.f32 %v2620_v3, %v2641_v20  ;;  %v6893_v3 = vld [vmem:[%s8454_s2 + $0x8] sm:$0xff]  ;;  %v6895_v19 = vld [vmem:[#allocation2] sm:$0xff] }
0x12cd   :  { %v2690_v33 = vpop.permute.xlu1 %2689 }
0x12ce   :  { %6736 = vpow2.f32 %v2657_v21  ;;  %v2655_v34 = vmul.f32 1.442695, %v2651_v32  ;;  %6307 = vmatprep.subr.msk.mxu0 %vm419_vm4, %v2690_v33  ;;  %v6896_v21 = vld [vmem:[%s8461_s9 + $0x38] sm:$0xff] }
0x12cf   :  { %6308 = vmatpush3.msk.msra.mxu0 %vm419_vm4, %v2690_v33  ;;  %v2647_v35 = vpop.xlane.xlu0 %2646 }
0x12d0   :  { %6738 = vpow2.f32 %v2655_v34  ;;  %v2653_v41 = vsub.f32 %v2630_v18, %v2647_v35 }
0x12d2   :  { %v2659_v43 = vmul.f32 1.442695, %v2653_v41 }
0x12d3   :  { %v2650_v37 = vpop.xlane.xlu0 %2649 }
0x12d4   :  { %v2654_v38 = vsub.f32 %v6306_v17, %v2650_v37 }
0x12d6   :  { %v2661_v25 = vmul.f32 1.442695, %v2654_v38 }
0x12d8   :  { %6740 = vpow2.f32 %v2661_v25 }
0x12d9   :  { %6742 = vpow2.f32 %v2659_v43 }
0x12db   :  { %v6737_v6 = vpop.eup %6736 }
0x12dc   :  { %v2666_v36 = vsel %vm720_vm6, %v6737_v6, 0.0 }
0x12dd   :  { %v6739_v27 = vpop.eup %6738  ;;  %2667 = vadd.xlane.f32.xlu0 %v2666_v36 }
0x12de   :  { %v2663_v31 = vsel %vm720_vm6, %v6739_v27, 0.0 }
0x12df   :  { %2664 = vadd.xlane.f32.xlu1 %v2663_v31  ;;  %v6898_v31 = vld [vmem:[#allocation9 + $0x10] sm:$0xff] }
0x12e5   :  { %v7767_v39 = vpop.eup %6740 }
0x12e6   :  { %v2672_v40 = vsel %vm730_vm7, %v7767_v39, 0.0  ;;  %v6743_v46 = vpop.eup %6742 }
0x12e7   :  { %2673 = vadd.xlane.f32.xlu0 %v2672_v40  ;;  %v2669_v47 = vsel %vm720_vm6, %v6743_v46, 0.0  ;;  %v6899_v40 = vld [vmem:[#allocation9 + $0x8] sm:$0xff] }
0x12f0   :  { %2685 = vrot.lane.b32.xlu1 %v7243_v26, %s7035_s22 }
0x12fd   :  { %2687 = vrot.lane.b32.xlu0 %v7251_v29, %s7035_s22 }
0x1314   :  { %2670 = vadd.xlane.f32.xlu1 %v2669_v47 }
0x1325   :  { %2683 = vrot.lane.b32.xlu1 %v7239_v24, %s7035_s22  ;;  %v7787_v24 = vld [vmem:[%s8452_s0 + $0x20] sm:$0xff] }
0x1326   :  { %v2840_v23 = vsel %vm129_vm1, %v7787_v24, 0.0 }
0x1327   :  { %v2841_v30 = vadd.f32 %v2840_v23, %v2839_v22 }
0x1329   :  { %v2843_v60 = vadd.f32 %v2842_v58, %v2841_v30 }
0x132b   :  { %v2844_v2 = vrot.slane %v2843_v60, 4 }
0x132d   :  { %v2845_v5 = vadd.f32 %v2844_v2, %v2843_v60  ;;  %v6901_v2 = vld [vmem:[%s8461_s9 + $0x30] sm:$0xff] }
0x132f   :  { %v2846_v48 = vrot.slane %v2845_v5, 2 }
0x1331   :  { %v2847_v45 = vadd.f32 %v2846_v48, %v2845_v5  ;;  %v6902_v5 = vld [vmem:[%s8461_s9 + $0x28] sm:$0xff]  ;;  %v6903_v48 = vld [vmem:[%s8461_s9 + $0x20] sm:$0xff] }
0x1333   :  { %v2848_v14 = vrot.slane %v2847_v45, 1 }
0x1335   :  { %v2849_v16 = vadd.f32 %v2848_v14, %v2847_v45  ;;  %v6906_v45 = vld [vmem:[%s8461_s9 + $0x8] sm:$0xff] }
0x1337   :  { %v2850_v18 = vmul.f32 0.05882353, %v2849_v16 }
0x1339   :  { %v2851_v20 = vmul.f32 %v6895_v19, %v2850_v18 }
0x1366   :  { %v2668_v51 = vpop.xlane.xlu0 %2667 }
0x1368   :  { %v2665_v49 = vpop.xlane.xlu1 %2664 }
0x1369   :  { %6744 = vrcp.f32 %v2665_v49 }
0x136a   :  { %6746 = vrcp.f32 %v2668_v51 }
0x136c   :  { %v2686_v55 = vpop.permute.xlu1 %2685 }
0x1370   :  { %v2674_v52 = vpop.xlane.xlu0 %2673 }
0x1371   :  { %6748 = vrcp.f32 %v2674_v52 }
0x1374   :  { %v2688_v53 = vpop.permute.xlu0 %2687 }
0x1375   :  { %6309 = vmatprep.subr.mxu0 %v2688_v53 }
0x1376   :  { %v6745_v26 = vpop.eup %6744  ;;  %6310 = vmatpush3.msra.mxu0 %v2688_v53 }
0x1377   :  { %6311 = vmatprep.subr.mxu0 %v2686_v55  ;;  %v2679_v29 = vmul.f32 %v6745_v26, %v6739_v27  ;;  %v6747_v9 = vpop.eup %6746 }
0x1378   :  { %6312 = vmatpush3.msra.mxu0 %v2686_v55  ;;  %v2680_v12 = vmul.f32 %v6747_v9, %v6737_v6  ;;  %v6905_v9 = vld [vmem:[%s8461_s9 + $0x10] sm:$0xff] }
0x1379   :  { %6315 = vmatprep.mubr.msk.f32.mxu0 %vm720_vm6, %v2679_v29 }
0x137e   :  { %v6749_v11 = vpop.eup %6748 }
0x137f   :  { %v2682_v8 = vmul.f32 %v6749_v11, %v7767_v39 }
0x139d   :  { %v2671_v50 = vpop.xlane.xlu1 %2670 }
0x139e   :  { %6750 = vrcp.f32 %v2671_v50  ;;  %v6904_v50 = vld [vmem:[%s8461_s9 + $0x18] sm:$0xff] }
0x13a1   :  { %v2684_v4 = vpop.permute.xlu1 %2683 }
0x13a2   :  { %6313 = vmatprep.subr.mxu0 %v2684_v4 }
0x13a3   :  { %6314 = vmatpush3.msra.mxu0 %v2684_v4  ;;  %v6907_v4 = vld [vmem:[%s8461_s9] sm:$0xff] }
0x13a4   :  { %6316 = vmatmul.mubr.msk.f32.vlgmr.msra.gmra.mxu0 %vm720_vm6, %v2680_v12  ;;  %6321 = vmatprep.subr.mxu0 %v7025_v0 }
0x13a5   :  { %6322 = vmatpush3.msra.mxu0 %v6891_v15 }
0x13a6   :  { %6323 = vmatprep.subr.mxu0 %v7025_v0 }
0x13a7   :  { %6324 = vmatpush3.msra.mxu0 %v6892_v61 }
0x13a8   :  { %6325 = vmatprep.subr.mxu0 %v7025_v0 }
0x13a9   :  { %6326 = vmatpush3.msra.mxu0 %v6893_v3  ;;  %v6908_v3 = vld [vmem:[%s8457_s5] ss:$0 sm:$0xff] }
0x13aa   :  { %6327 = vmatprep.subr.mxu0 %v7025_v0 }
0x13ab   :  { %v6751_v17 = vpop.eup %6750  ;;  %6328 = vmatpush3.msra.mxu0 %v6894_v42 }
0x13ac   :  { %v2681_v44 = vmul.f32 %v6751_v17, %v6743_v46  ;;  %6343 = vmatprep.subr.mxu0 %v7025_v0  ;;  %v6900_v46 = vld [vmem:[#allocation9] sm:$0xff]  ;;  %v6909_v17 = vld [vmem:[#allocation6] ss:$0 sm:$0xff] }
0x13ae   :  { %6318 = vmatprep.mubr.msk.f32.mxu0 %vm720_vm6, %v2681_v44 }
0x13af   :  { %6319 = vmatmul.mubr.msk.f32.gmra.mxu0 %vm720_vm6, %v2682_v8 }
0x13b0   :  { %6329 = vmatprep.mubr.msk.f32.mxu0 %vm7026_vm0, %v7025_v0 }
0x13b3   :  { %6330 = vmatmul.mubr.msk.f32.vlgmr.msra.gmra.mxu0 %vm129_vm1, %v2851_v20 }
0x13b4   :  { %6344 = vmatpush3.msra.mxu0 %v7724_v59  ;;  %6351 = vmatprep.mubr.msk.f32.mxu0 %vm7026_vm0, %v7025_v0 }
0x13b5   :  { %6345 = vmatprep.subr.mxu0 %v7025_v0 }
0x13b6   :  { %6346 = vmatpush3.msra.mxu0 %v7728_v1 }
0x13b7   :  { %6347 = vmatprep.subr.mxu0 %v7025_v0 }
0x13b8   :  { %6348 = vmatpush3.msra.mxu0 %v7733_v63 }
0x13b9   :  { %6349 = vmatprep.subr.mxu0 %v7025_v0 }
0x13ba   :  { %6350 = vmatpush3.msra.mxu0 %v7739_v10  ;;  %v6897_v10 = vld [vmem:[%s8455_s3] ss:$0 sm:$0xff] }
0x13bb   :  { %3229 = vmatprep.subr.mxu0 %v6896_v21 }
0x1464   :  { %v6317_v59 = vpop.f32.mrf.mxu0 }
0x1465   :  { %v2794_v53 = vadd.f32 %v6317_v59, %v7746_v7 }
0x1466   :  { %v2774_v32 = vpop.f32.mrf.mxu0 }
0x1467   :  { %v2793_v26 = vadd.f32 %v2774_v32, %v7749_v13 }
0x146f   :  { %v6320_v33 = vpop.f32.mrf.mxu0 }
0x1470   :  { %v2796_v34 = vadd.f32 %v6320_v33, %v7752_v54 }
0x1471   :  { %v2784_v35 = vpop.f32.mrf.mxu0 }
0x1472   :  { %v2795_v1 = vadd.f32 %v2784_v35, %v7755_v56  ;;  %v2801_v63 = vrot.slane %v2796_v34, 1  ;;  %v2813_v56 = vlaneseq }
0x1473   :  { %v2921_v37 = vpop.f32.mrf.mxu0 }
0x1474   :  { %v2800_v38 = vrot.slane %v2795_v1, 1  ;;  %v2922_v25 = vadd.f32 %v6897_v10, %v2921_v37  ;;  %v2814_v43 = vshrl.u32 %v2813_v56, 7 }
0x1475   :  { %v6331_v6 = vpop.f32.mrf.mxu0 }
0x1476   :  { %v2802_v36 = vsel %vm2799_vm8, %v2800_v38, %v2801_v63  ;;  %6341 = vmatmul.mubr.msk.f32.vlgmr.msra.gmra.mxu1 %vm129_vm1, %v2922_v25  ;;  %vm2817_vm9 = vcmp.eq.s32.totalorder %v2814_v43, 0 }
0x1477   :  { %v2804_v27 = vsel %vm129_vm1, %v2802_v36, 0.0  ;;  %6355 = vmatpush3.msra.mxu1 %v7742_v62  ;;  %6362 = vmatprep.mubr.msk.f32.mxu1 %vm129_vm1, %v7782_v57  ;;  %v7850_v51 = vsel %vm2817_vm9, 1.0, %v7025_v0 }
0x1478   :  { %v2805_v54 = vrot.slane %v2804_v27, 4  ;;  %6356 = vmatprep.subr.mxu1 %v6898_v31 }
0x1479   :  { %6357 = vmatpush3.msra.mxu1 %v6898_v31 }
0x147a   :  { %v2806_v39 = vadd.f32 %v2805_v54, %v2804_v27  ;;  %6358 = vmatprep.subr.mxu1 %v6899_v40 }
0x147b   :  { %6359 = vmatpush3.msra.mxu1 %v6899_v40 }
0x147c   :  { %v2807_v41 = vrot.slane %v2806_v39, 2  ;;  %6360 = vmatprep.subr.mxu1 %v6900_v46 }
0x147d   :  { %6361 = vmatpush3.msra.mxu1 %v6900_v46 }
0x147e   :  { %v2808_v47 = vadd.f32 %v2807_v41, %v2806_v39  ;;  %6363 = vmatmul.mubr.msk.f32.vlgmr.msra.gmra.mxu1 %vm129_vm1, %v7787_v24  ;;  %v6910_v39 = vld [vmem:[#allocation7] sm:$0xff] }
0x1480   :  { %v2809_v62 = vrot.slane %v2808_v47, 1 }
0x1482   :  { %v2810_v49 = vadd.f32 %v2809_v62, %v2808_v47 }
0x1484   :  { %v2812_v52 = vmul.f32 0.125, %v2810_v49 }
0x1486   :  { %v2826_v55 = vmul.f32 %v7850_v51, %v2812_v52  ;;  %v2827_v29 = vmul.f32 0.0, %v2812_v52 }
0x1488   :  { %v2829_v22 = vadd.f32 %v2826_v55, %v2793_v26  ;;  %v2830_v23 = vadd.f32 %v2827_v29, %v2794_v53  ;;  %v2831_v30 = vadd.f32 %v2827_v29, %v2795_v1 }
0x148a   :  { %2832 = vst.msk [vmem:[%s8463_s11] sm:$0xff] %vm129_vm1, %v2829_v22  ;;  %2833 = vst.msk [vmem:[%s8463_s11 + $0x8] sm:$0xff] %vm129_vm1, %v2830_v23 }
0x148b   :  { %2834 = vst.msk [vmem:[%s8463_s11 + $0x10] sm:$0x1] %vm133_vm2, %v2831_v30 }
0x1536   :  { %v2994_v7 = vpop.f32.mrf.mxu1 }
0x1537   :  { %v2998_v13 = vsub.f32 %v2922_v25, %v2994_v7 }
0x1538   :  { %v6342_v58 = vpop.f32.mrf.mxu1 }
0x1539   :  { %v2999_v60 = vmul.f32 %v2998_v13, %v2998_v13 }
0x153b   :  { %6352 = vmatmul.mubr.msk.f32.vlgmr.msra.gmra.mxu0 %vm129_vm1, %v2999_v60 }
0x153c   :  { %3230 = vmatpush1.msra.mxu0 %v6901_v2  ;;  %3269 = vmatprep.mubr.f32.mxu0 %v7025_v0 }
0x153d   :  { %3231 = vmatprep.subr.mxu0 %v6902_v5 }
0x153e   :  { %3232 = vmatpush1.msra.mxu0 %v6903_v48  ;;  %v7899_v41 = vpop.f32.mrf.mxu1 }
0x153f   :  { %3233 = vmatprep.subr.mxu0 %v6904_v50 }
0x1540   :  { %3234 = vmatpush1.msra.mxu0 %v6905_v9  ;;  %v7903_v47 = vpop.f32.mrf.mxu1 }
0x1541   :  { %3235 = vmatprep.subr.mxu0 %v6906_v45 }
0x1542   :  { %3236 = vmatpush1.msra.mxu0 %v6907_v4 }
0x1543   :  { %5637 = vmatmul.mubr.msk.f32.vlgmr.msra.gmra.mxu0 %vm129_vm1, %v7782_v57 }
0x1544   :  { %3275 = vmatprep.mubr.f32.mxu0 %v7025_v0 }
0x1547   :  { %5638 = vmatmul.mubr.msk.f32.gmra.mxu0 %vm129_vm1, %v7787_v24 }
0x1548   :  { %3281 = vmatprep.mubr.f32.mxu0 %v7025_v0 }
0x15fb   :  { %v3069_v12 = vpop.f32.mrf.mxu0 }
0x15fc   :  { %v3070_v14 = vadd.f32 1e-05, %v3069_v12 }
0x15fd   :  { %v6353_v15 = vpop.f32.mrf.mxu0 }
0x15fe   :  { %6752 = vrsqrt.f32 %v3070_v14 }
0x1603   :  { %v7912_v62 = vpop.f32.mrf.mxu0 }
0x1605   :  { %v7914_v49 = vpop.f32.mrf.mxu0 }
0x160b   :  { %v6753_v16 = vpop.eup %6752 }
0x160c   :  { %v3074_v61 = vmul.f32 %v6753_v16, %v2998_v13 }
0x160e   :  { %v3075_v11 = vmul.f32 %v6908_v3, %v3074_v61 }
0x1610   :  { %v3076_v57 = vadd.f32 %v6909_v17, %v3075_v11 }
0x1612   :  { %v3077_v18 = vmul.f32 0.70710677, %v3076_v57  ;;  %v3101_v54 = vmul.f32 0.5, %v3076_v57 }
0x1614   :  { %v3078_v42 = vand.u32 2147483647, %v3077_v18  ;;  %vm3098_vm10 = vcmp.ge.f32.partialorder %v3077_v18, 0.0 }
0x1616   :  { %v3079_v44 = vmul.f32 0.3275911, %v3078_v42  ;;  %v3092_v24 = vsub.f32 0.0, %v3078_v42 }
0x1618   :  { %v3080_v8 = vadd.f32 1.0, %v3079_v44  ;;  %v3093_v19 = vmul.f32 %v3092_v24, %v3078_v42 }
0x161a   :  { %6754 = vrcp.f32 %v3080_v8  ;;  %v3094_v59 = vmul.f32 1.442695, %v3093_v19 }
0x161c   :  { %6756 = vpow2.f32 %v3094_v59 }
0x1627   :  { %v6755_v20 = vpop.eup %6754 }
0x1628   :  { %v3083_v21 = vmul.f32 1.0614054, %v6755_v20 }
0x1629   :  { %v6757_v10 = vpop.eup %6756 }
0x162a   :  { %v3084_v32 = vadd.f32 -1.4531521, %v3083_v21 }
0x162c   :  { %v3085_v33 = vmul.f32 %v6755_v20, %v3084_v32 }
0x162e   :  { %v3086_v34 = vadd.f32 1.4214138, %v3085_v33 }
0x1630   :  { %v3087_v35 = vmul.f32 %v6755_v20, %v3086_v34 }
0x1632   :  { %v3088_v1 = vadd.f32 -0.28449672, %v3087_v35 }
0x1634   :  { %v3089_v37 = vmul.f32 %v6755_v20, %v3088_v1 }
0x1636   :  { %v3090_v63 = vadd.f32 0.2548296, %v3089_v37 }
0x1638   :  { %v3091_v38 = vmul.f32 %v6755_v20, %v3090_v63 }
0x163a   :  { %v3096_v25 = vmul.f32 %v6757_v10, %v3091_v38 }
0x163c   :  { %v3097_v6 = vsub.f32 1.0, %v3096_v25 }
0x163e   :  { %v3099_v36 = vsub.f32 0.0, %v3097_v6 }
0x1640   :  { %v3100_v27 = vsel %vm3098_vm10, %v3097_v6, %v3099_v36 }
0x1641   :  { %v3102_v56 = vadd.f32 1.0, %v3100_v27 }
0x1643   :  { %v3103_v31 = vmul.f32 %v3102_v56, %v3101_v54 }
0x1645   :  { %v3104_v40 = vadd.f32 %v6910_v39, %v3103_v31 }
0x1647   :  { %v3106_v43 = vrot.slane %v3104_v40, 7 }
0x1649   :  { %v3108_v46 = vsel %vm419_vm4, %v7796_v28, %v3106_v43  ;;  %v7916_v28 = vpop.f32.mrf.mxu0 }
0x164a   :  { %6365 = vmatprep.mubr.msk.f32.mxu1 %vm129_vm1, %v3108_v46  ;;  %5639 = vmatmul.mubr.msk.f32.gmra.mxu0 %vm129_vm1, %v3108_v46 }
0x164b   :  { %6366 = vmatmul.mubr.msk.f32.gmra.mxu1 %vm129_vm1, %v3106_v43  ;;  %3287 = vmatprep.mubr.f32.mxu0 %v7025_v0  ;;  %v7918_v52 = vpop.f32.mrf.mxu0 }
0x164c   :  { %6376 = vmatprep.mubr.msk.f32.mxu1 %vm618_vm5, %v7903_v47 }
0x164e   :  { %5640 = vmatmul.mubr.msk.f32.gmra.mxu0 %vm129_vm1, %v3106_v43 }
0x170a   :  { %v7920_v53 = vpop.f32.mrf.mxu0 }
0x170b   :  { %v7922_v26 = vpop.f32.mrf.mxu1 }
0x170c   :  { %3304 = vrot.lane.b32.xlu0 %v7922_v26, %s7027_s12  ;;  %v7926_v0 = vpop.f32.mrf.mxu0 }
0x170d   :  { %v7928_v55 = vpop.f32.mrf.mxu1 }
0x170e   :  { %3302 = vrot.lane.b32.xlu1 %v7928_v55, %s7027_s12  ;;  %v7932_v29 = vpop.f32.mrf.mxu0 }
0x170f   :  { %6382 = vmatprep.subr.msk.mxu0 %vm419_vm4, %v7932_v29 }
0x1710   :  { %3300 = vrot.lane.b32.xlu0 %v7899_v41, %s7027_s12  ;;  %6383 = vmatpush3.msk.msra.mxu0 %vm419_vm4, %v7932_v29 }
0x1711   :  { %6384 = vmatprep.subr.mxu0 %v7920_v53 }
0x1712   :  { %3298 = vrot.lane.b32.xlu1 %v7903_v47, %s7027_s12  ;;  %6385 = vmatpush3.msra.mxu0 %v7920_v53 }
0x1713   :  { %6386 = vmatprep.subr.mxu0 %v7916_v28 }
0x1714   :  { %3569 = vrot.lane.b32.xlu0 %v7922_v26, %s7028_s4  ;;  %6387 = vmatpush3.msra.mxu0 %v7916_v28 }
0x1715   :  { %6388 = vmatprep.subr.mxu0 %v7912_v62 }
0x1716   :  { %3567 = vrot.lane.b32.xlu1 %v7928_v55, %s7028_s4  ;;  %6389 = vmatpush3.msra.mxu0 %v7912_v62 }
0x1718   :  { %3565 = vrot.lane.b32.xlu0 %v7899_v41, %s7028_s4 }
0x171a   :  { %3563 = vrot.lane.b32.xlu1 %v7903_v47, %s7028_s4 }
0x171c   :  { %3555 = vrot.lane.b32.xlu0 %v7903_v47, %s7029_s13 }
0x171e   :  { %3557 = vrot.lane.b32.xlu1 %v7899_v41, %s7029_s13 }
0x1720   :  { %3559 = vrot.lane.b32.xlu0 %v7928_v55, %s7029_s13 }
0x1722   :  { %3561 = vrot.lane.b32.xlu1 %v7922_v26, %s7029_s13 }
0x1724   :  { %3723 = vrot.lane.b32.xlu0 %v7920_v53, %s7027_s12 }
0x1726   :  { %3721 = vrot.lane.b32.xlu1 %v7916_v28, %s7027_s12 }
0x172a   :  { %3719 = vrot.lane.b32.xlu1 %v7912_v62, %s7027_s12 }
0x172e   :  { %3725 = vrot.lane.b32.xlu1 %v7932_v29, %s7027_s12 }
0x177e   :  { %v3305_v22 = vpop.permute.xlu0 %3304 }
0x177f   :  { %6368 = vmatprep.subr.msk.mxu1 %vm618_vm5, %v3305_v22 }
0x1780   :  { %6369 = vmatpush3.xpose.msk.msra.mxu1 %vm618_vm5, %v3305_v22  ;;  %v3303_v23 = vpop.permute.xlu1 %3302 }
0x1781   :  { %6370 = vmatprep.subr.msk.mxu1 %vm618_vm5, %v3303_v23 }
0x1782   :  { %v3301_v30 = vpop.permute.xlu0 %3300 }
0x1784   :  { %6371 = vmatpush3.xpose.msk.msra.mxu1 %vm618_vm5, %v3303_v23  ;;  %v3299_v7 = vpop.permute.xlu1 %3298 }
0x1785   :  { %6372 = vmatprep.subr.msk.mxu1 %vm618_vm5, %v3301_v30 }
0x1786   :  { %v3570_v13 = vpop.permute.xlu0 %3569 }
0x1788   :  { %6373 = vmatpush3.xpose.msk.msra.mxu1 %vm618_vm5, %v3301_v30  ;;  %v3568_v58 = vpop.permute.xlu1 %3567 }
0x1789   :  { %6374 = vmatprep.subr.msk.mxu1 %vm618_vm5, %v3299_v7 }
0x178a   :  { %v3566_v2 = vpop.permute.xlu0 %3565 }
0x178c   :  { %6375 = vmatpush3.xpose.msk.msra.mxu1 %vm618_vm5, %v3299_v7  ;;  %v3564_v60 = vpop.permute.xlu1 %3563 }
0x178d   :  { %6396 = vmatprep.subr.msk.mxu1 %vm618_vm5, %v3570_v13 }
0x178e   :  { %v3556_v48 = vpop.permute.xlu0 %3555 }
0x178f   :  { %6377 = vmatmul.mubr.msk.f32.vlgmr.msra.gmra.mxu1 %vm618_vm5, %v7899_v41 }
0x1790   :  { %6379 = vmatprep.mubr.msk.f32.mxu1 %vm618_vm5, %v7928_v55  ;;  %6397 = vmatpush3.xpose.msk.msra.mxu1 %vm618_vm5, %v3570_v13  ;;  %v3558_v5 = vpop.permute.xlu1 %3557 }
0x1791   :  { %6398 = vmatprep.subr.msk.mxu1 %vm618_vm5, %v3568_v58 }
0x1792   :  { %v3560_v4 = vpop.permute.xlu0 %3559 }
0x1793   :  { %6380 = vmatmul.mubr.msk.f32.gmra.mxu1 %vm618_vm5, %v7922_v26 }
0x1794   :  { %6399 = vmatpush3.xpose.msk.msra.mxu1 %vm618_vm5, %v3568_v58  ;;  %6404 = vmatprep.mubr.msk.f32.mxu1 %vm618_vm5, %v3556_v48  ;;  %v3562_v50 = vpop.permute.xlu1 %3561 }
0x1795   :  { %6400 = vmatprep.subr.msk.mxu1 %vm618_vm5, %v3566_v2 }
0x1796   :  { %v8018_v59 = vpop.permute.xlu0 %3723 }
0x1798   :  { %6401 = vmatpush3.xpose.msk.msra.mxu1 %vm618_vm5, %v3566_v2  ;;  %v7993_v9 = vpop.permute.xlu1 %3721 }
0x1799   :  { %6402 = vmatprep.subr.msk.mxu1 %vm618_vm5, %v3564_v60 }
0x179c   :  { %6403 = vmatpush3.xpose.msk.msra.mxu1 %vm618_vm5, %v3564_v60  ;;  %v7997_v45 = vpop.permute.xlu1 %3719 }
0x179f   :  { %6405 = vmatmul.mubr.msk.f32.vlgmr.msra.gmra.mxu1 %vm618_vm5, %v3558_v5 }
0x17a0   :  { %6407 = vmatprep.mubr.msk.f32.mxu1 %vm618_vm5, %v3560_v4  ;;  %v8001_v12 = vpop.permute.xlu1 %3725 }
0x17a1   :  { %6410 = vmatprep.subr.msk.mxu0 %vm419_vm4, %v8001_v12 }
0x17a3   :  { %6408 = vmatmul.mubr.msk.f32.gmra.mxu1 %vm618_vm5, %v3562_v50 }
0x184f   :  { %v6378_v14 = vpop.f32.mrf.mxu1 }
0x1850   :  { %v3410_v15 = vsel %vm720_vm6, %v6378_v14, -inf }
0x1851   :  { %v3388_v16 = vpop.f32.mrf.mxu1  ;;  %3411 = vmax.xlane.f32.xlu1 %v3410_v15 }
0x1852   :  { %v3407_v61 = vsel %vm720_vm6, %v3388_v16, -inf }
0x1853   :  { %v6381_v3 = vpop.f32.mrf.mxu1  ;;  %3408 = vmax.xlane.f32.xlu0 %v3407_v61 }
0x1854   :  { %v3416_v11 = vsel %vm730_vm7, %v6381_v3, -inf }
0x1855   :  { %v3398_v17 = vpop.f32.mrf.mxu1 }
0x1856   :  { %v3413_v57 = vsel %vm720_vm6, %v3398_v17, -inf }
0x1857   :  { %3417 = vmax.xlane.f32.xlu0 %v3416_v11 }
0x185b   :  { %3414 = vmax.xlane.f32.xlu0 %v3413_v57 }
0x185f   :  { %v6406_v18 = vpop.f32.mrf.mxu1 }
0x1860   :  { %v3675_v42 = vsel %vm720_vm6, %v6406_v18, -inf }
0x1861   :  { %v3653_v44 = vpop.f32.mrf.mxu1  ;;  %3676 = vmax.xlane.f32.xlu0 %v3675_v42 }
0x1862   :  { %v3672_v8 = vsel %vm720_vm6, %v3653_v44, -inf }
0x1863   :  { %v6409_v24 = vpop.f32.mrf.mxu1  ;;  %3673 = vmax.xlane.f32.xlu1 %v3672_v8 }
0x1864   :  { %v3681_v19 = vsel %vm730_vm7, %v6409_v24, -inf }
0x1865   :  { %v3663_v20 = vpop.f32.mrf.mxu1  ;;  %3682 = vmax.xlane.f32.xlu0 %v3681_v19 }
0x1866   :  { %v3678_v21 = vsel %vm720_vm6, %v3663_v20, -inf }
0x1867   :  { %3679 = vmax.xlane.f32.xlu1 %v3678_v21 }
0x1878   :  { %3845 = vrot.lane.b32.xlu1 %v7928_v55, %s7030_s14 }
0x187b   :  { %3847 = vrot.lane.b32.xlu0 %v7922_v26, %s7030_s14 }
0x18da   :  { %v3412_v32 = vpop.xlane.xlu1 %3411 }
0x18db   :  { %v3420_v33 = vsub.f32 %v6378_v14, %v3412_v32 }
0x18dc   :  { %v3409_v34 = vpop.xlane.xlu0 %3408 }
0x18dd   :  { %v3425_v35 = vmul.f32 1.442695, %v3420_v33  ;;  %v3419_v1 = vsub.f32 %v3388_v16, %v3409_v34 }
0x18df   :  { %6758 = vpow2.f32 %v3425_v35  ;;  %v3423_v37 = vmul.f32 1.442695, %v3419_v1 }
0x18e0   :  { %v3418_v63 = vpop.xlane.xlu0 %3417 }
0x18e1   :  { %6760 = vpow2.f32 %v3423_v37  ;;  %v3422_v38 = vsub.f32 %v6381_v3, %v3418_v63 }
0x18e3   :  { %v3429_v10 = vmul.f32 1.442695, %v3422_v38 }
0x18e4   :  { %v3415_v25 = vpop.xlane.xlu0 %3414 }
0x18e5   :  { %6762 = vpow2.f32 %v3429_v10  ;;  %v3421_v6 = vsub.f32 %v3398_v17, %v3415_v25 }
0x18e7   :  { %v3427_v36 = vmul.f32 1.442695, %v3421_v6 }
0x18e9   :  { %6764 = vpow2.f32 %v3427_v36 }
0x18ea   :  { %v3677_v27 = vpop.xlane.xlu0 %3676 }
0x18eb   :  { %v3685_v54 = vsub.f32 %v6406_v18, %v3677_v27 }
0x18ec   :  { %v6759_v56 = vpop.eup %6758  ;;  %v3674_v31 = vpop.xlane.xlu1 %3673 }
0x18ed   :  { %v3690_v39 = vmul.f32 1.442695, %v3685_v54  ;;  %v3684_v40 = vsub.f32 %v3653_v44, %v3674_v31  ;;  %v3434_v43 = vsel %vm720_vm6, %v6759_v56, 0.0 }
0x18ee   :  { %v6761_v46 = vpop.eup %6760  ;;  %3435 = vadd.xlane.f32.xlu0 %v3434_v43  ;;  %v3683_v50 = vpop.xlane.xlu0 %3682 }
0x18ef   :  { %6766 = vpow2.f32 %v3690_v39  ;;  %v3688_v22 = vmul.f32 1.442695, %v3684_v40  ;;  %v3431_v23 = vsel %vm720_vm6, %v6761_v46, 0.0  ;;  %v3687_v14 = vsub.f32 %v6409_v24, %v3683_v50 }
0x18f0   :  { %3432 = vadd.xlane.f32.xlu1 %v3431_v23  ;;  %v3680_v4 = vpop.xlane.xlu1 %3679 }
0x18f1   :  { %6768 = vpow2.f32 %v3688_v22  ;;  %v3686_v15 = vsub.f32 %v3663_v20, %v3680_v4  ;;  %v3694_v16 = vmul.f32 1.442695, %v3687_v14 }
0x18f2   :  { %v8022_v30 = vpop.eup %6762  ;;  %v3848_v18 = vpop.permute.xlu0 %3847 }
0x18f3   :  { %v3440_v7 = vsel %vm730_vm7, %v8022_v30, 0.0  ;;  %v3692_v61 = vmul.f32 1.442695, %v3686_v15  ;;  %6770 = vpow2.f32 %v3694_v16 }
0x18f4   :  { %3441 = vadd.xlane.f32.xlu0 %v3440_v7  ;;  %v3846_v42 = vpop.permute.xlu1 %3845 }
0x18f5   :  { %6772 = vpow2.f32 %v3692_v61 }
0x18f6   :  { %v6765_v13 = vpop.eup %6764 }
0x18f7   :  { %v3437_v58 = vsel %vm720_vm6, %v6765_v13, 0.0 }
0x18f8   :  { %3438 = vadd.xlane.f32.xlu1 %v3437_v58 }
0x18fc   :  { %v8027_v60 = vpop.eup %6766 }
0x18fd   :  { %v3699_v2 = vsel %vm720_vm6, %v8027_v60, 0.0 }
0x18fe   :  { %v8031_v5 = vpop.eup %6768  ;;  %3700 = vadd.xlane.f32.xlu0 %v3699_v2 }
0x18ff   :  { %v3696_v48 = vsel %vm720_vm6, %v8031_v5, 0.0 }
0x1900   :  { %3697 = vadd.xlane.f32.xlu1 %v3696_v48  ;;  %v8039_v3 = vpop.eup %6770  ;;  %v6911_v48 = vld [vmem:[%s8462_s10] ss:$0 sm:$0xff] }
0x1901   :  { %v3705_v17 = vsel %vm730_vm7, %v8039_v3, 0.0 }
0x1902   :  { %v8041_v11 = vpop.eup %6772 }
0x1903   :  { %v3702_v57 = vsel %vm720_vm6, %v8041_v11, 0.0 }
0x1911   :  { %3841 = vrot.lane.b32.xlu1 %v7903_v47, %s7030_s14 }
0x1914   :  { %3843 = vrot.lane.b32.xlu0 %v7899_v41, %s7030_s14 }
0x1933   :  { %3706 = vadd.xlane.f32.xlu0 %v3705_v17 }
0x1935   :  { %3703 = vadd.xlane.f32.xlu1 %v3702_v57 }
0x1946   :  { %3835 = vrot.lane.b32.xlu1 %v7899_v41, %s7031_s15 }
0x1949   :  { %3833 = vrot.lane.b32.xlu0 %v7903_v47, %s7031_s15 }
0x194a   :  { %3839 = vrot.lane.b32.xlu1 %v7922_v26, %s7031_s15 }
0x194d   :  { %3837 = vrot.lane.b32.xlu0 %v7928_v55, %s7031_s15 }
0x194e   :  { %4000 = vrot.lane.b32.xlu1 %v7932_v29, %s7032_s16 }
0x1951   :  { %3998 = vrot.lane.b32.xlu0 %v7920_v53, %s7032_s16 }
0x1952   :  { %3996 = vrot.lane.b32.xlu1 %v7916_v28, %s7032_s16 }
0x1956   :  { %3994 = vrot.lane.b32.xlu1 %v7912_v62, %s7032_s16 }
0x1977   :  { %v3436_v44 = vpop.xlane.xlu0 %3435 }
0x1978   :  { %6774 = vrcp.f32 %v3436_v44 }
0x1979   :  { %v3433_v8 = vpop.xlane.xlu1 %3432 }
0x197a   :  { %6776 = vrcp.f32 %v3433_v8 }
0x197d   :  { %v3442_v24 = vpop.xlane.xlu0 %3441 }
0x197e   :  { %6778 = vrcp.f32 %v3442_v24 }
0x1981   :  { %v3439_v19 = vpop.xlane.xlu1 %3438 }
0x1982   :  { %6780 = vrcp.f32 %v3439_v19 }
0x1985   :  { %v6775_v20 = vpop.eup %6774 }
0x1986   :  { %v3448_v34 = vmul.f32 %v6775_v20, %v6759_v56 }
0x1987   :  { %v6777_v21 = vpop.eup %6776  ;;  %v3701_v32 = vpop.xlane.xlu0 %3700 }
0x1988   :  { %v3447_v33 = vmul.f32 %v6777_v21, %v6761_v46  ;;  %6782 = vrcp.f32 %v3701_v32 }
0x1989   :  { %v3698_v35 = vpop.xlane.xlu1 %3697 }
0x198a   :  { %6784 = vrcp.f32 %v3698_v35  ;;  %6390 = vmatprep.mubr.msk.f32.mxu0 %vm720_vm6, %v3447_v33 }
0x198b   :  { %6391 = vmatmul.mubr.msk.f32.vlgmr.msra.gmra.mxu0 %vm720_vm6, %v3448_v34  ;;  %v6779_v1 = vpop.eup %6778 }
0x198c   :  { %6411 = vmatpush3.msk.msra.mxu0 %vm419_vm4, %v8001_v12  ;;  %v3450_v38 = vmul.f32 %v6779_v1, %v8022_v30 }
0x198d   :  { %6412 = vmatprep.subr.mxu0 %v8018_v59 }
0x198e   :  { %6413 = vmatpush3.msra.mxu0 %v8018_v59 }
0x198f   :  { %v6781_v37 = vpop.eup %6780  ;;  %6414 = vmatprep.subr.mxu0 %v7993_v9 }
0x1990   :  { %6415 = vmatpush3.msra.mxu0 %v7993_v9  ;;  %v3449_v63 = vmul.f32 %v6781_v37, %v6765_v13  ;;  %v3844_v9 = vpop.permute.xlu0 %3843  ;;  %v8098_v13 = vpop.f32.mrf.mxu0 }
0x1991   :  { %6416 = vmatprep.subr.mxu0 %v7997_v45 }
0x1992   :  { %6417 = vmatpush3.msra.mxu0 %v7997_v45  ;;  %6393 = vmatprep.mubr.msk.f32.mxu0 %vm720_vm6, %v3449_v63  ;;  %v3842_v45 = vpop.permute.xlu1 %3841 }
0x1993   :  { %6424 = vmatprep.subr.msk.mxu0 %vm618_vm5, %v3848_v18  ;;  %6394 = vmatmul.mubr.msk.f32.gmra.mxu0 %vm720_vm6, %v3450_v38 }
0x1995   :  { %v6783_v12 = vpop.eup %6782 }
0x1996   :  { %v3713_v25 = vmul.f32 %v6783_v12, %v8027_v60 }
0x1997   :  { %v6785_v59 = vpop.eup %6784 }
0x1998   :  { %v3712_v10 = vmul.f32 %v6785_v59, %v8031_v5 }
0x199a   :  { %6418 = vmatprep.mubr.msk.f32.mxu0 %vm720_vm6, %v3712_v10 }
0x199b   :  { %6419 = vmatmul.mubr.msk.f32.vlgmr.msra.gmra.mxu0 %vm720_vm6, %v3713_v25 }
0x199c   :  { %6425 = vmatpush3.xpose.msk.msra.mxu0 %vm618_vm5, %v3848_v18 }
0x199d   :  { %6426 = vmatprep.subr.msk.mxu0 %vm618_vm5, %v3846_v42 }
0x19a0   :  { %6427 = vmatpush3.xpose.msk.msra.mxu0 %vm618_vm5, %v3846_v42 }
0x19a1   :  { %6428 = vmatprep.subr.msk.mxu0 %vm618_vm5, %v3844_v9 }
0x19a4   :  { %6429 = vmatpush3.xpose.msk.msra.mxu0 %vm618_vm5, %v3844_v9 }
0x19a5   :  { %6430 = vmatprep.subr.msk.mxu0 %vm618_vm5, %v3842_v45 }
0x19a8   :  { %6431 = vmatpush3.xpose.msk.msra.mxu0 %vm618_vm5, %v3842_v45 }
0x19bc   :  { %v3707_v6 = vpop.xlane.xlu0 %3706 }
0x19bd   :  { %6786 = vrcp.f32 %v3707_v6 }
0x19be   :  { %v3704_v36 = vpop.xlane.xlu1 %3703 }
0x19bf   :  { %6788 = vrcp.f32 %v3704_v36 }
0x19c0   :  { %v3834_v27 = vpop.permute.xlu0 %3833 }
0x19c2   :  { %v3836_v54 = vpop.permute.xlu1 %3835 }
0x19c4   :  { %v3838_v56 = vpop.permute.xlu0 %3837 }
0x19c6   :  { %v3840_v31 = vpop.permute.xlu1 %3839 }
0x19c8   :  { %v3999_v46 = vpop.permute.xlu0 %3998 }
0x19ca   :  { %v4001_v39 = vpop.permute.xlu1 %4000  ;;  %v6787_v40 = vpop.eup %6786 }
0x19cb   :  { %6438 = vmatprep.subr.msk.mxu1 %vm419_vm4, %v4001_v39  ;;  %v3715_v30 = vmul.f32 %v6787_v40, %v8039_v3 }
0x19cc   :  { %v6789_v43 = vpop.eup %6788  ;;  %6439 = vmatpush3.msk.msra.mxu1 %vm419_vm4, %v4001_v39 }
0x19cd   :  { %6440 = vmatprep.subr.mxu1 %v3999_v46  ;;  %v3714_v22 = vmul.f32 %v6789_v43, %v8041_v11 }
0x19ce   :  { %6441 = vmatpush3.msra.mxu1 %v3999_v46  ;;  %v3997_v23 = vpop.permute.xlu1 %3996 }
0x19cf   :  { %6421 = vmatprep.mubr.msk.f32.mxu0 %vm720_vm6, %v3714_v22  ;;  %6442 = vmatprep.subr.mxu1 %v3997_v23 }
0x19d0   :  { %6422 = vmatmul.mubr.msk.f32.gmra.mxu0 %vm720_vm6, %v3715_v30  ;;  %6443 = vmatpush3.msra.mxu1 %v3997_v23 }
0x19d1   :  { %6432 = vmatprep.mubr.msk.f32.mxu0 %vm618_vm5, %v3834_v27 }
0x19d2   :  { %v3995_v7 = vpop.permute.xlu1 %3994 }
0x19d3   :  { %6444 = vmatprep.subr.mxu1 %v3995_v7 }
0x19d4   :  { %6433 = vmatmul.mubr.msk.f32.vlgmr.msra.gmra.mxu0 %vm618_vm5, %v3836_v54  ;;  %6445 = vmatpush3.msra.mxu1 %v3995_v7 }
0x19d5   :  { %6435 = vmatprep.mubr.msk.f32.mxu0 %vm618_vm5, %v3838_v56 }
0x19d8   :  { %6436 = vmatmul.mubr.msk.f32.gmra.mxu0 %vm618_vm5, %v3840_v31 }
0x1a4b   :  { %v6392_v58 = vpop.f32.mrf.mxu0 }
0x1a4c   :  { %v3552_v50 = vadd.f32 %v6911_v48, %v6392_v58 }
0x1a4d   :  { %v3532_v60 = vpop.f32.mrf.mxu0 }
0x1a4e   :  { %v3551_v14 = vadd.f32 %v6911_v48, %v3532_v60 }
0x1a53   :  { %v6395_v2 = vpop.f32.mrf.mxu0 }
0x1a54   :  { %v3554_v3 = vadd.f32 %v6911_v48, %v6395_v2 }
0x1a55   :  { %v3542_v5 = vpop.f32.mrf.mxu0 }
0x1a56   :  { %v3553_v17 = vadd.f32 %v6911_v48, %v3542_v5 }
0x1a5b   :  { %v6420_v4 = vpop.f32.mrf.mxu0 }
0x1a5c   :  { %v8103_v15 = vadd.f32 %v6420_v4, %v3552_v50 }
0x1a5d   :  { %v3810_v16 = vpop.f32.mrf.mxu0 }
0x1a5e   :  { %v8105_v61 = vadd.f32 %v3810_v16, %v3551_v14 }
0x1a90   :  { %v6423_v11 = vpop.f32.mrf.mxu0 }
0x1a91   :  { %v8107_v57 = vadd.f32 %v6423_v11, %v3554_v3 }
0x1a92   :  { %v3820_v18 = vpop.f32.mrf.mxu0 }
0x1a93   :  { %v8109_v42 = vadd.f32 %v3820_v18, %v3553_v17 }
0x1a94   :  { %v6434_v44 = vpop.f32.mrf.mxu0 }
0x1a95   :  { %v3953_v8 = vsel %vm720_vm6, %v6434_v44, -inf }
0x1a96   :  { %3954 = vmax.xlane.f32.xlu1 %v3953_v8  ;;  %v3931_v24 = vpop.f32.mrf.mxu0 }
0x1a97   :  { %v3950_v19 = vsel %vm720_vm6, %v3931_v24, -inf }
0x1a98   :  { %3951 = vmax.xlane.f32.xlu0 %v3950_v19  ;;  %v6437_v20 = vpop.f32.mrf.mxu0 }
0x1a99   :  { %v3959_v21 = vsel %vm730_vm7, %v6437_v20, -inf }
0x1a9a   :  { %v3941_v32 = vpop.f32.mrf.mxu0 }
0x1a9b   :  { %v3956_v33 = vsel %vm720_vm6, %v3941_v32, -inf }
0x1a9c   :  { %3960 = vmax.xlane.f32.xlu0 %v3959_v21 }
0x1aa0   :  { %3957 = vmax.xlane.f32.xlu0 %v3956_v33 }
0x1aa7   :  { %4120 = vrot.lane.b32.xlu1 %v7928_v55, %s7033_s7 }
0x1ab6   :  { %4122 = vrot.lane.b32.xlu0 %v7922_v26, %s7033_s7 }
0x1b1f   :  { %v3955_v34 = vpop.xlane.xlu1 %3954 }
0x1b20   :  { %v3963_v35 = vsub.f32 %v6434_v44, %v3955_v34 }
0x1b21   :  { %v3952_v1 = vpop.xlane.xlu0 %3951 }
0x1b22   :  { %v3968_v37 = vmul.f32 1.442695, %v3963_v35  ;;  %v3962_v63 = vsub.f32 %v3931_v24, %v3952_v1 }
0x1b23   :  { %v4121_v46 = vpop.permute.xlu1 %4120 }
0x1b24   :  { %6790 = vpow2.f32 %v3968_v37  ;;  %v3966_v38 = vmul.f32 1.442695, %v3962_v63 }
0x1b25   :  { %v3961_v12 = vpop.xlane.xlu0 %3960 }
0x1b26   :  { %6792 = vpow2.f32 %v3966_v38  ;;  %v3965_v36 = vsub.f32 %v6437_v20, %v3961_v12 }
0x1b28   :  { %v3972_v54 = vmul.f32 1.442695, %v3965_v36 }
0x1b29   :  { %v3958_v59 = vpop.xlane.xlu0 %3957 }
0x1b2a   :  { %v3964_v27 = vsub.f32 %v3941_v32, %v3958_v59  ;;  %6794 = vpow2.f32 %v3972_v54 }
0x1b2c   :  { %v3970_v56 = vmul.f32 1.442695, %v3964_v27 }
0x1b2d   :  { %v4123_v10 = vpop.permute.xlu0 %4122 }
0x1b2e   :  { %6452 = vmatprep.subr.msk.mxu1 %vm618_vm5, %v4123_v10  ;;  %6796 = vpow2.f32 %v3970_v56 }
0x1b31   :  { %v6791_v25 = vpop.eup %6790 }
0x1b32   :  { %v3977_v9 = vsel %vm720_vm6, %v6791_v25, 0.0 }
0x1b33   :  { %v6793_v45 = vpop.eup %6792  ;;  %3978 = vadd.xlane.f32.xlu0 %v3977_v9 }
0x1b34   :  { %v3974_v6 = vsel %vm720_vm6, %v6793_v45, 0.0 }
0x1b35   :  { %3975 = vadd.xlane.f32.xlu1 %v3974_v6 }
0x1b37   :  { %v6795_v31 = vpop.eup %6794 }
0x1b38   :  { %v3983_v40 = vsel %vm730_vm7, %v6795_v31, 0.0 }
0x1b3b   :  { %v6797_v39 = vpop.eup %6796 }
0x1b3c   :  { %v3980_v43 = vsel %vm720_vm6, %v6797_v39, 0.0 }
0x1b46   :  { %4116 = vrot.lane.b32.xlu1 %v7903_v47, %s7033_s7 }
0x1b49   :  { %4118 = vrot.lane.b32.xlu0 %v7899_v41, %s7033_s7 }
0x1b68   :  { %3984 = vadd.xlane.f32.xlu0 %v3983_v40 }
0x1b6a   :  { %3981 = vadd.xlane.f32.xlu1 %v3980_v43 }
0x1b7b   :  { %4110 = vrot.lane.b32.xlu1 %v7899_v41, %s7034_s19 }
0x1b7e   :  { %4108 = vrot.lane.b32.xlu0 %v7903_v47, %s7034_s19 }
0x1b7f   :  { %4114 = vrot.lane.b32.xlu1 %v7922_v26, %s7034_s19 }
0x1b82   :  { %4112 = vrot.lane.b32.xlu0 %v7928_v55, %s7034_s19 }
0x1b83   :  { %4275 = vrot.lane.b32.xlu1 %v7932_v29, %s7035_s22 }
0x1b86   :  { %4273 = vrot.lane.b32.xlu0 %v7920_v53, %s7035_s22 }
0x1b87   :  { %4271 = vrot.lane.b32.xlu1 %v7916_v28, %s7035_s22 }
0x1b8b   :  { %4269 = vrot.lane.b32.xlu1 %v7912_v62, %s7035_s22 }
0x1bbc   :  { %v3979_v22 = vpop.xlane.xlu0 %3978 }
0x1bbd   :  { %6798 = vrcp.f32 %v3979_v22 }
0x1bbe   :  { %v3976_v23 = vpop.xlane.xlu1 %3975 }
0x1bbf   :  { %6800 = vrcp.f32 %v3976_v23 }
0x1bc0   :  { %v4119_v28 = vpop.permute.xlu0 %4118 }
0x1bc2   :  { %v4117_v62 = vpop.permute.xlu1 %4116 }
0x1bca   :  { %v6799_v30 = vpop.eup %6798 }
0x1bcb   :  { %v3991_v60 = vmul.f32 %v6799_v30, %v6791_v25 }
0x1bcc   :  { %v6801_v7 = vpop.eup %6800 }
0x1bcd   :  { %v3990_v58 = vmul.f32 %v6801_v7, %v6793_v45 }
0x1bcf   :  { %6446 = vmatprep.mubr.msk.f32.mxu1 %vm720_vm6, %v3990_v58 }
0x1bd0   :  { %6447 = vmatmul.mubr.msk.f32.vlgmr.msra.gmra.mxu1 %vm720_vm6, %v3991_v60 }
0x1bd1   :  { %6453 = vmatpush3.xpose.msk.msra.mxu1 %vm618_vm5, %v4123_v10 }
0x1bd2   :  { %6454 = vmatprep.subr.msk.mxu1 %vm618_vm5, %v4121_v46 }
0x1bd5   :  { %6455 = vmatpush3.xpose.msk.msra.mxu1 %vm618_vm5, %v4121_v46 }
0x1bd6   :  { %6456 = vmatprep.subr.msk.mxu1 %vm618_vm5, %v4119_v28 }
0x1bd9   :  { %6457 = vmatpush3.xpose.msk.msra.mxu1 %vm618_vm5, %v4119_v28 }
0x1bda   :  { %6458 = vmatprep.subr.msk.mxu1 %vm618_vm5, %v4117_v62 }
0x1bdd   :  { %6459 = vmatpush3.xpose.msk.msra.mxu1 %vm618_vm5, %v4117_v62 }
0x1bde   :  { %6494 = vmatprep.subr.msk.mxu1 %vm419_vm4, %v8098_v13 }
0x1bf1   :  { %v3985_v53 = vpop.xlane.xlu0 %3984 }
0x1bf2   :  { %6802 = vrcp.f32 %v3985_v53 }
0x1bf3   :  { %v3982_v29 = vpop.xlane.xlu1 %3981 }
0x1bf4   :  { %6804 = vrcp.f32 %v3982_v29 }
0x1bf5   :  { %v4109_v2 = vpop.permute.xlu0 %4108 }
0x1bf7   :  { %v4111_v5 = vpop.permute.xlu1 %4110 }
0x1bf9   :  { %v4113_v48 = vpop.permute.xlu0 %4112 }
0x1bfb   :  { %v4115_v50 = vpop.permute.xlu1 %4114 }
0x1bfd   :  { %v4274_v3 = vpop.permute.xlu0 %4273 }
0x1bff   :  { %v4276_v4 = vpop.permute.xlu1 %4275  ;;  %v6803_v14 = vpop.eup %6802 }
0x1c00   :  { %6466 = vmatprep.subr.msk.mxu0 %vm419_vm4, %v4276_v4  ;;  %v3993_v18 = vmul.f32 %v6803_v14, %v6795_v31 }
0x1c01   :  { %v6805_v16 = vpop.eup %6804  ;;  %6467 = vmatpush3.msk.msra.mxu0 %vm419_vm4, %v4276_v4 }
0x1c02   :  { %6468 = vmatprep.subr.mxu0 %v4274_v3  ;;  %v3992_v11 = vmul.f32 %v6805_v16, %v6797_v39 }
0x1c03   :  { %v4272_v17 = vpop.permute.xlu1 %4271  ;;  %6469 = vmatpush3.msra.mxu0 %v4274_v3 }
0x1c04   :  { %6449 = vmatprep.mubr.msk.f32.mxu1 %vm720_vm6, %v3992_v11  ;;  %6470 = vmatprep.subr.mxu0 %v4272_v17 }
0x1c05   :  { %6450 = vmatmul.mubr.msk.f32.gmra.mxu1 %vm720_vm6, %v3993_v18  ;;  %6471 = vmatpush3.msra.mxu0 %v4272_v17 }
0x1c06   :  { %6460 = vmatprep.mubr.msk.f32.mxu1 %vm618_vm5, %v4109_v2 }
0x1c07   :  { %v4270_v44 = vpop.permute.xlu1 %4269 }
0x1c08   :  { %6472 = vmatprep.subr.mxu0 %v4270_v44 }
0x1c09   :  { %6461 = vmatmul.mubr.msk.f32.vlgmr.msra.gmra.mxu1 %vm618_vm5, %v4111_v5  ;;  %6473 = vmatpush3.msra.mxu0 %v4270_v44 }
0x1c0a   :  { %6495 = vmatpush3.msk.msra.mxu1 %vm419_vm4, %v8098_v13  ;;  %6463 = vmatprep.mubr.msk.f32.mxu1 %vm618_vm5, %v4113_v48 }
0x1c0b   :  { %6496 = vmatprep.subr.mxu1 %v7926_v0 }
0x1c0c   :  { %6497 = vmatpush3.msra.mxu1 %v7926_v0 }
0x1c0d   :  { %6498 = vmatprep.subr.mxu1 %v7918_v52  ;;  %6464 = vmatmul.mubr.msk.f32.gmra.mxu1 %vm618_vm5, %v4115_v50 }
0x1c0e   :  { %6499 = vmatpush3.msra.mxu1 %v7918_v52 }
0x1c0f   :  { %6500 = vmatprep.subr.mxu1 %v7914_v49 }
0x1c10   :  { %6501 = vmatpush3.msra.mxu1 %v7914_v49 }
0x1c90   :  { %v6448_v8 = vpop.f32.mrf.mxu1 }
0x1c91   :  { %v8172_v24 = vadd.f32 %v6448_v8, %v8103_v15 }
0x1c92   :  { %v4085_v19 = vpop.f32.mrf.mxu1 }
0x1c93   :  { %v8175_v20 = vadd.f32 %v4085_v19, %v8105_v61 }
0x1cc5   :  { %v6451_v21 = vpop.f32.mrf.mxu1 }
0x1cc6   :  { %v8178_v32 = vadd.f32 %v6451_v21, %v8107_v57 }
0x1cc7   :  { %v4095_v33 = vpop.f32.mrf.mxu1 }
0x1cc8   :  { %v8181_v34 = vadd.f32 %v4095_v33, %v8109_v42 }
0x1cc9   :  { %v6462_v35 = vpop.f32.mrf.mxu1 }
0x1cca   :  { %v4228_v1 = vsel %vm720_vm6, %v6462_v35, -inf }
0x1ccb   :  { %4229 = vmax.xlane.f32.xlu1 %v4228_v1  ;;  %v4206_v37 = vpop.f32.mrf.mxu1 }
0x1ccc   :  { %v4225_v15 = vsel %vm720_vm6, %v4206_v37, -inf }
0x1ccd   :  { %4226 = vmax.xlane.f32.xlu0 %v4225_v15  ;;  %v6465_v63 = vpop.f32.mrf.mxu1 }
0x1cce   :  { %v4234_v61 = vsel %vm730_vm7, %v6465_v63, -inf }
0x1ccf   :  { %v4216_v38 = vpop.f32.mrf.mxu1 }
0x1cd0   :  { %v4231_v57 = vsel %vm720_vm6, %v4216_v38, -inf }
0x1cd1   :  { %4235 = vmax.xlane.f32.xlu0 %v4234_v61 }
0x1cd5   :  { %4232 = vmax.xlane.f32.xlu0 %v4231_v57 }
0x1cdc   :  { %4395 = vrot.lane.b32.xlu1 %v7928_v55, %s7036_s23 }
0x1ceb   :  { %4397 = vrot.lane.b32.xlu0 %v7922_v26, %s7036_s23 }
0x1d54   :  { %v4230_v42 = vpop.xlane.xlu1 %4229 }
0x1d55   :  { %v4238_v12 = vsub.f32 %v6462_v35, %v4230_v42 }
0x1d56   :  { %v4227_v59 = vpop.xlane.xlu0 %4226 }
0x1d57   :  { %v4243_v10 = vmul.f32 1.442695, %v4238_v12  ;;  %v4237_v25 = vsub.f32 %v4206_v37, %v4227_v59 }
0x1d58   :  { %v4396_v58 = vpop.permute.xlu1 %4395 }
0x1d59   :  { %6806 = vpow2.f32 %v4243_v10  ;;  %v4241_v9 = vmul.f32 1.442695, %v4237_v25 }
0x1d5a   :  { %v4236_v45 = vpop.xlane.xlu0 %4235 }
0x1d5b   :  { %6808 = vpow2.f32 %v4241_v9  ;;  %v4240_v39 = vsub.f32 %v6465_v63, %v4236_v45 }
0x1d5d   :  { %v4247_v43 = vmul.f32 1.442695, %v4240_v39 }
0x1d5e   :  { %v4233_v6 = vpop.xlane.xlu0 %4232 }
0x1d5f   :  { %v4239_v40 = vsub.f32 %v4216_v38, %v4233_v6  ;;  %6810 = vpow2.f32 %v4247_v43 }
0x1d61   :  { %v4245_v46 = vmul.f32 1.442695, %v4239_v40 }
0x1d62   :  { %v4398_v36 = vpop.permute.xlu0 %4397 }
0x1d63   :  { %6480 = vmatprep.subr.msk.mxu0 %vm618_vm5, %v4398_v36  ;;  %6812 = vpow2.f32 %v4245_v46 }
0x1d66   :  { %v6807_v27 = vpop.eup %6806 }
0x1d67   :  { %v4252_v54 = vsel %vm720_vm6, %v6807_v27, 0.0 }
0x1d68   :  { %v6809_v56 = vpop.eup %6808  ;;  %4253 = vadd.xlane.f32.xlu0 %v4252_v54 }
0x1d69   :  { %v4249_v31 = vsel %vm720_vm6, %v6809_v56, 0.0 }
0x1d6a   :  { %4250 = vadd.xlane.f32.xlu1 %v4249_v31 }
0x1d6c   :  { %v6811_v22 = vpop.eup %6810 }
0x1d6d   :  { %v4258_v30 = vsel %vm730_vm7, %v6811_v22, 0.0 }
0x1d70   :  { %v6813_v23 = vpop.eup %6812 }
0x1d71   :  { %v4255_v7 = vsel %vm720_vm6, %v6813_v23, 0.0 }
0x1d7b   :  { %4391 = vrot.lane.b32.xlu1 %v7903_v47, %s7036_s23 }
0x1d7e   :  { %4393 = vrot.lane.b32.xlu0 %v7899_v41, %s7036_s23 }
0x1d9d   :  { %4259 = vadd.xlane.f32.xlu0 %v4258_v30 }
0x1d9f   :  { %4256 = vadd.xlane.f32.xlu1 %v4255_v7 }
0x1db0   :  { %4385 = vrot.lane.b32.xlu1 %v7899_v41, %s7037_s1 }
0x1db3   :  { %4383 = vrot.lane.b32.xlu0 %v7903_v47, %s7037_s1 }
0x1db4   :  { %4389 = vrot.lane.b32.xlu1 %v7922_v26, %s7037_s1 }
0x1db7   :  { %4387 = vrot.lane.b32.xlu0 %v7928_v55, %s7037_s1 }
0x1df1   :  { %v4254_v60 = vpop.xlane.xlu0 %4253 }
0x1df2   :  { %6814 = vrcp.f32 %v4254_v60 }
0x1df3   :  { %v4251_v28 = vpop.xlane.xlu1 %4250 }
0x1df4   :  { %6816 = vrcp.f32 %v4251_v28 }
0x1df5   :  { %v4394_v5 = vpop.permute.xlu0 %4393 }
0x1df7   :  { %v4392_v48 = vpop.permute.xlu1 %4391 }
0x1dff   :  { %v6815_v62 = vpop.eup %6814 }
0x1e00   :  { %v4266_v2 = vmul.f32 %v6815_v62, %v6807_v27 }
0x1e01   :  { %v6817_v53 = vpop.eup %6816 }
0x1e02   :  { %v4265_v29 = vmul.f32 %v6817_v53, %v6809_v56 }
0x1e04   :  { %6474 = vmatprep.mubr.msk.f32.mxu0 %vm720_vm6, %v4265_v29 }
0x1e05   :  { %6475 = vmatmul.mubr.msk.f32.vlgmr.msra.gmra.mxu0 %vm720_vm6, %v4266_v2 }
0x1e06   :  { %6481 = vmatpush3.xpose.msk.msra.mxu0 %vm618_vm5, %v4398_v36 }
0x1e07   :  { %6482 = vmatprep.subr.msk.mxu0 %vm618_vm5, %v4396_v58 }
0x1e0a   :  { %6483 = vmatpush3.xpose.msk.msra.mxu0 %vm618_vm5, %v4396_v58 }
0x1e0b   :  { %6484 = vmatprep.subr.msk.mxu0 %vm618_vm5, %v4394_v5 }
0x1e0e   :  { %6485 = vmatpush3.xpose.msk.msra.mxu0 %vm618_vm5, %v4394_v5 }
0x1e0f   :  { %6486 = vmatprep.subr.msk.mxu0 %vm618_vm5, %v4392_v48 }
0x1e12   :  { %6487 = vmatpush3.xpose.msk.msra.mxu0 %vm618_vm5, %v4392_v48 }
0x1e26   :  { %v4260_v50 = vpop.xlane.xlu0 %4259 }
0x1e27   :  { %6818 = vrcp.f32 %v4260_v50 }
0x1e28   :  { %v4257_v4 = vpop.xlane.xlu1 %4256 }
0x1e29   :  { %6820 = vrcp.f32 %v4257_v4 }
0x1e2a   :  { %v4384_v11 = vpop.permute.xlu0 %4383 }
0x1e2c   :  { %v4386_v18 = vpop.permute.xlu1 %4385 }
0x1e2e   :  { %v4388_v44 = vpop.permute.xlu0 %4387 }
0x1e30   :  { %v4390_v8 = vpop.permute.xlu1 %4389 }
0x1e34   :  { %v6819_v14 = vpop.eup %6818 }
0x1e35   :  { %v4268_v17 = vmul.f32 %v6819_v14, %v6811_v22 }
0x1e36   :  { %v6821_v16 = vpop.eup %6820 }
0x1e37   :  { %v4267_v3 = vmul.f32 %v6821_v16, %v6813_v23 }
0x1e39   :  { %6477 = vmatprep.mubr.msk.f32.mxu0 %vm720_vm6, %v4267_v3 }
0x1e3a   :  { %6478 = vmatmul.mubr.msk.f32.gmra.mxu0 %vm720_vm6, %v4268_v17 }
0x1e3b   :  { %6488 = vmatprep.mubr.msk.f32.mxu0 %vm618_vm5, %v4384_v11 }
0x1e3e   :  { %6489 = vmatmul.mubr.msk.f32.vlgmr.msra.gmra.mxu0 %vm618_vm5, %v4386_v18 }
0x1e3f   :  { %6491 = vmatprep.mubr.msk.f32.mxu0 %vm618_vm5, %v4388_v44 }
0x1e42   :  { %6492 = vmatmul.mubr.msk.f32.gmra.mxu0 %vm618_vm5, %v4390_v8 }
0x1ec5   :  { %v6476_v19 = vpop.f32.mrf.mxu0 }
0x1ec6   :  { %v8224_v21 = vadd.f32 %v6476_v19, %v8172_v24 }
0x1ec7   :  { %v4360_v33 = vpop.f32.mrf.mxu0 }
0x1ec8   :  { %v8227_v35 = vadd.f32 %v4360_v33, %v8175_v20 }
0x1efa   :  { %v6479_v1 = vpop.f32.mrf.mxu0 }
0x1efb   :  { %v8230_v37 = vadd.f32 %v6479_v1, %v8178_v32 }
0x1efc   :  { %v4370_v15 = vpop.f32.mrf.mxu0 }
0x1efd   :  { %v8233_v63 = vadd.f32 %v4370_v15, %v8181_v34 }
0x1efe   :  { %v6490_v61 = vpop.f32.mrf.mxu0 }
0x1eff   :  { %v4503_v38 = vsel %vm720_vm6, %v6490_v61, -inf }
0x1f00   :  { %4504 = vmax.xlane.f32.xlu1 %v4503_v38  ;;  %v4481_v57 = vpop.f32.mrf.mxu0 }
0x1f01   :  { %v4500_v24 = vsel %vm720_vm6, %v4481_v57, -inf }
0x1f02   :  { %4501 = vmax.xlane.f32.xlu0 %v4500_v24  ;;  %v6493_v42 = vpop.f32.mrf.mxu0 }
0x1f03   :  { %v4509_v32 = vsel %vm730_vm7, %v6493_v42, -inf }
0x1f04   :  { %v4491_v12 = vpop.f32.mrf.mxu0 }
0x1f05   :  { %v4506_v20 = vsel %vm720_vm6, %v4491_v12, -inf }
0x1f06   :  { %4507 = vmax.xlane.f32.xlu0 %v4506_v20 }
0x1f0a   :  { %4510 = vmax.xlane.f32.xlu0 %v4509_v32 }
0x1f11   :  { %4662 = vrot.lane.b32.xlu1 %v7922_v26, %s7038_s24 }
0x1f15   :  { %4658 = vrot.lane.b32.xlu1 %v7899_v41, %s7038_s24 }
0x1f89   :  { %v4505_v34 = vpop.xlane.xlu1 %4504 }
0x1f8a   :  { %v4513_v59 = vsub.f32 %v6490_v61, %v4505_v34 }
0x1f8b   :  { %v4502_v10 = vpop.xlane.xlu0 %4501 }
0x1f8c   :  { %v4518_v25 = vmul.f32 1.442695, %v4513_v59  ;;  %v4512_v9 = vsub.f32 %v4481_v57, %v4502_v10 }
0x1f8d   :  { %v4663_v45 = vpop.permute.xlu1 %4662 }
0x1f8e   :  { %6822 = vpow2.f32 %v4518_v25  ;;  %v4516_v6 = vmul.f32 1.442695, %v4512_v9  ;;  %6508 = vmatprep.subr.msk.mxu1 %vm618_vm5, %v4663_v45 }
0x1f8f   :  { %v4508_v31 = vpop.xlane.xlu0 %4507 }
0x1f90   :  { %6824 = vpow2.f32 %v4516_v6  ;;  %v4514_v43 = vsub.f32 %v4491_v12, %v4508_v31 }
0x1f91   :  { %v4659_v60 = vpop.permute.xlu1 %4658 }
0x1f92   :  { %v4520_v22 = vmul.f32 1.442695, %v4514_v43 }
0x1f93   :  { %v4511_v39 = vpop.xlane.xlu0 %4510 }
0x1f94   :  { %v4515_v40 = vsub.f32 %v6493_v42, %v4511_v39 }
0x1f96   :  { %v4522_v46 = vmul.f32 1.442695, %v4515_v40 }
0x1f98   :  { %6826 = vpow2.f32 %v4522_v46 }
0x1f99   :  { %6828 = vpow2.f32 %v4520_v22 }
0x1f9b   :  { %v6823_v36 = vpop.eup %6822 }
0x1f9c   :  { %v4527_v27 = vsel %vm720_vm6, %v6823_v36, 0.0 }
0x1f9d   :  { %v6825_v54 = vpop.eup %6824  ;;  %4528 = vadd.xlane.f32.xlu0 %v4527_v27 }
0x1f9e   :  { %v4524_v56 = vsel %vm720_vm6, %v6825_v54, 0.0 }
0x1f9f   :  { %4525 = vadd.xlane.f32.xlu1 %v4524_v56 }
0x1fa5   :  { %v6827_v23 = vpop.eup %6826 }
0x1fa6   :  { %v6829_v30 = vpop.eup %6828  ;;  %v4533_v7 = vsel %vm730_vm7, %v6827_v23, 0.0 }
0x1fa7   :  { %v4530_v58 = vsel %vm720_vm6, %v6829_v30, 0.0 }
0x1fb0   :  { %4656 = vrot.lane.b32.xlu1 %v7903_v47, %s7038_s24 }
0x1fb3   :  { %4660 = vrot.lane.b32.xlu0 %v7928_v55, %s7038_s24 }
0x1fd2   :  { %4534 = vadd.xlane.f32.xlu0 %v4533_v7 }
0x1fd4   :  { %4531 = vadd.xlane.f32.xlu1 %v4530_v58 }
0x1fe5   :  { %4650 = vrot.lane.b32.xlu1 %v7899_v41, %s7039_s6 }
0x1fe8   :  { %4648 = vrot.lane.b32.xlu0 %v7903_v47, %s7039_s6 }
0x1fe9   :  { %4654 = vrot.lane.b32.xlu1 %v7922_v26, %s7039_s6 }
0x1fec   :  { %4652 = vrot.lane.b32.xlu0 %v7928_v55, %s7039_s6 }
0x1fed   :  { %4818 = vrot.lane.b32.xlu1 %v8098_v13, %s7027_s12 }
0x1ff0   :  { %4816 = vrot.lane.b32.xlu0 %v7926_v0, %s7027_s12 }
0x1ff1   :  { %4814 = vrot.lane.b32.xlu1 %v7918_v52, %s7027_s12 }
0x1ff5   :  { %4812 = vrot.lane.b32.xlu1 %v7914_v49, %s7027_s12 }
0x2026   :  { %v4529_v28 = vpop.xlane.xlu0 %4528 }
0x2027   :  { %6830 = vrcp.f32 %v4529_v28 }
0x2028   :  { %v4526_v62 = vpop.xlane.xlu1 %4525 }
0x2029   :  { %6832 = vrcp.f32 %v4526_v62 }
0x202a   :  { %v4661_v48 = vpop.permute.xlu0 %4660 }
0x202c   :  { %v4657_v50 = vpop.permute.xlu1 %4656 }
0x2034   :  { %v6831_v53 = vpop.eup %6830 }
0x2035   :  { %v4541_v5 = vmul.f32 %v6831_v53, %v6823_v36 }
0x2036   :  { %v6833_v29 = vpop.eup %6832 }
0x2037   :  { %v4540_v2 = vmul.f32 %v6833_v29, %v6825_v54 }
0x2039   :  { %6502 = vmatprep.mubr.msk.f32.mxu1 %vm720_vm6, %v4540_v2 }
0x203a   :  { %6503 = vmatmul.mubr.msk.f32.vlgmr.msra.gmra.mxu1 %vm720_vm6, %v4541_v5 }
0x203b   :  { %6509 = vmatpush3.xpose.msk.msra.mxu1 %vm618_vm5, %v4663_v45 }
0x203c   :  { %6510 = vmatprep.subr.msk.mxu1 %vm618_vm5, %v4661_v48 }
0x203f   :  { %6511 = vmatpush3.xpose.msk.msra.mxu1 %vm618_vm5, %v4661_v48 }
0x2040   :  { %6512 = vmatprep.subr.msk.mxu1 %vm618_vm5, %v4659_v60 }
0x2043   :  { %6513 = vmatpush3.xpose.msk.msra.mxu1 %vm618_vm5, %v4659_v60 }
0x2044   :  { %6514 = vmatprep.subr.msk.mxu1 %vm618_vm5, %v4657_v50 }
0x2047   :  { %6515 = vmatpush3.xpose.msk.msra.mxu1 %vm618_vm5, %v4657_v50 }
0x205b   :  { %v4535_v4 = vpop.xlane.xlu0 %4534 }
0x205c   :  { %6834 = vrcp.f32 %v4535_v4 }
0x205d   :  { %v4532_v14 = vpop.xlane.xlu1 %4531 }
0x205e   :  { %6836 = vrcp.f32 %v4532_v14 }
0x205f   :  { %v4649_v16 = vpop.permute.xlu0 %4648 }
0x2061   :  { %v4651_v3 = vpop.permute.xlu1 %4650 }
0x2063   :  { %v4653_v11 = vpop.permute.xlu0 %4652 }
0x2065   :  { %v4655_v17 = vpop.permute.xlu1 %4654 }
0x2067   :  { %v4817_v19 = vpop.permute.xlu0 %4816 }
0x2069   :  { %v4819_v18 = vpop.permute.xlu1 %4818  ;;  %v6835_v44 = vpop.eup %6834 }
0x206a   :  { %6522 = vmatprep.subr.msk.mxu0 %vm419_vm4, %v4819_v18  ;;  %v4543_v15 = vmul.f32 %v6835_v44, %v6827_v23 }
0x206b   :  { %v6837_v8 = vpop.eup %6836  ;;  %6523 = vmatpush3.msk.msra.mxu0 %vm419_vm4, %v4819_v18 }
0x206c   :  { %6524 = vmatprep.subr.mxu0 %v4817_v19  ;;  %v4542_v33 = vmul.f32 %v6837_v8, %v6829_v30 }
0x206d   :  { %v4815_v1 = vpop.permute.xlu1 %4814  ;;  %6525 = vmatpush3.msra.mxu0 %v4817_v19 }
0x206e   :  { %6505 = vmatprep.mubr.msk.f32.mxu1 %vm720_vm6, %v4542_v33  ;;  %6526 = vmatprep.subr.mxu0 %v4815_v1 }
0x206f   :  { %6506 = vmatmul.mubr.msk.f32.gmra.mxu1 %vm720_vm6, %v4543_v15  ;;  %6527 = vmatpush3.msra.mxu0 %v4815_v1 }
0x2070   :  { %6516 = vmatprep.mubr.msk.f32.mxu1 %vm618_vm5, %v4649_v16 }
0x2071   :  { %v4813_v61 = vpop.permute.xlu1 %4812 }
0x2072   :  { %6528 = vmatprep.subr.mxu0 %v4813_v61 }
0x2073   :  { %6517 = vmatmul.mubr.msk.f32.vlgmr.msra.gmra.mxu1 %vm618_vm5, %v4651_v3  ;;  %6529 = vmatpush3.msra.mxu0 %v4813_v61 }
0x2074   :  { %6519 = vmatprep.mubr.msk.f32.mxu1 %vm618_vm5, %v4653_v11 }
0x2077   :  { %6520 = vmatmul.mubr.msk.f32.gmra.mxu1 %vm618_vm5, %v4655_v17 }
0x20fa   :  { %v6504_v38 = vpop.f32.mrf.mxu1 }
0x20fb   :  { %v8286_v57 = vadd.f32 %v6504_v38, %v8224_v21 }
0x20fc   :  { %v4625_v24 = vpop.f32.mrf.mxu1 }
0x20fd   :  { %v8289_v42 = vadd.f32 %v4625_v24, %v8227_v35 }
0x212f   :  { %v6507_v12 = vpop.f32.mrf.mxu1 }
0x2130   :  { %v8292_v20 = vadd.f32 %v6507_v12, %v8230_v37 }
0x2131   :  { %v4635_v32 = vpop.f32.mrf.mxu1 }
0x2132   :  { %v8295_v34 = vadd.f32 %v4635_v32, %v8233_v63 }
0x2133   :  { %v6518_v59 = vpop.f32.mrf.mxu1 }
0x2134   :  { %v4768_v10 = vsel %vm720_vm6, %v6518_v59, -inf }
0x2135   :  { %4769 = vmax.xlane.f32.xlu1 %v4768_v10  ;;  %v4746_v25 = vpop.f32.mrf.mxu1 }
0x2136   :  { %v4765_v21 = vsel %vm720_vm6, %v4746_v25, -inf }
0x2137   :  { %4766 = vmax.xlane.f32.xlu0 %v4765_v21  ;;  %v6521_v9 = vpop.f32.mrf.mxu1 }
0x2138   :  { %v4774_v35 = vsel %vm730_vm7, %v6521_v9, -inf }
0x2139   :  { %v4756_v45 = vpop.f32.mrf.mxu1 }
0x213a   :  { %v4771_v37 = vsel %vm720_vm6, %v4756_v45, -inf }
0x213b   :  { %4775 = vmax.xlane.f32.xlu0 %v4774_v35 }
0x213f   :  { %4772 = vmax.xlane.f32.xlu0 %v4771_v37 }
0x2146   :  { %4938 = vrot.lane.b32.xlu1 %v7928_v55, %s7040_s8 }
0x2155   :  { %4940 = vrot.lane.b32.xlu0 %v7922_v26, %s7040_s8 }
0x21be   :  { %v4770_v63 = vpop.xlane.xlu1 %4769 }
0x21bf   :  { %v4778_v6 = vsub.f32 %v6518_v59, %v4770_v63 }
0x21c0   :  { %v4767_v36 = vpop.xlane.xlu0 %4766 }
0x21c1   :  { %v4783_v27 = vmul.f32 1.442695, %v4778_v6  ;;  %v4777_v54 = vsub.f32 %v4746_v25, %v4767_v36 }
0x21c2   :  { %v4939_v2 = vpop.permute.xlu1 %4938 }
0x21c3   :  { %6838 = vpow2.f32 %v4783_v27  ;;  %v4781_v56 = vmul.f32 1.442695, %v4777_v54 }
0x21c4   :  { %v4776_v31 = vpop.xlane.xlu0 %4775 }
0x21c5   :  { %6840 = vpow2.f32 %v4781_v56  ;;  %v4780_v30 = vsub.f32 %v6521_v9, %v4776_v31 }
0x21c7   :  { %v4787_v58 = vmul.f32 1.442695, %v4780_v30 }
0x21c8   :  { %v4773_v39 = vpop.xlane.xlu0 %4772 }
0x21c9   :  { %v4779_v7 = vsub.f32 %v4756_v45, %v4773_v39  ;;  %6842 = vpow2.f32 %v4787_v58 }
0x21cb   :  { %v4785_v60 = vmul.f32 1.442695, %v4779_v7 }
0x21cc   :  { %v4941_v40 = vpop.permute.xlu0 %4940 }
0x21cd   :  { %6536 = vmatprep.subr.msk.mxu0 %vm618_vm5, %v4941_v40  ;;  %6844 = vpow2.f32 %v4785_v60 }
0x21d0   :  { %v6839_v43 = vpop.eup %6838 }
0x21d1   :  { %v4792_v46 = vsel %vm720_vm6, %v6839_v43, 0.0 }
0x21d2   :  { %v6841_v22 = vpop.eup %6840  ;;  %4793 = vadd.xlane.f32.xlu0 %v4792_v46 }
0x21d3   :  { %v4789_v23 = vsel %vm720_vm6, %v6841_v22, 0.0 }
0x21d4   :  { %4790 = vadd.xlane.f32.xlu1 %v4789_v23 }
0x21d6   :  { %v6843_v28 = vpop.eup %6842 }
0x21d7   :  { %v4798_v53 = vsel %vm730_vm7, %v6843_v28, 0.0 }
0x21da   :  { %v6845_v62 = vpop.eup %6844 }
0x21db   :  { %v4795_v29 = vsel %vm720_vm6, %v6845_v62, 0.0 }
0x21e5   :  { %4934 = vrot.lane.b32.xlu1 %v7903_v47, %s7040_s8 }
0x21e8   :  { %4936 = vrot.lane.b32.xlu0 %v7899_v41, %s7040_s8 }
0x2207   :  { %4799 = vadd.xlane.f32.xlu0 %v4798_v53 }
0x2209   :  { %4796 = vadd.xlane.f32.xlu1 %v4795_v29 }
0x221a   :  { %4928 = vrot.lane.b32.xlu1 %v7899_v41, %s7041_s20 }
0x221d   :  { %4926 = vrot.lane.b32.xlu0 %v7903_v47, %s7041_s20 }
0x221e   :  { %4932 = vrot.lane.b32.xlu1 %v7922_v26, %s7041_s20 }
0x2221   :  { %4930 = vrot.lane.b32.xlu0 %v7928_v55, %s7041_s20 }
0x2222   :  { %5093 = vrot.lane.b32.xlu1 %v8098_v13, %s7032_s16 }
0x2225   :  { %5091 = vrot.lane.b32.xlu0 %v7926_v0, %s7032_s16 }
0x2226   :  { %5089 = vrot.lane.b32.xlu1 %v7918_v52, %s7032_s16 }
0x222a   :  { %5087 = vrot.lane.b32.xlu1 %v7914_v49, %s7032_s16 }
0x225b   :  { %v4794_v5 = vpop.xlane.xlu0 %4793 }
0x225c   :  { %6846 = vrcp.f32 %v4794_v5 }
0x225d   :  { %v4791_v48 = vpop.xlane.xlu1 %4790 }
0x225e   :  { %6848 = vrcp.f32 %v4791_v48 }
0x225f   :  { %v4937_v3 = vpop.permute.xlu0 %4936 }
0x2261   :  { %v4935_v11 = vpop.permute.xlu1 %4934 }
0x2269   :  { %v6847_v50 = vpop.eup %6846 }
0x226a   :  { %v4806_v16 = vmul.f32 %v6847_v50, %v6839_v43 }
0x226b   :  { %v6849_v4 = vpop.eup %6848 }
0x226c   :  { %v4805_v14 = vmul.f32 %v6849_v4, %v6841_v22 }
0x226e   :  { %6530 = vmatprep.mubr.msk.f32.mxu0 %vm720_vm6, %v4805_v14 }
0x226f   :  { %6531 = vmatmul.mubr.msk.f32.vlgmr.msra.gmra.mxu0 %vm720_vm6, %v4806_v16 }
0x2270   :  { %6537 = vmatpush3.xpose.msk.msra.mxu0 %vm618_vm5, %v4941_v40 }
0x2271   :  { %6538 = vmatprep.subr.msk.mxu0 %vm618_vm5, %v4939_v2 }
0x2274   :  { %6539 = vmatpush3.xpose.msk.msra.mxu0 %vm618_vm5, %v4939_v2 }
0x2275   :  { %6540 = vmatprep.subr.msk.mxu0 %vm618_vm5, %v4937_v3 }
0x2278   :  { %6541 = vmatpush3.xpose.msk.msra.mxu0 %vm618_vm5, %v4937_v3 }
0x2279   :  { %6542 = vmatprep.subr.msk.mxu0 %vm618_vm5, %v4935_v11 }
0x227c   :  { %6543 = vmatpush3.xpose.msk.msra.mxu0 %vm618_vm5, %v4935_v11 }
0x2290   :  { %v4800_v17 = vpop.xlane.xlu0 %4799 }
0x2291   :  { %6850 = vrcp.f32 %v4800_v17 }
0x2292   :  { %v4797_v18 = vpop.xlane.xlu1 %4796 }
0x2293   :  { %6852 = vrcp.f32 %v4797_v18 }
0x2294   :  { %v4927_v44 = vpop.permute.xlu0 %4926 }
0x2296   :  { %v4929_v8 = vpop.permute.xlu1 %4928 }
0x2298   :  { %v4931_v19 = vpop.permute.xlu0 %4930 }
0x229a   :  { %v4933_v33 = vpop.permute.xlu1 %4932 }
0x229c   :  { %v5092_v38 = vpop.permute.xlu0 %5091 }
0x229e   :  { %v5094_v1 = vpop.permute.xlu1 %5093  ;;  %v6851_v15 = vpop.eup %6850 }
0x229f   :  { %6550 = vmatprep.subr.msk.mxu1 %vm419_vm4, %v5094_v1  ;;  %v4808_v32 = vmul.f32 %v6851_v15, %v6843_v28 }
0x22a0   :  { %v6853_v61 = vpop.eup %6852  ;;  %6551 = vmatpush3.msk.msra.mxu1 %vm419_vm4, %v5094_v1 }
0x22a1   :  { %6552 = vmatprep.subr.mxu1 %v5092_v38  ;;  %v4807_v24 = vmul.f32 %v6853_v61, %v6845_v62 }
0x22a2   :  { %v5090_v12 = vpop.permute.xlu1 %5089  ;;  %6553 = vmatpush3.msra.mxu1 %v5092_v38 }
0x22a3   :  { %6533 = vmatprep.mubr.msk.f32.mxu0 %vm720_vm6, %v4807_v24  ;;  %6554 = vmatprep.subr.mxu1 %v5090_v12 }
0x22a4   :  { %6534 = vmatmul.mubr.msk.f32.gmra.mxu0 %vm720_vm6, %v4808_v32  ;;  %6555 = vmatpush3.msra.mxu1 %v5090_v12 }
0x22a5   :  { %6544 = vmatprep.mubr.msk.f32.mxu0 %vm618_vm5, %v4927_v44 }
0x22a6   :  { %v5088_v59 = vpop.permute.xlu1 %5087 }
0x22a7   :  { %6556 = vmatprep.subr.mxu1 %v5088_v59 }
0x22a8   :  { %6545 = vmatmul.mubr.msk.f32.vlgmr.msra.gmra.mxu0 %vm618_vm5, %v4929_v8  ;;  %6557 = vmatpush3.msra.mxu1 %v5088_v59 }
0x22a9   :  { %6547 = vmatprep.mubr.msk.f32.mxu0 %vm618_vm5, %v4931_v19 }
0x22ac   :  { %6548 = vmatmul.mubr.msk.f32.gmra.mxu0 %vm618_vm5, %v4933_v33 }
0x232f   :  { %v6532_v10 = vpop.f32.mrf.mxu0 }
0x2330   :  { %v8348_v25 = vadd.f32 %v6532_v10, %v8286_v57 }
0x2331   :  { %v4903_v21 = vpop.f32.mrf.mxu0 }
0x2332   :  { %v8351_v9 = vadd.f32 %v4903_v21, %v8289_v42 }
0x2364   :  { %v6535_v35 = vpop.f32.mrf.mxu0 }
0x2365   :  { %v8354_v45 = vadd.f32 %v6535_v35, %v8292_v20 }
0x2366   :  { %v4913_v37 = vpop.f32.mrf.mxu0 }
0x2367   :  { %v8357_v63 = vadd.f32 %v4913_v37, %v8295_v34 }
0x2368   :  { %v6546_v6 = vpop.f32.mrf.mxu0 }
0x2369   :  { %v5046_v36 = vsel %vm720_vm6, %v6546_v6, -inf }
0x236a   :  { %5047 = vmax.xlane.f32.xlu1 %v5046_v36  ;;  %v5024_v27 = vpop.f32.mrf.mxu0 }
0x236b   :  { %v5043_v57 = vsel %vm720_vm6, %v5024_v27, -inf }
0x236c   :  { %5044 = vmax.xlane.f32.xlu0 %v5043_v57  ;;  %v6549_v54 = vpop.f32.mrf.mxu0 }
0x236d   :  { %v5052_v42 = vsel %vm730_vm7, %v6549_v54, -inf }
0x236e   :  { %v5034_v56 = vpop.f32.mrf.mxu0 }
0x236f   :  { %v5049_v20 = vsel %vm720_vm6, %v5034_v56, -inf }
0x2370   :  { %5053 = vmax.xlane.f32.xlu0 %v5052_v42 }
0x2374   :  { %5050 = vmax.xlane.f32.xlu0 %v5049_v20 }
0x237b   :  { %5213 = vrot.lane.b32.xlu1 %v7928_v55, %s7042_s21 }
0x238a   :  { %5215 = vrot.lane.b32.xlu0 %v7922_v26, %s7042_s21 }
0x23f3   :  { %v5048_v34 = vpop.xlane.xlu1 %5047 }
0x23f4   :  { %v5056_v31 = vsub.f32 %v6546_v6, %v5048_v34 }
0x23f5   :  { %v5045_v39 = vpop.xlane.xlu0 %5044 }
0x23f6   :  { %v5061_v40 = vmul.f32 1.442695, %v5056_v31  ;;  %v5055_v43 = vsub.f32 %v5024_v27, %v5045_v39 }
0x23f7   :  { %v5214_v14 = vpop.permute.xlu1 %5213 }
0x23f8   :  { %6854 = vpow2.f32 %v5061_v40  ;;  %v5059_v46 = vmul.f32 1.442695, %v5055_v43 }
0x23f9   :  { %v5054_v22 = vpop.xlane.xlu0 %5053 }
0x23fa   :  { %6856 = vpow2.f32 %v5059_v46  ;;  %v5058_v62 = vsub.f32 %v6549_v54, %v5054_v22 }
0x23fc   :  { %v5065_v29 = vmul.f32 1.442695, %v5058_v62 }
0x23fd   :  { %v5051_v23 = vpop.xlane.xlu0 %5050 }
0x23fe   :  { %v5057_v53 = vsub.f32 %v5034_v56, %v5051_v23  ;;  %6858 = vpow2.f32 %v5065_v29 }
0x2400   :  { %v5063_v2 = vmul.f32 1.442695, %v5057_v53 }
0x2401   :  { %v5216_v30 = vpop.permute.xlu0 %5215 }
0x2402   :  { %6564 = vmatprep.subr.msk.mxu1 %vm618_vm5, %v5216_v30  ;;  %6860 = vpow2.f32 %v5063_v2 }
0x2405   :  { %v6855_v7 = vpop.eup %6854 }
0x2406   :  { %v5070_v58 = vsel %vm720_vm6, %v6855_v7, 0.0 }
0x2407   :  { %v6857_v60 = vpop.eup %6856  ;;  %5071 = vadd.xlane.f32.xlu0 %v5070_v58 }
0x2408   :  { %v5067_v28 = vsel %vm720_vm6, %v6857_v60, 0.0 }
0x2409   :  { %5068 = vadd.xlane.f32.xlu1 %v5067_v28 }
0x240b   :  { %v6859_v5 = vpop.eup %6858 }
0x240c   :  { %v5076_v50 = vsel %vm730_vm7, %v6859_v5, 0.0 }
0x240f   :  { %v6861_v48 = vpop.eup %6860 }
0x2410   :  { %v5073_v4 = vsel %vm720_vm6, %v6861_v48, 0.0 }
0x241a   :  { %5209 = vrot.lane.b32.xlu1 %v7903_v47, %s7042_s21 }
0x241d   :  { %5211 = vrot.lane.b32.xlu0 %v7899_v41, %s7042_s21 }
0x243c   :  { %5077 = vadd.xlane.f32.xlu0 %v5076_v50 }
0x243e   :  { %5074 = vadd.xlane.f32.xlu1 %v5073_v4 }
0x244f   :  { %5203 = vrot.lane.b32.xlu1 %v7899_v41, %s7043_s25 }
0x2452   :  { %5201 = vrot.lane.b32.xlu0 %v7903_v47, %s7043_s25 }
0x2453   :  { %5207 = vrot.lane.b32.xlu1 %v7922_v26, %s7043_s25 }
0x2456   :  { %5205 = vrot.lane.b32.xlu0 %v7928_v55, %s7043_s25 }
0x2490   :  { %v5072_v16 = vpop.xlane.xlu0 %5071 }
0x2491   :  { %6862 = vrcp.f32 %v5072_v16 }
0x2492   :  { %v5069_v3 = vpop.xlane.xlu1 %5068 }
0x2493   :  { %6864 = vrcp.f32 %v5069_v3 }
0x2494   :  { %v5212_v41 = vpop.permute.xlu0 %5211 }
0x2496   :  { %v5210_v47 = vpop.permute.xlu1 %5209 }
0x249e   :  { %v6863_v11 = vpop.eup %6862 }
0x249f   :  { %v5084_v44 = vmul.f32 %v6863_v11, %v6855_v7 }
0x24a0   :  { %v6865_v17 = vpop.eup %6864 }
0x24a1   :  { %v5083_v18 = vmul.f32 %v6865_v17, %v6857_v60 }
0x24a3   :  { %6558 = vmatprep.mubr.msk.f32.mxu1 %vm720_vm6, %v5083_v18 }
0x24a4   :  { %6559 = vmatmul.mubr.msk.f32.vlgmr.msra.gmra.mxu1 %vm720_vm6, %v5084_v44 }
0x24a5   :  { %6565 = vmatpush3.xpose.msk.msra.mxu1 %vm618_vm5, %v5216_v30 }
0x24a6   :  { %6566 = vmatprep.subr.msk.mxu1 %vm618_vm5, %v5214_v14 }
0x24a9   :  { %6567 = vmatpush3.xpose.msk.msra.mxu1 %vm618_vm5, %v5214_v14 }
0x24aa   :  { %6568 = vmatprep.subr.msk.mxu1 %vm618_vm5, %v5212_v41 }
0x24ad   :  { %6569 = vmatpush3.xpose.msk.msra.mxu1 %vm618_vm5, %v5212_v41 }
0x24ae   :  { %6570 = vmatprep.subr.msk.mxu1 %vm618_vm5, %v5210_v47 }
0x24b1   :  { %6571 = vmatpush3.xpose.msk.msra.mxu1 %vm618_vm5, %v5210_v47 }
0x24c5   :  { %v5078_v26 = vpop.xlane.xlu0 %5077 }
0x24c6   :  { %6866 = vrcp.f32 %v5078_v26 }
0x24c7   :  { %v5075_v55 = vpop.xlane.xlu1 %5074 }
0x24c8   :  { %6868 = vrcp.f32 %v5075_v55 }
0x24c9   :  { %v5202_v1 = vpop.permute.xlu0 %5201 }
0x24cb   :  { %v5204_v61 = vpop.permute.xlu1 %5203 }
0x24cd   :  { %v5206_v38 = vpop.permute.xlu0 %5205 }
0x24cf   :  { %v5208_v24 = vpop.permute.xlu1 %5207 }
0x24d3   :  { %v6867_v8 = vpop.eup %6866 }
0x24d4   :  { %v5086_v15 = vmul.f32 %v6867_v8, %v6859_v5 }
0x24d5   :  { %v6869_v19 = vpop.eup %6868 }
0x24d6   :  { %v5085_v33 = vmul.f32 %v6869_v19, %v6861_v48 }
0x24d8   :  { %6561 = vmatprep.mubr.msk.f32.mxu1 %vm720_vm6, %v5085_v33 }
0x24d9   :  { %6562 = vmatmul.mubr.msk.f32.gmra.mxu1 %vm720_vm6, %v5086_v15 }
0x24da   :  { %6572 = vmatprep.mubr.msk.f32.mxu1 %vm618_vm5, %v5202_v1 }
0x24dd   :  { %6573 = vmatmul.mubr.msk.f32.vlgmr.msra.gmra.mxu1 %vm618_vm5, %v5204_v61 }
0x24de   :  { %6575 = vmatprep.mubr.msk.f32.mxu1 %vm618_vm5, %v5206_v38 }
0x24e1   :  { %6576 = vmatmul.mubr.msk.f32.gmra.mxu1 %vm618_vm5, %v5208_v24 }
0x2564   :  { %v6560_v12 = vpop.f32.mrf.mxu1 }
0x2565   :  { %v8400_v32 = vadd.f32 %v6560_v12, %v8348_v25 }
0x2566   :  { %v5178_v59 = vpop.f32.mrf.mxu1 }
0x2567   :  { %v8403_v10 = vadd.f32 %v5178_v59, %v8351_v9 }
0x2599   :  { %v6563_v21 = vpop.f32.mrf.mxu1 }
0x259a   :  { %v8406_v35 = vadd.f32 %v6563_v21, %v8354_v45 }
0x259b   :  { %v5188_v37 = vpop.f32.mrf.mxu1 }
0x259c   :  { %v8409_v6 = vadd.f32 %v5188_v37, %v8357_v63 }
0x259d   :  { %v6574_v36 = vpop.f32.mrf.mxu1 }
0x259e   :  { %v5321_v27 = vsel %vm720_vm6, %v6574_v36, -inf }
0x259f   :  { %5322 = vmax.xlane.f32.xlu1 %v5321_v27  ;;  %v5299_v57 = vpop.f32.mrf.mxu1 }
0x25a0   :  { %v5318_v25 = vsel %vm720_vm6, %v5299_v57, -inf }
0x25a1   :  { %5319 = vmax.xlane.f32.xlu0 %v5318_v25  ;;  %v6577_v54 = vpop.f32.mrf.mxu1 }
0x25a2   :  { %v5327_v45 = vsel %vm730_vm7, %v6577_v54, -inf }
0x25a3   :  { %v5309_v42 = vpop.f32.mrf.mxu1 }
0x25a4   :  { %v5324_v9 = vsel %vm720_vm6, %v5309_v42, -inf }
0x25a5   :  { %5325 = vmax.xlane.f32.xlu0 %v5324_v9 }
0x25a9   :  { %5328 = vmax.xlane.f32.xlu0 %v5327_v45 }
0x25b0   :  { %5368 = vrot.lane.b32.xlu1 %v8098_v13, %s7035_s22 }
0x2628   :  { %v5323_v63 = vpop.xlane.xlu1 %5322 }
0x2629   :  { %v5331_v56 = vsub.f32 %v6574_v36, %v5323_v63 }
0x262a   :  { %v5320_v20 = vpop.xlane.xlu0 %5319 }
0x262b   :  { %v5336_v34 = vmul.f32 1.442695, %v5331_v56  ;;  %v5330_v31 = vsub.f32 %v5299_v57, %v5320_v20 }
0x262c   :  { %v5369_v39 = vpop.permute.xlu1 %5368 }
0x262d   :  { %6870 = vpow2.f32 %v5336_v34  ;;  %v5334_v40 = vmul.f32 1.442695, %v5330_v31  ;;  %6578 = vmatprep.subr.msk.mxu0 %vm419_vm4, %v5369_v39 }
0x262e   :  { %6579 = vmatpush3.msk.msra.mxu0 %vm419_vm4, %v5369_v39  ;;  %v5326_v43 = vpop.xlane.xlu0 %5325 }
0x262f   :  { %6872 = vpow2.f32 %v5334_v40  ;;  %v5332_v62 = vsub.f32 %v5309_v42, %v5326_v43 }
0x2631   :  { %v5338_v53 = vmul.f32 1.442695, %v5332_v62 }
0x2632   :  { %v5329_v46 = vpop.xlane.xlu0 %5328 }
0x2633   :  { %v5333_v22 = vsub.f32 %v6577_v54, %v5329_v46 }
0x2635   :  { %v5340_v23 = vmul.f32 1.442695, %v5333_v22 }
0x2637   :  { %6874 = vpow2.f32 %v5340_v23 }
0x2638   :  { %6876 = vpow2.f32 %v5338_v53 }
0x263a   :  { %v6871_v30 = vpop.eup %6870 }
0x263b   :  { %v5345_v13 = vsel %vm720_vm6, %v6871_v30, 0.0 }
0x263c   :  { %v6873_v7 = vpop.eup %6872  ;;  %5346 = vadd.xlane.f32.xlu0 %v5345_v13 }
0x263d   :  { %v5342_v58 = vsel %vm720_vm6, %v6873_v7, 0.0 }
0x263e   :  { %5343 = vadd.xlane.f32.xlu1 %v5342_v58 }
0x2644   :  { %v6875_v60 = vpop.eup %6874 }
0x2645   :  { %v5351_v28 = vsel %vm730_vm7, %v6875_v60, 0.0  ;;  %v6877_v29 = vpop.eup %6876 }
0x2646   :  { %5352 = vadd.xlane.f32.xlu0 %v5351_v28  ;;  %v5348_v2 = vsel %vm720_vm6, %v6877_v29, 0.0 }
0x264f   :  { %5364 = vrot.lane.b32.xlu1 %v7918_v52, %s7035_s22 }
0x265c   :  { %5366 = vrot.lane.b32.xlu0 %v7926_v0, %s7035_s22 }
0x2673   :  { %5349 = vadd.xlane.f32.xlu1 %v5348_v2 }
0x2684   :  { %5362 = vrot.lane.b32.xlu1 %v7914_v49, %s7035_s22 }
0x26c5   :  { %v5347_v48 = vpop.xlane.xlu0 %5346 }
0x26c7   :  { %v5344_v5 = vpop.xlane.xlu1 %5343 }
0x26c8   :  { %6878 = vrcp.f32 %v5344_v5 }
0x26c9   :  { %6880 = vrcp.f32 %v5347_v48 }
0x26cb   :  { %v5365_v14 = vpop.permute.xlu1 %5364 }
0x26cf   :  { %v5353_v50 = vpop.xlane.xlu0 %5352 }
0x26d0   :  { %6882 = vrcp.f32 %v5353_v50 }
0x26d3   :  { %v5367_v4 = vpop.permute.xlu0 %5366 }
0x26d4   :  { %6580 = vmatprep.subr.mxu0 %v5367_v4 }
0x26d5   :  { %v6879_v52 = vpop.eup %6878  ;;  %6581 = vmatpush3.msra.mxu0 %v5367_v4 }
0x26d6   :  { %6582 = vmatprep.subr.mxu0 %v5365_v14  ;;  %v5358_v0 = vmul.f32 %v6879_v52, %v6873_v7  ;;  %v6881_v3 = vpop.eup %6880 }
0x26d7   :  { %6583 = vmatpush3.msra.mxu0 %v5365_v14  ;;  %v5359_v11 = vmul.f32 %v6881_v3, %v6871_v30 }
0x26d8   :  { %6586 = vmatprep.mubr.msk.f32.mxu0 %vm720_vm6, %v5358_v0 }
0x26dd   :  { %v6883_v17 = vpop.eup %6882 }
0x26de   :  { %v5361_v41 = vmul.f32 %v6883_v17, %v6875_v60 }
0x26fc   :  { %v5350_v16 = vpop.xlane.xlu1 %5349 }
0x26fd   :  { %6884 = vrcp.f32 %v5350_v16 }
0x2700   :  { %v5363_v49 = vpop.permute.xlu1 %5362 }
0x2701   :  { %6584 = vmatprep.subr.mxu0 %v5363_v49 }
0x2702   :  { %6585 = vmatpush3.msra.mxu0 %v5363_v49 }
0x2703   :  { %6587 = vmatmul.mubr.msk.f32.vlgmr.msra.gmra.mxu0 %vm720_vm6, %v5359_v11 }
0x270a   :  { %v6885_v18 = vpop.eup %6884 }
0x270b   :  { %v5360_v44 = vmul.f32 %v6885_v18, %v6877_v29 }
0x270d   :  { %6589 = vmatprep.mubr.msk.f32.mxu0 %vm720_vm6, %v5360_v44 }
0x270e   :  { %6590 = vmatmul.mubr.msk.f32.gmra.mxu0 %vm720_vm6, %v5361_v41 }
0x27c3   :  { %v6588_v47 = vpop.f32.mrf.mxu0 }
0x27c4   :  { %v5473_v57 = vadd.f32 %v6588_v47, %v8400_v32 }
0x27c5   :  { %v5453_v26 = vpop.f32.mrf.mxu0 }
0x27ce   :  { %v6591_v55 = vpop.f32.mrf.mxu0 }
0x27cf   :  { %v5475_v8 = vadd.f32 %v6591_v55, %v8406_v35  ;;  %v5472_v35 = vadd.f32 %v5453_v26, %v8403_v10 }
0x27d0   :  { %v5463_v19 = vpop.f32.mrf.mxu0 }
0x27d1   :  { %v5474_v33 = vadd.f32 %v5463_v19, %v8409_v6  ;;  %v5479_v1 = vrot.slane %v5475_v8, 1 }
0x27d3   :  { %v5478_v15 = vrot.slane %v5474_v33, 1 }
0x27d5   :  { %v5480_v61 = vsel %vm2799_vm8, %v5478_v15, %v5479_v1 }
0x27d6   :  { %v5482_v38 = vsel %vm129_vm1, %v5480_v61, 0.0 }
0x27d7   :  { %v5483_v24 = vrot.slane %v5482_v38, 4 }
0x27d9   :  { %v5484_v12 = vadd.f32 %v5483_v24, %v5482_v38 }
0x27db   :  { %v5485_v59 = vrot.slane %v5484_v12, 2 }
0x27dd   :  { %v5486_v21 = vadd.f32 %v5485_v59, %v5484_v12 }
0x27df   :  { %v5487_v37 = vrot.slane %v5486_v21, 1 }
0x27e1   :  { %v5488_v36 = vadd.f32 %v5487_v37, %v5486_v21 }
0x27e3   :  { %v5489_v27 = vmul.f32 0.125, %v5488_v36 }
0x27e5   :  { %v5490_v25 = vmul.f32 %v7850_v51, %v5489_v27  ;;  %v5491_v6 = vmul.f32 0.0, %v5489_v27 }
0x27e7   :  { %v5493_v54 = vadd.f32 %v5490_v25, %v5472_v35  ;;  %v5494_v42 = vadd.f32 %v5491_v6, %v5473_v57  ;;  %v5495_v9 = vadd.f32 %v5491_v6, %v5474_v33 }
0x27e9   :  { %5745 = vst.msk [vmem:[%s8463_s11 + $0x18] sm:$0xff] %vm129_vm1, %v5493_v54  ;;  %5746 = vst.msk [vmem:[%s8463_s11 + $0x20] sm:$0xff] %vm129_vm1, %v5494_v42 }
0x27ea   :  { %5747 = vst.msk [vmem:[%s8463_s11 + $0x28] sm:$0x1] %vm133_vm2, %v5495_v9 }
0x27eb   :  { %5504 = vsyncpa [#allocation3], 1 }
0x27ec   :  { %5505 = vsyncpa [#allocation5], 1 }
0x27ed   :  { %5506 = vsyncpa [#allocation8], 1 }

</bundles_post_ra>
